<compile_context>
chip_gen: v7x
topology: tpu7x:2x2x1
jax: 0.10.0
libtpu: 0.0.40
codegen_flags: <defaults>
</compile_context>

<pallas_src>
import functools

import numpy as np
import jax
import jax.numpy as jnp
from jax.experimental import pallas as pl
from jax.experimental.pallas import tpu as pltpu


POOL = 7                              # RoI pooled size (7x7)
KSIZE = 7                             # stem conv kernel
STRIDE = 2                            # stem conv stride
WIN = STRIDE * (POOL - 1) + KSIZE     # 19: padded-input window feeding one RoI

# Surrogate RoI offsets in feature-map coordinates (see TODO above): an 8x8 grid
# -> 64 RoIs per image, so even a 2-image batch fills a full 128-row MXU tile.
_ROI_GRID = (0, 1, 3, 4, 5, 6, 8, 9)
ROI_OFFSETS = tuple((oy, ox) for oy in _ROI_GRID for ox in _ROI_GRID)


def _round_up(x, m):
    return ((x + m - 1) // m) * m


def _pick_rows_and_tile(rows):
    # >=256 rows: 128-row "parallel" tiles (lets v7x's two TensorCores split the
    # RoI axis, keeps stores unmasked).  Small counts: one block, padded to a
    # multiple of 16 (bf16 vreg packs 16 sublanes).
    if rows >= 256:
        rows_p = _round_up(rows, 128)
        return rows_p, 128
    rows_p = _round_up(max(rows, 16), 16)
    return rows_p, rows_p


# ---------------------------------------------------------------------------
# Fused Pallas kernel: stem conv -> RoI features -> TwoMLPHead -> predictor
# ---------------------------------------------------------------------------
def fused_detection_kernel(win_ref, t_ref, bias_ref, w6_ref, w7_ref, wp_ref,
                           out_ref, *, num_classes):
    feat_w = t_ref.shape[1]     # 512
    hid_w = w6_ref.shape[1]     # 128
    out_w = out_ref.shape[1]    # 128 (>= 6 * num_classes)

    # Stem conv (exact, as Toeplitz matmul) + bias + ReLU -> RoI features.
    x = win_ref[...].astype(jnp.bfloat16)
    feat = jnp.dot(x, t_ref[...], preferred_element_type=jnp.float32)
    feat = jnp.maximum(feat + bias_ref[0:1, 0:feat_w], 0.0)

    # TwoMLPHead: fc6 + ReLU, fc7 + ReLU (bf16 MXU inputs, f32 accumulation).
    h = jnp.dot(feat.astype(jnp.bfloat16), w6_ref[...],
                preferred_element_type=jnp.float32)
    h = jnp.maximum(h + bias_ref[1:2, 0:hid_w], 0.0)
    h = jnp.dot(h.astype(jnp.bfloat16), w7_ref[...],
                preferred_element_type=jnp.float32)
    h = jnp.maximum(h + bias_ref[2:3, 0:hid_w], 0.0)

    # FastRCNNPredictor: one GEMM whose columns are already at their final
    # packed positions: [logits 0:c | logits copy c:2c | deltas 2c:6c | zeros].
    p = jnp.dot(h.astype(jnp.bfloat16), wp_ref[...],
                preferred_element_type=jnp.float32)
    p = p + bias_ref[3:4, 0:out_w]

    # Full-lane masked softmax on the duplicate-logit lanes [c, 2c): no sub-vreg
    # slicing, no lane shifts; exp(-inf) = 0 so the padded lanes drop out.
    lane = jax.lax.broadcasted_iota(jnp.int32, p.shape, 1)
    in_cls = (lane >= num_classes) & (lane < 2 * num_classes)
    masked = jnp.where(in_cls, p, -jnp.inf)
    m = jnp.max(masked, axis=-1, keepdims=True)
    e = jnp.exp(masked - m)
    probs = e * pl.reciprocal(jnp.sum(e, axis=-1, keepdims=True), approx=False)

    # Single unmasked lane-dense store: [logits | probs | deltas | zero pad].
    out_ref[...] = jnp.where(in_cls, probs, p)


def fused_detection_forward(roi_windows, kparams, num_classes, tile_r):
    """roi_windows: [rows_p, k_pad] f32 (zero-padded).  Packed [rows_p, out_w]."""
    rows_p, k_pad = roi_windows.shape
    out_w = kparams["w_pred"].shape[1]
    grid = (rows_p // tile_r,)

    kernel = functools.partial(fused_detection_kernel, num_classes=num_classes)
    return pl.pallas_call(
        kernel,
        out_shape=jax.ShapeDtypeStruct((rows_p, out_w), jnp.float32),
        grid=grid,
        in_specs=[
            pl.BlockSpec((tile_r, k_pad), lambda i: (i, 0)),
            pl.BlockSpec(kparams["t_conv"].shape, lambda i: (0, 0)),
            pl.BlockSpec(kparams["bias_all"].shape, lambda i: (0, 0)),
            pl.BlockSpec(kparams["w6"].shape, lambda i: (0, 0)),
            pl.BlockSpec(kparams["w7"].shape, lambda i: (0, 0)),
            pl.BlockSpec(kparams["w_pred"].shape, lambda i: (0, 0)),
        ],
        out_specs=pl.BlockSpec((tile_r, out_w), lambda i: (i, 0)),
        compiler_params=pltpu.CompilerParams(
            dimension_semantics=("parallel",)),
    )(roi_windows, kparams["t_conv"], kparams["bias_all"],
      kparams["w6"], kparams["w7"], kparams["w_pred"])


# ---------------------------------------------------------------------------
# Parameter preparation (exact conv -> dense matmul rewrite + alignment padding)
# ---------------------------------------------------------------------------
def _conv_as_roi_matmul_weights(w_stem, k_pad, n_pad):
    """Exact 7x7 / stride-2 conv over a 19x19 input window as a dense matrix.

    T[i, f], i = c*19*19 + u*19 + v (flattened window pixel),
    f = oc*49 + py*7 + px (flattened RoI feature), so
    window_flat @ T == conv(window)[oc, py, px].  Padded to [k_pad, n_pad].
    """
    oc_n, c_n, kh_n, kw_n = w_stem.shape
    w_np = np.asarray(jax.device_get(w_stem), dtype=np.float32)
    t = np.zeros((k_pad, n_pad), dtype=np.float32)
    ocs, pys, pxs, cs, khs, kws = np.meshgrid(
        np.arange(oc_n), np.arange(POOL), np.arange(POOL),
        np.arange(c_n), np.arange(kh_n), np.arange(kw_n), indexing="ij")
    f = (ocs * POOL * POOL + pys * POOL + pxs).ravel()
    i = (cs * WIN * WIN + (STRIDE * pys + khs) * WIN + (STRIDE * pxs + kws)).ravel()
    t[i, f] = w_np[ocs.ravel(), cs.ravel(), khs.ravel(), kws.ravel()]
    return t


def _build_kernel_params(p, num_classes, pool, stem_out, rep_size):
    c = num_classes
    feat_in = stem_out * pool * pool              # 392
    k_raw = 3 * WIN * WIN                         # 1083
    k_pad = _round_up(k_raw, 128)                 # 1152 (lane-aligned LHS K)
    feat_pad = _round_up(feat_in, 256)            # 512 (256-wide MXU passes)
    hid_pad = _round_up(rep_size, 128)            # 128
    out_w = _round_up(6 * c, 128)                 # 128
    bias_w = max(feat_pad, hid_pad, out_w)

    t_conv = _conv_as_roi_matmul_weights(p["w_stem"], k_pad, feat_pad)

    w6 = np.zeros((feat_pad, hid_pad), np.float32)
    w6[:feat_in, :rep_size] = np.asarray(jax.device_get(p["w6"]))
    w7 = np.zeros((hid_pad, hid_pad), np.float32)
    w7[:rep_size, :rep_size] = np.asarray(jax.device_get(p["w7"]))

    # Predictor weights laid out at final packed column positions; the logits
    # are duplicated into lanes [c, 2c) so softmax lands where probs are stored.
    w_cls = np.asarray(jax.device_get(p["w_cls"]))
    w_box = np.asarray(jax.device_get(p["w_box"]))
    w_pred = np.zeros((hid_pad, out_w), np.float32)
    w_pred[:rep_size, 0:c] = w_cls
    w_pred[:rep_size, c:2 * c] = w_cls
    w_pred[:rep_size, 2 * c:6 * c] = w_box

    # All biases packed into one (8, bias_w) array -> single DMA per grid step.
    bias_all = np.zeros((8, bias_w), np.float32)
    bias_all[0, :feat_in] = np.repeat(
        np.asarray(jax.device_get(p["b_stem"])), pool * pool)
    bias_all[1, :rep_size] = np.asarray(jax.device_get(p["b6"]))
    bias_all[2, :rep_size] = np.asarray(jax.device_get(p["b7"]))
    b_cls = np.asarray(jax.device_get(p["b_cls"]))
    b_box = np.asarray(jax.device_get(p["b_box"]))
    bias_all[3, 0:c] = b_cls
    bias_all[3, c:2 * c] = b_cls
    bias_all[3, 2 * c:6 * c] = b_box

    return {
        "t_conv": jnp.asarray(t_conv, jnp.bfloat16),
        "bias_all": jnp.asarray(bias_all, jnp.float32),
        "w6": jnp.asarray(w6, jnp.bfloat16),
        "w7": jnp.asarray(w7, jnp.bfloat16),
        "w_pred": jnp.asarray(w_pred, jnp.bfloat16),
    }


# ---------------------------------------------------------------------------
# Jitted forward core: window extraction + fused kernel + vectorised post-proc
# ---------------------------------------------------------------------------
@functools.partial(jax.jit, static_argnames=("num_classes",))
def _forward_core(kparams, imgs, num_classes):
    n = imgs.shape[0]
    pad = KSIZE // 2
    xp = jnp.pad(imgs, ((0, 0), (0, 0), (pad, pad), (pad, pad)))   # [N,3,38,38]
    # Each RoI's conv inputs are one contiguous 19x19 window of the padded image
    # (no host-side im2col, no 49x data expansion).
    wins = [xp[:, :, STRIDE * oy:STRIDE * oy + WIN, STRIDE * ox:STRIDE * ox + WIN]
            for (oy, ox) in ROI_OFFSETS]
    win = jnp.stack(wins, axis=1)                                   # [N,R,3,19,19]
    win = win.reshape(n * len(ROI_OFFSETS), -1)                     # [rows, 1083]

    rows, k_raw = win.shape
    k_pad = kparams["t_conv"].shape[0]
    rows_p, tile_r = _pick_rows_and_tile(rows)
    win = jnp.pad(win, ((0, rows_p - rows), (0, k_pad - k_raw)))    # exact zero pad

    out = fused_detection_forward(win, kparams, num_classes, tile_r)
    out = out[:rows]

    c = num_classes
    logits = out[:, :c]
    probs = out[:, c:2 * c]
    deltas = out[:, 2 * c:6 * c]

    # Vectorised post-processing over ALL RoIs at once (class 0 = background).
    fg = probs[:, 1:]
    labels = jnp.argmax(fg, axis=-1) + 1
    scores = jnp.max(fg, axis=-1)
    return logits, deltas, labels, scores


# ---------------------------------------------------------------------------
# Model
# ---------------------------------------------------------------------------
class ObjectDetectionModelPallas:
    def __init__(self, num_classes, key,
                 stem_out=8, pool=POOL, representation_size=32):
        self.num_classes = num_classes
        self.pool = pool
        in_features = stem_out * pool * pool
        ks = jax.random.split(key, 10)
        s = 0.05
        # f32 master parameters (same shapes / roles as the reference module).
        self.params = {
            "w_stem": s * jax.random.normal(ks[0], (stem_out, 3, KSIZE, KSIZE), jnp.float32),
            "b_stem": s * jax.random.normal(ks[1], (stem_out,), jnp.float32),
            "w6": s * jax.random.normal(ks[2], (in_features, representation_size), jnp.float32),
            "b6": s * jax.random.normal(ks[3], (representation_size,), jnp.float32),
            "w7": s * jax.random.normal(ks[4], (representation_size, representation_size), jnp.float32),
            "b7": s * jax.random.normal(ks[5], (representation_size,), jnp.float32),
            "w_cls": s * jax.random.normal(ks[6], (representation_size, num_classes), jnp.float32),
            "b_cls": s * jax.random.normal(ks[7], (num_classes,), jnp.float32),
            "w_box": s * jax.random.normal(ks[8], (representation_size, num_classes * 4), jnp.float32),
            "b_box": s * jax.random.normal(ks[9], (num_classes * 4,), jnp.float32),
        }
        # Kernel-ready parameters: bf16 MXU weights, lane/sublane-aligned zero
        # padding, conv rewritten as a dense matmul, predictor pre-laid-out,
        # all biases packed into one array.
        self.kernel_params = _build_kernel_params(
            self.params, num_classes, pool, stem_out, representation_size)

    def __call__(self, x, targets=None):
        # TODO(synk): training mode (targets -> RPN/box losses) not implemented.
        imgs = jnp.stack(x)                                         # [N,3,H,W] NCHW
        logits, deltas, labels, scores = _forward_core(
            self.kernel_params, imgs, num_classes=self.num_classes)

        r = len(ROI_OFFSETS)
        results = []
        for i in range(imgs.shape[0]):
            sl = slice(i * r, (i + 1) * r)
            results.append({
                "cls_logits": logits[sl],
                "scores": scores[sl],
                "labels": labels[sl],
                "bbox_deltas": deltas[sl],
            })
        # TODO(synk): box decoding + per-class NMS of postprocess_detections omitted.
        return results


if __name__ == "__main__":
    key = jax.random.PRNGKey(0)
    key, k_img = jax.random.split(key)
    # List of NCHW images (the real model's transform resizes/pads to one size).
    images = [jax.random.normal(jax.random.fold_in(k_img, i), (3, 32, 32), jnp.float32)
              for i in range(2)]
    model = ObjectDetectionModelPallas(num_classes=5, key=key)
    out = model(images)
    jax.block_until_ready(out)
    print("KERNEL_OK")
</pallas_src>

<mosaic_0001>
module attributes {stable_mosaic.version = 11 : i64} {
  func.func @fused_detection_kernel(%arg0: i32, %arg1: memref<128x1152xf32, #tpu.memory_space<vmem>>, %arg2: memref<1152x512xbf16, #tpu.memory_space<vmem>>, %arg3: memref<8x512xf32, #tpu.memory_space<vmem>>, %arg4: memref<512x128xbf16, #tpu.memory_space<vmem>>, %arg5: memref<128x128xbf16, #tpu.memory_space<vmem>>, %arg6: memref<128x128xbf16, #tpu.memory_space<vmem>>, %arg7: memref<128x128xf32, #tpu.memory_space<vmem>>) attributes {dimension_semantics = [#tpu.dimension_semantics<parallel>], iteration_bounds = array<i64: 1>, scalar_prefetch = 0 : i64, scratch_operands = 0 : i64, tpu.core_type = #tpu.core_type<tc>, window_params = [{transform_indices = @transform_0, window_bounds = array<i64: 128, 1152>}, {pipeline_mode = #tpu.pipeline_mode<synchronous>, transform_indices = @transform_1, window_bounds = array<i64: 1152, 512>}, {pipeline_mode = #tpu.pipeline_mode<synchronous>, transform_indices = @transform_2, window_bounds = array<i64: 8, 512>}, {pipeline_mode = #tpu.pipeline_mode<synchronous>, transform_indices = @transform_3, window_bounds = array<i64: 512, 128>}, {pipeline_mode = #tpu.pipeline_mode<synchronous>, transform_indices = @transform_4, window_bounds = array<i64: 128, 128>}, {pipeline_mode = #tpu.pipeline_mode<synchronous>, transform_indices = @transform_5, window_bounds = array<i64: 128, 128>}, {transform_indices = @transform_6, window_bounds = array<i64: 128, 128>}]} {
    %c0 = arith.constant 0 : index
    %c0_0 = arith.constant 0 : index
    %0 = vector.load %arg1[%c0, %c0_0] : memref<128x1152xf32, #tpu.memory_space<vmem>>, vector<128x1152xf32>
    %1 = arith.truncf %0 : vector<128x1152xf32> to vector<128x1152xbf16>
    %c0_1 = arith.constant 0 : index
    %c0_2 = arith.constant 0 : index
    %2 = vector.load %arg2[%c0_1, %c0_2] : memref<1152x512xbf16, #tpu.memory_space<vmem>>, vector<1152x512xbf16>
    %cst = arith.constant dense<0.000000e+00> : vector<128x512xf32>
    %3 = tpu.matmul %1, %2, %cst {dimension_numbers = #tpu.dot_dimension_numbers<[1], [0], [0], [1], [0, 0, 1, 1], [], []>} : vector<128x1152xbf16>, vector<1152x512xbf16>, vector<128x512xf32> -> vector<128x512xf32>
    %c0_3 = arith.constant 0 : index
    %c0_4 = arith.constant 0 : index
    %4 = vector.load %arg3[%c0_3, %c0_4] : memref<8x512xf32, #tpu.memory_space<vmem>>, vector<1x512xf32>
    %5 = vector.broadcast %4 : vector<1x512xf32> to vector<128x512xf32>
    %6 = arith.addf %3, %5 : vector<128x512xf32>
    %cst_5 = arith.constant 0.000000e+00 : f32
    %7 = vector.broadcast %cst_5 : f32 to vector<128x512xf32>
    %8 = arith.maximumf %6, %7 : vector<128x512xf32>
    %9 = arith.truncf %8 : vector<128x512xf32> to vector<128x512xbf16>
    %c0_6 = arith.constant 0 : index
    %c0_7 = arith.constant 0 : index
    %10 = vector.load %arg4[%c0_6, %c0_7] : memref<512x128xbf16, #tpu.memory_space<vmem>>, vector<512x128xbf16>
    %cst_8 = arith.constant dense<0.000000e+00> : vector<128x128xf32>
    %11 = tpu.matmul %9, %10, %cst_8 {dimension_numbers = #tpu.dot_dimension_numbers<[1], [0], [0], [1], [0, 0, 1, 1], [], []>} : vector<128x512xbf16>, vector<512x128xbf16>, vector<128x128xf32> -> vector<128x128xf32>
    %c1 = arith.constant 1 : index
    %c0_9 = arith.constant 0 : index
    %12 = vector.load %arg3[%c1, %c0_9] : memref<8x512xf32, #tpu.memory_space<vmem>>, vector<1x128xf32>
    %13 = vector.broadcast %12 : vector<1x128xf32> to vector<128x128xf32>
    %14 = arith.addf %11, %13 : vector<128x128xf32>
    %cst_10 = arith.constant 0.000000e+00 : f32
    %15 = vector.broadcast %cst_10 : f32 to vector<128x128xf32>
    %16 = arith.maximumf %14, %15 : vector<128x128xf32>
    %17 = arith.truncf %16 : vector<128x128xf32> to vector<128x128xbf16>
    %c0_11 = arith.constant 0 : index
    %c0_12 = arith.constant 0 : index
    %18 = vector.load %arg5[%c0_11, %c0_12] : memref<128x128xbf16, #tpu.memory_space<vmem>>, vector<128x128xbf16>
    %cst_13 = arith.constant dense<0.000000e+00> : vector<128x128xf32>
    %19 = tpu.matmul %17, %18, %cst_13 {dimension_numbers = #tpu.dot_dimension_numbers<[1], [0], [0], [1], [0, 0, 1, 1], [], []>} : vector<128x128xbf16>, vector<128x128xbf16>, vector<128x128xf32> -> vector<128x128xf32>
    %c2 = arith.constant 2 : index
    %c0_14 = arith.constant 0 : index
    %20 = vector.load %arg3[%c2, %c0_14] : memref<8x512xf32, #tpu.memory_space<vmem>>, vector<1x128xf32>
    %21 = vector.broadcast %20 : vector<1x128xf32> to vector<128x128xf32>
    %22 = arith.addf %19, %21 : vector<128x128xf32>
    %cst_15 = arith.constant 0.000000e+00 : f32
    %23 = vector.broadcast %cst_15 : f32 to vector<128x128xf32>
    %24 = arith.maximumf %22, %23 : vector<128x128xf32>
    %25 = arith.truncf %24 : vector<128x128xf32> to vector<128x128xbf16>
    %c0_16 = arith.constant 0 : index
    %c0_17 = arith.constant 0 : index
    %26 = vector.load %arg6[%c0_16, %c0_17] : memref<128x128xbf16, #tpu.memory_space<vmem>>, vector<128x128xbf16>
    %cst_18 = arith.constant dense<0.000000e+00> : vector<128x128xf32>
    %27 = tpu.matmul %25, %26, %cst_18 {dimension_numbers = #tpu.dot_dimension_numbers<[1], [0], [0], [1], [0, 0, 1, 1], [], []>} : vector<128x128xbf16>, vector<128x128xbf16>, vector<128x128xf32> -> vector<128x128xf32>
    %c3 = arith.constant 3 : index
    %c0_19 = arith.constant 0 : index
    %28 = vector.load %arg3[%c3, %c0_19] : memref<8x512xf32, #tpu.memory_space<vmem>>, vector<1x128xf32>
    %29 = vector.broadcast %28 : vector<1x128xf32> to vector<128x128xf32>
    %30 = arith.addf %27, %29 : vector<128x128xf32>
    %31 = tpu.iota {dimensions = array<i32: 1>} : vector<128x128xi32>
    %c5_i32 = arith.constant 5 : i32
    %32 = vector.broadcast %c5_i32 : i32 to vector<128x128xi32>
    %33 = arith.cmpi sge, %31, %32 : vector<128x128xi32>
    %c10_i32 = arith.constant 10 : i32
    %34 = vector.broadcast %c10_i32 : i32 to vector<128x128xi32>
    %35 = arith.cmpi slt, %31, %34 : vector<128x128xi32>
    %36 = arith.andi %33, %35 : vector<128x128xi1>
    %cst_20 = arith.constant 0xFF800000 : f32
    %37 = vector.broadcast %cst_20 : f32 to vector<128x128xf32>
    %38 = arith.select %36, %30, %37 : vector<128x128xi1>, vector<128x128xf32>
    %cst_21 = arith.constant dense<0xFF800000> : vector<128xf32>
    %39 = vector.multi_reduction <maximumf>, %38, %cst_21 [1] : vector<128x128xf32> to vector<128xf32>
    %40 = vector.shape_cast %39 : vector<128xf32> to vector<128x1xf32>
    %41 = vector.broadcast %40 : vector<128x1xf32> to vector<128x128xf32>
    %42 = arith.subf %38, %41 : vector<128x128xf32>
    %43 = math.exp %42 : vector<128x128xf32>
    %cst_22 = arith.constant dense<0.000000e+00> : vector<128xf32>
    %44 = vector.multi_reduction <add>, %43, %cst_22 [1] : vector<128x128xf32> to vector<128xf32>
    %45 = vector.shape_cast %44 : vector<128xf32> to vector<128x1xf32>
    %46 = tpu.reciprocal %45 : vector<128x1xf32> -> vector<128x1xf32>
    %47 = vector.broadcast %46 : vector<128x1xf32> to vector<128x128xf32>
    %48 = arith.mulf %43, %47 : vector<128x128xf32>
    %49 = arith.select %36, %48, %30 : vector<128x128xi1>, vector<128x128xf32>
    %c0_23 = arith.constant 0 : index
    %c0_24 = arith.constant 0 : index
    %50 = vector.load %arg7[%c0_23, %c0_24] : memref<128x128xf32, #tpu.memory_space<vmem>>, vector<128x128xf32>
    tpu.vector_store %arg7[%c0_23, %c0_24], %49 {strides = array<i32>} : memref<128x128xf32, #tpu.memory_space<vmem>>, vector<128x128xf32>,
    return
  }
  func.func @transform_0(%arg0: i32) -> (i32, i32) {
    %c0_i32 = arith.constant 0 : i32
    %c0_i32_0 = arith.constant 0 : i32
    return %arg0, %c0_i32 : i32, i32
  }
  func.func @transform_1(%arg0: i32) -> (i32, i32) {
    %c0_i32 = arith.constant 0 : i32
    %c0_i32_0 = arith.constant 0 : i32
    %c0_i32_1 = arith.constant 0 : i32
    return %c0_i32, %c0_i32_0 : i32, i32
  }
  func.func @transform_2(%arg0: i32) -> (i32, i32) {
    %c0_i32 = arith.constant 0 : i32
    %c0_i32_0 = arith.constant 0 : i32
    %c0_i32_1 = arith.constant 0 : i32
    return %c0_i32, %c0_i32_0 : i32, i32
  }
  func.func @transform_3(%arg0: i32) -> (i32, i32) {
    %c0_i32 = arith.constant 0 : i32
    %c0_i32_0 = arith.constant 0 : i32
    %c0_i32_1 = arith.constant 0 : i32
    return %c0_i32, %c0_i32_0 : i32, i32
  }
  func.func @transform_4(%arg0: i32) -> (i32, i32) {
    %c0_i32 = arith.constant 0 : i32
    %c0_i32_0 = arith.constant 0 : i32
    %c0_i32_1 = arith.constant 0 : i32
    return %c0_i32, %c0_i32_0 : i32, i32
  }
  func.func @transform_5(%arg0: i32) -> (i32, i32) {
    %c0_i32 = arith.constant 0 : i32
    %c0_i32_0 = arith.constant 0 : i32
    %c0_i32_1 = arith.constant 0 : i32
    return %c0_i32, %c0_i32_0 : i32, i32
  }
  func.func @transform_6(%arg0: i32) -> (i32, i32) {
    %c0_i32 = arith.constant 0 : i32
    %c0_i32_0 = arith.constant 0 : i32
    return %arg0, %c0_i32 : i32, i32
  }
}

</mosaic_0001>

<bundles_post_ra>
// kernel: _forward_core.1
= control target key start
LH: loop header
LB: loop body
LE: loop exit
PB: predicated region body
PF: predicated region fallthrough
CT: control target
= control target key end

     0   :  { %s7565_s1 = inlined_call_operand.vmem [shape: bf16[1152,512], index: 1, kind: input, shape index: {}]   ;;  %s7566_s0 = inlined_call_operand.vmem [shape: f32[128,1152], index: 0, kind: input, shape index: {}]   ;;  %s7567_s3 = inlined_call_operand.vmem [shape: bf16[512,128], index: 3, kind: input, shape index: {}]   ;;  %s7568_s4 = inlined_call_operand.vmem [shape: bf16[128,128], index: 4, kind: input, shape index: {}]   ;;  %s7569_s2 = inlined_call_operand.vmem [shape: f32[8,512], index: 2, kind: input, shape index: {}]   ;;  %s7570_s5 = inlined_call_operand.vmem [shape: bf16[128,128], index: 5, kind: input, shape index: {}]   ;;  %s7571_s6 = inlined_call_operand.vmem [shape: f32[128,128], index: 6, kind: output, shape index: {}]  }
   0x1   :  { %v5121_v0 = vld [vmem:[%s7565_s1 + $0x4] ss:$16 sps:$4 sm:$0xff]   ;;  %v5123_v1 = vld [vmem:[%s7565_s1 + $0xc] ss:$16 sps:$4 sm:$0xff]   ;;  %v5125_v2 = vld [vmem:[%s7565_s1] ss:$16 sps:$4 sm:$0xff]  }
   0x2   :  { %1990 = vmatprep.subr.bf16.mxu0 %v5121_v0  ;;  %v5126_v3 = vld [vmem:[%s7565_s1 + $0x8] ss:$16 sps:$4 sm:$0xff]   ;;  %2555 = vmatprep.subr.bf16.mxu1 %v5123_v1  ;;  %v5127_v4 = vld [vmem:[%s7565_s1 + $0x24] ss:$16 sps:$4 sm:$0xff]   ;;  %v5129_v5 = vld [vmem:[%s7565_s1 + $0x2c] ss:$16 sps:$4 sm:$0xff]  }
   0x3   :  { %1991 = vmatpush1.bf16.msra.mxu0 %v5125_v2  ;;  %2556 = vmatpush1.bf16.msra.mxu1 %v5126_v3  ;;  %v5131_v6 = vld [vmem:[%s7565_s1 + $0x20] ss:$16 sps:$4 sm:$0xff]   ;;  %v5132_v7 = vld [vmem:[%s7565_s1 + $0x28] ss:$16 sps:$4 sm:$0xff]   ;;  %v5133_v8 = vld [vmem:[%s7565_s1 + $0x44] ss:$16 sps:$4 sm:$0xff]  }
   0x4   :  { %1992 = vmatprep.subr.bf16.mxu0 %v5127_v4  ;;  %2557 = vmatprep.subr.bf16.mxu1 %v5129_v5  ;;  %v5135_v9 = vld [vmem:[%s7565_s1 + $0x4c] ss:$16 sps:$4 sm:$0xff]   ;;  %v5137_v10 = vld [vmem:[%s7565_s1 + $0x40] ss:$16 sps:$4 sm:$0xff]   ;;  %v5138_v11 = vld [vmem:[%s7565_s1 + $0x48] ss:$16 sps:$4 sm:$0xff]  }
   0x5   :  { %v5139_v12 = vld [vmem:[%s7565_s1 + $0x64] ss:$16 sps:$4 sm:$0xff]   ;;  %v5141_v13 = vld [vmem:[%s7565_s1 + $0x6c] ss:$16 sps:$4 sm:$0xff]   ;;  %v5143_v14 = vld [vmem:[%s7565_s1 + $0x60] ss:$16 sps:$4 sm:$0xff]  }
   0x6   :  { %v5144_v15 = vld [vmem:[%s7565_s1 + $0x68] ss:$16 sps:$4 sm:$0xff]   ;;  %v5145_v16 = vld [vmem:[%s7565_s1 + $0x84] ss:$16 sps:$4 sm:$0xff]   ;;  %v5147_v17 = vld [vmem:[%s7565_s1 + $0x8c] ss:$16 sps:$4 sm:$0xff]  }
   0x7   :  { %1993 = vmatpush1.bf16.msra.mxu0 %v5131_v6  ;;  %2558 = vmatpush1.bf16.msra.mxu1 %v5132_v7  ;;  %v5149_v18 = vld [vmem:[%s7565_s1 + $0x80] ss:$16 sps:$4 sm:$0xff]   ;;  %v5150_v19 = vld [vmem:[%s7565_s1 + $0x88] ss:$16 sps:$4 sm:$0xff]   ;;  %v5151_v20 = vld [vmem:[%s7565_s1 + $0xa4] ss:$16 sps:$4 sm:$0xff]  }
   0x8   :  { %1994 = vmatprep.subr.bf16.mxu0 %v5133_v8  ;;  %2559 = vmatprep.subr.bf16.mxu1 %v5135_v9  ;;  %v5153_v21 = vld [vmem:[%s7565_s1 + $0xac] ss:$16 sps:$4 sm:$0xff]   ;;  %v5155_v22 = vld [vmem:[%s7565_s1 + $0xa0] ss:$16 sps:$4 sm:$0xff]   ;;  %v5156_v23 = vld [vmem:[%s7565_s1 + $0xa8] ss:$16 sps:$4 sm:$0xff]  }
   0x9   :  { %v5157_v24 = vld [vmem:[%s7565_s1 + $0xc4] ss:$16 sps:$4 sm:$0xff]   ;;  %v5159_v25 = vld [vmem:[%s7565_s1 + $0xcc] ss:$16 sps:$4 sm:$0xff]   ;;  %v5161_v26 = vld [vmem:[%s7565_s1 + $0xc0] ss:$16 sps:$4 sm:$0xff]  }
   0xa   :  { %v5162_v27 = vld [vmem:[%s7565_s1 + $0xc8] ss:$16 sps:$4 sm:$0xff]   ;;  %v5163_v28 = vld [vmem:[%s7565_s1 + $0xe4] ss:$16 sps:$4 sm:$0xff]   ;;  %v5165_v29 = vld [vmem:[%s7565_s1 + $0xec] ss:$16 sps:$4 sm:$0xff]  }
   0xb   :  { %1995 = vmatpush1.bf16.msra.mxu0 %v5137_v10  ;;  %2560 = vmatpush1.bf16.msra.mxu1 %v5138_v11  ;;  %v5167_v30 = vld [vmem:[%s7565_s1 + $0xe0] ss:$16 sps:$4 sm:$0xff]   ;;  %v5168_v31 = vld [vmem:[%s7565_s1 + $0xe8] ss:$16 sps:$4 sm:$0xff]   ;;  %v5169_v32 = vld [vmem:[%s7565_s1 + $0x104] ss:$16 sps:$4 sm:$0xff]  }
   0xc   :  { %1996 = vmatprep.subr.bf16.mxu0 %v5139_v12  ;;  %2561 = vmatprep.subr.bf16.mxu1 %v5141_v13  ;;  %v5171_v33 = vld [vmem:[%s7565_s1 + $0x10c] ss:$16 sps:$4 sm:$0xff]   ;;  %v5173_v34 = vld [vmem:[%s7565_s1 + $0x100] ss:$16 sps:$4 sm:$0xff]   ;;  %v5174_v35 = vld [vmem:[%s7565_s1 + $0x108] ss:$16 sps:$4 sm:$0xff]  }
   0xd   :  { %v5175_v36 = vld [vmem:[%s7565_s1 + $0x124] ss:$16 sps:$4 sm:$0xff]   ;;  %v5177_v37 = vld [vmem:[%s7565_s1 + $0x12c] ss:$16 sps:$4 sm:$0xff]   ;;  %v5179_v38 = vld [vmem:[%s7565_s1 + $0x120] ss:$16 sps:$4 sm:$0xff]  }
   0xe   :  { %v5180_v39 = vld [vmem:[%s7565_s1 + $0x128] ss:$16 sps:$4 sm:$0xff]   ;;  %v5181_v40 = vld [vmem:[%s7565_s1 + $0x144] ss:$16 sps:$4 sm:$0xff]   ;;  %v5183_v41 = vld [vmem:[%s7565_s1 + $0x14c] ss:$16 sps:$4 sm:$0xff]  }
   0xf   :  { %1997 = vmatpush1.bf16.msra.mxu0 %v5143_v14  ;;  %2562 = vmatpush1.bf16.msra.mxu1 %v5144_v15  ;;  %v5185_v42 = vld [vmem:[%s7565_s1 + $0x140] ss:$16 sps:$4 sm:$0xff]   ;;  %v5186_v43 = vld [vmem:[%s7565_s1 + $0x148] ss:$16 sps:$4 sm:$0xff]   ;;  %v5187_v44 = vld [vmem:[%s7565_s1 + $0x164] ss:$16 sps:$4 sm:$0xff]  }
  0x10   :  { %1998 = vmatprep.subr.bf16.mxu0 %v5145_v16  ;;  %2563 = vmatprep.subr.bf16.mxu1 %v5147_v17  ;;  %v5189_v45 = vld [vmem:[%s7565_s1 + $0x16c] ss:$16 sps:$4 sm:$0xff]   ;;  %v5191_v47 = vld [vmem:[%s7565_s1 + $0x160] ss:$16 sps:$4 sm:$0xff]   ;;  %v5192_v48 = vld [vmem:[%s7565_s1 + $0x168] ss:$16 sps:$4 sm:$0xff]  }
  0x11   :  { %v25_v46 = vld [vmem:[%s7566_s0 + $0x8] sm:$0xff]  ;;  %v34_v49 = vld [vmem:[%s7566_s0 + $0x50] sm:$0xff]  ;;  %v24_v3 = vld [vmem:[%s7566_s0] sm:$0xff] }
  0x12   :  { %v5193_v50 = vld [vmem:[%s7565_s1 + $0x184] ss:$16 sps:$4 sm:$0xff]   ;;  %v169_v51 = vpack.c.bf16 %v34_v49, %v25_v46  ;;  %v5195_v52 = vld [vmem:[%s7565_s1 + $0x18c] ss:$16 sps:$4 sm:$0xff]   ;;  %v5197_v53 = vld [vmem:[%s7565_s1 + $0x180] ss:$16 sps:$4 sm:$0xff]  }
  0x13   :  { %1999 = vmatpush1.bf16.msra.mxu0 %v5149_v18  ;;  %2564 = vmatpush1.bf16.msra.mxu1 %v5150_v19  ;;  %v5198_v54 = vld [vmem:[%s7565_s1 + $0x188] ss:$16 sps:$4 sm:$0xff]   ;;  %v5199_v55 = vld [vmem:[%s7565_s1 + $0x1a4] ss:$16 sps:$4 sm:$0xff]   ;;  %v5201_v56 = vld [vmem:[%s7565_s1 + $0x1ac] ss:$16 sps:$4 sm:$0xff]  }
  0x14   :  { %2000 = vmatprep.subr.bf16.mxu0 %v5151_v20  ;;  %2565 = vmatprep.subr.bf16.mxu1 %v5153_v21  ;;  %v5203_v57 = vld [vmem:[%s7565_s1 + $0x1a0] ss:$16 sps:$4 sm:$0xff]   ;;  %v5204_v58 = vld [vmem:[%s7565_s1 + $0x1a8] ss:$16 sps:$4 sm:$0xff]   ;;  %v5205_v59 = vld [vmem:[%s7565_s1 + $0x1c4] ss:$16 sps:$4 sm:$0xff]  }
  0x15   :  { %2022 = vmatprep.mubr.bf16.mxu0 %v169_v51  ;;  %2587 = vmatprep.mubr.bf16.mxu1 %v169_v51  ;;  %v5207_v60 = vld [vmem:[%s7565_s1 + $0x1cc] ss:$16 sps:$4 sm:$0xff]   ;;  %v5209_v61 = vld [vmem:[%s7565_s1 + $0x1c0] ss:$16 sps:$4 sm:$0xff]   ;;  %v5210_v62 = vld [vmem:[%s7565_s1 + $0x1c8] ss:$16 sps:$4 sm:$0xff]  }
  0x16   :  { %v5211_v63 = vld [vmem:[%s7565_s1 + $0x1e4] ss:$16 sps:$4 sm:$0xff]   ;;  %v5213_v0 = vld [vmem:[%s7565_s1 + $0x1ec] ss:$16 sps:$4 sm:$0xff]   ;;  %v5215_v1 = vld [vmem:[%s7565_s1 + $0x1e0] ss:$16 sps:$4 sm:$0xff]  }
  0x17   :  { %2001 = vmatpush1.bf16.msra.mxu0 %v5155_v22  ;;  %2566 = vmatpush1.bf16.msra.mxu1 %v5156_v23  ;;  %v5216_v2 = vld [vmem:[%s7565_s1 + $0x1e8] ss:$16 sps:$4 sm:$0xff]   ;;  %v5219_v5 = vld [vmem:[%s7565_s1 + $0x204] ss:$16 sps:$4 sm:$0xff]   ;;  %v5222_v6 = vld [vmem:[%s7565_s1 + $0x20c] ss:$16 sps:$4 sm:$0xff]  }
  0x18   :  { %2002 = vmatprep.subr.bf16.mxu0 %v5157_v24  ;;  %2567 = vmatprep.subr.bf16.mxu1 %v5159_v25  ;;  %v33_v4 = vld [vmem:[%s7566_s0 + $0x48] sm:$0xff]  ;;  %v5217_v7 = vld [vmem:[%s7565_s1 + $0x200] ss:$16 sps:$4 sm:$0xff]   ;;  %v43_v10 = vld [vmem:[%s7566_s0 + $0x98] sm:$0xff] }
  0x19   :  { %v168_v8 = vpack.c.bf16 %v33_v4, %v24_v3  ;;  %v5220_v9 = vld [vmem:[%s7565_s1 + $0x208] ss:$16 sps:$4 sm:$0xff]   ;;  %v52_v11 = vld [vmem:[%s7566_s0 + $0xe0] sm:$0xff]  ;;  %v5228_v13 = vld [vmem:[%s7565_s1 + $0x22c] ss:$16 sps:$4 sm:$0xff]  }
  0x1a   :  { %v5225_v12 = vld [vmem:[%s7565_s1 + $0x224] ss:$16 sps:$4 sm:$0xff]   ;;  %v5223_v14 = vld [vmem:[%s7565_s1 + $0x220] ss:$16 sps:$4 sm:$0xff]   ;;  %v178_v15 = vpack.c.bf16 %v52_v11, %v43_v10  ;;  %v5226_v16 = vld [vmem:[%s7565_s1 + $0x228] ss:$16 sps:$4 sm:$0xff]  }
  0x1b   :  { %2003 = vmatpush1.bf16.msra.mxu0 %v5161_v26  ;;  %2568 = vmatpush1.bf16.msra.mxu1 %v5162_v27  ;;  %v42_v17 = vld [vmem:[%s7566_s0 + $0x90] sm:$0xff]  ;;  %v51_v18 = vld [vmem:[%s7566_s0 + $0xd8] sm:$0xff]  ;;  %v61_v24 = vld [vmem:[%s7566_s0 + $0x128] sm:$0xff] }
  0x1c   :  { %2004 = vmatprep.subr.bf16.mxu0 %v5163_v28  ;;  %2569 = vmatprep.subr.bf16.mxu1 %v5165_v29  ;;  %v5231_v19 = vld [vmem:[%s7565_s1 + $0x244] ss:$16 sps:$4 sm:$0xff]   ;;  %v5234_v20 = vld [vmem:[%s7565_s1 + $0x24c] ss:$16 sps:$4 sm:$0xff]   ;;  %v5229_v21 = vld [vmem:[%s7565_s1 + $0x240] ss:$16 sps:$4 sm:$0xff]   ;;  %v177_v23 = vpack.c.bf16 %v51_v18, %v42_v17 }
  0x1d   :  { %v5232_v22 = vld [vmem:[%s7565_s1 + $0x248] ss:$16 sps:$4 sm:$0xff]   ;;  %v70_v25 = vld [vmem:[%s7566_s0 + $0x170] sm:$0xff]  ;;  %v5240_v27 = vld [vmem:[%s7565_s1 + $0x26c] ss:$16 sps:$4 sm:$0xff]  }
  0x1e   :  { %v5237_v26 = vld [vmem:[%s7565_s1 + $0x264] ss:$16 sps:$4 sm:$0xff]   ;;  %v187_v28 = vpack.c.bf16 %v70_v25, %v61_v24  ;;  %v5235_v29 = vld [vmem:[%s7565_s1 + $0x260] ss:$16 sps:$4 sm:$0xff]   ;;  %v87_v46 = vld [vmem:[%s7566_s0 + $0x1f8] sm:$0xff] }
  0x1f   :  { %2005 = vmatpush1.bf16.msra.mxu0 %v5167_v30  ;;  %2570 = vmatpush1.bf16.msra.mxu1 %v5168_v31  ;;  %v5238_v30 = vld [vmem:[%s7565_s1 + $0x268] ss:$16 sps:$4 sm:$0xff]   ;;  %v60_v31 = vld [vmem:[%s7566_s0 + $0x120] sm:$0xff]  ;;  %v142_v17 = vld [vmem:[%s7566_s0 + $0x3b0] sm:$0xff] }
  0x20   :  { %2006 = vmatprep.subr.bf16.mxu0 %v5169_v32  ;;  %2571 = vmatprep.subr.bf16.mxu1 %v5171_v33  ;;  %v69_v32 = vld [vmem:[%s7566_s0 + $0x168] sm:$0xff]  ;;  %v5243_v33 = vld [vmem:[%s7565_s1 + $0x284] ss:$16 sps:$4 sm:$0xff]   ;;  %v5253_v49 = vld [vmem:[%s7565_s1 + $0x2c0] ss:$16 sps:$4 sm:$0xff]  }
  0x21   :  { %v97_v51 = vld [vmem:[%s7566_s0 + $0x248] sm:$0xff]  ;;  %v5273_v4 = vld [vmem:[%s7565_s1 + $0x324] ss:$16 sps:$4 sm:$0xff]   ;;  %v123_v10 = vld [vmem:[%s7566_s0 + $0x318] sm:$0xff] }
  0x22   :  { %v5268_v3 = vld [vmem:[%s7565_s1 + $0x308] ss:$16 sps:$4 sm:$0xff]   ;;  %v5279_v11 = vld [vmem:[%s7565_s1 + $0x344] ss:$16 sps:$4 sm:$0xff]  }
  0x23   :  { %2007 = vmatpush1.bf16.msra.mxu0 %v5173_v34  ;;  %2572 = vmatpush1.bf16.msra.mxu1 %v5174_v35  ;;  %v5246_v34 = vld [vmem:[%s7565_s1 + $0x28c] ss:$16 sps:$4 sm:$0xff]   ;;  %v5241_v35 = vld [vmem:[%s7565_s1 + $0x280] ss:$16 sps:$4 sm:$0xff]   ;;  %v5285_v18 = vld [vmem:[%s7565_s1 + $0x364] ss:$16 sps:$4 sm:$0xff]  }
  0x24   :  { %2008 = vmatprep.subr.bf16.mxu0 %v5175_v36  ;;  %2573 = vmatprep.subr.bf16.mxu1 %v5177_v37  ;;  %v5244_v36 = vld [vmem:[%s7565_s1 + $0x288] ss:$16 sps:$4 sm:$0xff]   ;;  %v186_v37 = vpack.c.bf16 %v69_v32, %v60_v31  ;;  %v5291_v25 = vld [vmem:[%s7565_s1 + $0x384] ss:$16 sps:$4 sm:$0xff]  }
  0x25   :  { %v141_v24 = vld [vmem:[%s7566_s0 + $0x3a8] sm:$0xff]  ;;  %v160_v31 = vld [vmem:[%s7566_s0 + $0x440] sm:$0xff] }
  0x26   :  { %v5297_v32 = vld [vmem:[%s7565_s1 + $0x3a4] ss:$16 sps:$4 sm:$0xff]  }
  0x27   :  { %2009 = vmatpush1.bf16.msra.mxu0 %v5179_v38  ;;  %2574 = vmatpush1.bf16.msra.mxu1 %v5180_v39  ;;  %v79_v38 = vld [vmem:[%s7566_s0 + $0x1b8] sm:$0xff]  ;;  %v88_v39 = vld [vmem:[%s7566_s0 + $0x200] sm:$0xff] }
  0x28   :  { %2010 = vmatprep.subr.bf16.mxu0 %v5181_v40  ;;  %2575 = vmatprep.subr.bf16.mxu1 %v5183_v41  ;;  %v5249_v40 = vld [vmem:[%s7565_s1 + $0x2a4] ss:$16 sps:$4 sm:$0xff]   ;;  %v5252_v41 = vld [vmem:[%s7565_s1 + $0x2ac] ss:$16 sps:$4 sm:$0xff]  }
  0x2b   :  { %2011 = vmatpush1.bf16.msra.mxu0 %v5185_v42  ;;  %2576 = vmatpush1.bf16.msra.mxu1 %v5186_v43  ;;  %v5247_v42 = vld [vmem:[%s7565_s1 + $0x2a0] ss:$16 sps:$4 sm:$0xff]   ;;  %v196_v43 = vpack.c.bf16 %v88_v39, %v79_v38  ;;  %v159_v38 = vld [vmem:[%s7566_s0 + $0x438] sm:$0xff]  ;;  %v5303_v39 = vld [vmem:[%s7565_s1 + $0x3c4] ss:$16 sps:$4 sm:$0xff]  }
  0x2c   :  { %2012 = vmatprep.subr.bf16.mxu0 %v5187_v44  ;;  %2577 = vmatprep.subr.bf16.mxu1 %v5189_v45  ;;  %v5250_v44 = vld [vmem:[%s7565_s1 + $0x2a8] ss:$16 sps:$4 sm:$0xff]   ;;  %v78_v45 = vld [vmem:[%s7566_s0 + $0x1b0] sm:$0xff] }
  0x2f   :  { %2013 = vmatpush1.bf16.msra.mxu0 %v5191_v47  ;;  %2578 = vmatpush1.bf16.msra.mxu1 %v5192_v48  ;;  %v5255_v47 = vld [vmem:[%s7565_s1 + $0x2c4] ss:$16 sps:$4 sm:$0xff]   ;;  %v5258_v48 = vld [vmem:[%s7565_s1 + $0x2cc] ss:$16 sps:$4 sm:$0xff]  }
  0x30   :  { %2014 = vmatprep.subr.bf16.mxu0 %v5193_v50  ;;  %2579 = vmatprep.subr.bf16.mxu1 %v5195_v52  ;;  %v195_v50 = vpack.c.bf16 %v87_v46, %v78_v45  ;;  %v106_v52 = vld [vmem:[%s7566_s0 + $0x290] sm:$0xff]  ;;  %v36_v45 = vld [vmem:[%s7566_s0 + $0x60] sm:$0xff] }
  0x31   :  { %v5309_v46 = vld [vmem:[%s7565_s1 + $0x3e4] ss:$16 sps:$4 sm:$0xff]  }
  0x33   :  { %2015 = vmatpush1.bf16.msra.mxu0 %v5197_v53  ;;  %2580 = vmatpush1.bf16.msra.mxu1 %v5198_v54  ;;  %v5256_v53 = vld [vmem:[%s7565_s1 + $0x2c8] ss:$16 sps:$4 sm:$0xff]   ;;  %v5261_v54 = vld [vmem:[%s7565_s1 + $0x2e4] ss:$16 sps:$4 sm:$0xff]  }
  0x34   :  { %2016 = vmatprep.subr.bf16.mxu0 %v5199_v55  ;;  %2581 = vmatprep.subr.bf16.mxu1 %v5201_v56  ;;  %v5264_v55 = vld [vmem:[%s7565_s1 + $0x2ec] ss:$16 sps:$4 sm:$0xff]   ;;  %v5259_v56 = vld [vmem:[%s7565_s1 + $0x2e0] ss:$16 sps:$4 sm:$0xff]  }
  0x37   :  { %2017 = vmatpush1.bf16.msra.mxu0 %v5203_v57  ;;  %2582 = vmatpush1.bf16.msra.mxu1 %v5204_v58  ;;  %v5262_v57 = vld [vmem:[%s7565_s1 + $0x2e8] ss:$16 sps:$4 sm:$0xff]   ;;  %v205_v58 = vpack.c.bf16 %v106_v52, %v97_v51  ;;  %v26_v51 = vld [vmem:[%s7566_s0 + $0x10] sm:$0xff] }
  0x38   :  { %2018 = vmatprep.subr.bf16.mxu0 %v5205_v59  ;;  %2583 = vmatprep.subr.bf16.mxu1 %v5207_v60  ;;  %v96_v59 = vld [vmem:[%s7566_s0 + $0x240] sm:$0xff]  ;;  %v105_v60 = vld [vmem:[%s7566_s0 + $0x288] sm:$0xff]  ;;  %v35_v52 = vld [vmem:[%s7566_s0 + $0x58] sm:$0xff] }
  0x3b   :  { %2019 = vmatpush1.bf16.msra.mxu0 %v5209_v61  ;;  %2584 = vmatpush1.bf16.msra.mxu1 %v5210_v62  ;;  %v5267_v61 = vld [vmem:[%s7565_s1 + $0x304] ss:$16 sps:$4 sm:$0xff]   ;;  %v5270_v62 = vld [vmem:[%s7565_s1 + $0x30c] ss:$16 sps:$4 sm:$0xff]  }
  0x3c   :  { %2020 = vmatprep.subr.bf16.mxu0 %v5211_v63  ;;  %2585 = vmatprep.subr.bf16.mxu1 %v5213_v0  ;;  %v204_v63 = vpack.c.bf16 %v105_v60, %v96_v59  ;;  %v115_v0 = vld [vmem:[%s7566_s0 + $0x2d8] sm:$0xff]  ;;  %v5321_v60 = vld [vmem:[%s7565_s1 + $0x424] ss:$16 sps:$4 sm:$0xff]  }
  0x3d   :  { %v5316_v59 = vld [vmem:[%s7565_s1 + $0x408] ss:$16 sps:$4 sm:$0xff]  }
  0x3f   :  { %2021 = vmatpush1.bf16.msra.mxu0 %v5215_v1  ;;  %2586 = vmatpush1.bf16.msra.mxu1 %v5216_v2  ;;  %v124_v1 = vld [vmem:[%s7566_s0 + $0x320] sm:$0xff] }
  0x40   :  { %2103 = vmatprep.subr.bf16.mxu0 %v5219_v5  ;;  %2668 = vmatprep.subr.bf16.mxu1 %v5222_v6  ;;  %v5265_v2 = vld [vmem:[%s7565_s1 + $0x300] ss:$16 sps:$4 sm:$0xff]   ;;  %v5276_v5 = vld [vmem:[%s7565_s1 + $0x32c] ss:$16 sps:$4 sm:$0xff]  }
  0x41   :  { %v5271_v6 = vld [vmem:[%s7565_s1 + $0x320] ss:$16 sps:$4 sm:$0xff]  }
  0x42   :  { %2023 = vmatmul.mubr.bf16.vlgmr.msra.gmra.mrb[0].mxu0 %v168_v8  ;;  %2588 = vmatmul.mubr.bf16.vlgmr.msra.gmra.mrb[0].mxu1 %v168_v8  ;;  %v214_v8 = vpack.c.bf16 %v124_v1, %v115_v0  ;;  %v44_v1 = vld [vmem:[%s7566_s0 + $0xa0] sm:$0xff] }
  0x43   :  { %2104 = vmatpush1.bf16.msra.mxu0 %v5217_v7  ;;  %2669 = vmatpush1.bf16.msra.mxu1 %v5220_v9  ;;  %v5274_v7 = vld [vmem:[%s7565_s1 + $0x328] ss:$16 sps:$4 sm:$0xff]   ;;  %v114_v9 = vld [vmem:[%s7566_s0 + $0x2d0] sm:$0xff] }
  0x44   :  { %2105 = vmatprep.subr.bf16.mxu0 %v5225_v12  ;;  %2670 = vmatprep.subr.bf16.mxu1 %v5228_v13  ;;  %v5282_v12 = vld [vmem:[%s7565_s1 + $0x34c] ss:$16 sps:$4 sm:$0xff]   ;;  %v5277_v13 = vld [vmem:[%s7565_s1 + $0x340] ss:$16 sps:$4 sm:$0xff]  }
  0x45   :  { %2032 = vmatprep.mubr.bf16.mxu0 %v178_v15  ;;  %2597 = vmatprep.mubr.bf16.mxu1 %v178_v15  ;;  %v5280_v15 = vld [vmem:[%s7565_s1 + $0x348] ss:$16 sps:$4 sm:$0xff]  }
  0x47   :  { %2106 = vmatpush1.bf16.msra.mxu0 %v5223_v14  ;;  %2671 = vmatpush1.bf16.msra.mxu1 %v5226_v16  ;;  %v213_v14 = vpack.c.bf16 %v123_v10, %v114_v9  ;;  %v133_v16 = vld [vmem:[%s7566_s0 + $0x368] sm:$0xff]  ;;  %v5333_v10 = vld [vmem:[%s7565_s1 + $0x464] ss:$16 sps:$4 sm:$0xff]  }
  0x48   :  { %2107 = vmatprep.subr.bf16.mxu0 %v5231_v19  ;;  %2672 = vmatprep.subr.bf16.mxu1 %v5234_v20  ;;  %v5288_v19 = vld [vmem:[%s7565_s1 + $0x36c] ss:$16 sps:$4 sm:$0xff]   ;;  %v5283_v20 = vld [vmem:[%s7565_s1 + $0x360] ss:$16 sps:$4 sm:$0xff]   ;;  %v5328_v9 = vld [vmem:[%s7565_s1 + $0x448] ss:$16 sps:$4 sm:$0xff]  }
  0x4a   :  { %2033 = vmatmul.mubr.bf16.gmra.mrb[4].mxu0 %v177_v23  ;;  %2598 = vmatmul.mubr.bf16.gmra.mrb[4].mxu1 %v177_v23  ;;  %v132_v23 = vld [vmem:[%s7566_s0 + $0x360] sm:$0xff] }
  0x4b   :  { %2108 = vmatpush1.bf16.msra.mxu0 %v5229_v21  ;;  %2673 = vmatpush1.bf16.msra.mxu1 %v5232_v22  ;;  %v223_v21 = vpack.c.bf16 %v142_v17, %v133_v16  ;;  %v5286_v22 = vld [vmem:[%s7565_s1 + $0x368] ss:$16 sps:$4 sm:$0xff]   ;;  %v5339_v17 = vld [vmem:[%s7565_s1 + $0x484] ss:$16 sps:$4 sm:$0xff]  }
  0x4c   :  { %2109 = vmatprep.subr.bf16.mxu0 %v5237_v26  ;;  %2674 = vmatprep.subr.bf16.mxu1 %v5240_v27  ;;  %v5294_v26 = vld [vmem:[%s7565_s1 + $0x38c] ss:$16 sps:$4 sm:$0xff]   ;;  %v5289_v27 = vld [vmem:[%s7565_s1 + $0x380] ss:$16 sps:$4 sm:$0xff]  }
  0x4d   :  { %2042 = vmatprep.mubr.bf16.mxu0 %v187_v28  ;;  %2607 = vmatprep.mubr.bf16.mxu1 %v187_v28  ;;  %v5292_v28 = vld [vmem:[%s7565_s1 + $0x388] ss:$16 sps:$4 sm:$0xff]  }
  0x4e   :  { %v71_v16 = vld [vmem:[%s7566_s0 + $0x178] sm:$0xff] }
  0x4f   :  { %2110 = vmatpush1.bf16.msra.mxu0 %v5235_v29  ;;  %2675 = vmatpush1.bf16.msra.mxu1 %v5238_v30  ;;  %v222_v29 = vpack.c.bf16 %v141_v24, %v132_v23  ;;  %v151_v30 = vld [vmem:[%s7566_s0 + $0x3f8] sm:$0xff]  ;;  %v90_v23 = vld [vmem:[%s7566_s0 + $0x210] sm:$0xff] }
  0x50   :  { %2111 = vmatprep.subr.bf16.mxu0 %v5243_v33  ;;  %2676 = vmatprep.subr.bf16.mxu1 %v5246_v34  ;;  %v5300_v33 = vld [vmem:[%s7565_s1 + $0x3ac] ss:$16 sps:$4 sm:$0xff]   ;;  %v232_v34 = vpack.c.bf16 %v160_v31, %v151_v30  ;;  %v5345_v24 = vld [vmem:[%s7565_s1 + $0x4a4] ss:$16 sps:$4 sm:$0xff]  }
  0x51   :  { %v89_v30 = vld [vmem:[%s7566_s0 + $0x208] sm:$0xff]  ;;  %v5351_v31 = vld [vmem:[%s7565_s1 + $0x4c4] ss:$16 sps:$4 sm:$0xff]  }
  0x52   :  { %2043 = vmatmul.mubr.bf16.gmra.mrb[8].mxu0 %v186_v37  ;;  %2608 = vmatmul.mubr.bf16.gmra.mrb[8].mxu1 %v186_v37  ;;  %v150_v37 = vld [vmem:[%s7566_s0 + $0x3f0] sm:$0xff] }
  0x53   :  { %2112 = vmatpush1.bf16.msra.mxu0 %v5241_v35  ;;  %2677 = vmatpush1.bf16.msra.mxu1 %v5244_v36  ;;  %v5295_v35 = vld [vmem:[%s7565_s1 + $0x3a0] ss:$16 sps:$4 sm:$0xff]   ;;  %v5298_v36 = vld [vmem:[%s7565_s1 + $0x3a8] ss:$16 sps:$4 sm:$0xff]  }
  0x54   :  { %2113 = vmatprep.subr.bf16.mxu0 %v5249_v40  ;;  %2678 = vmatprep.subr.bf16.mxu1 %v5252_v41  ;;  %v5306_v40 = vld [vmem:[%s7565_s1 + $0x3cc] ss:$16 sps:$4 sm:$0xff]   ;;  %v5301_v41 = vld [vmem:[%s7565_s1 + $0x3c0] ss:$16 sps:$4 sm:$0xff]  }
  0x55   :  { %2052 = vmatprep.mubr.bf16.mxu0 %v196_v43  ;;  %2617 = vmatprep.mubr.bf16.mxu1 %v196_v43  ;;  %v231_v43 = vpack.c.bf16 %v159_v38, %v150_v37  ;;  %v108_v37 = vld [vmem:[%s7566_s0 + $0x2a0] sm:$0xff] }
  0x56   :  { %v5357_v38 = vld [vmem:[%s7565_s1 + $0x4e4] ss:$16 sps:$4 sm:$0xff]  }
  0x57   :  { %2114 = vmatpush1.bf16.msra.mxu0 %v5247_v42  ;;  %2679 = vmatpush1.bf16.msra.mxu1 %v5250_v44  ;;  %v5304_v42 = vld [vmem:[%s7565_s1 + $0x3c8] ss:$16 sps:$4 sm:$0xff]  }
  0x58   :  { %2115 = vmatprep.subr.bf16.mxu0 %v5255_v47  ;;  %2680 = vmatprep.subr.bf16.mxu1 %v5258_v48  ;;  %v27_v44 = vld [vmem:[%s7566_s0 + $0x18] sm:$0xff]  ;;  %v5307_v48 = vld [vmem:[%s7565_s1 + $0x3e0] ss:$16 sps:$4 sm:$0xff]  }
  0x59   :  { %v5312_v47 = vld [vmem:[%s7565_s1 + $0x3ec] ss:$16 sps:$4 sm:$0xff]  }
  0x5a   :  { %2053 = vmatmul.mubr.bf16.gmra.mrb[12].mxu0 %v195_v50  ;;  %2618 = vmatmul.mubr.bf16.gmra.mrb[12].mxu1 %v195_v50  ;;  %v5310_v50 = vld [vmem:[%s7565_s1 + $0x3e8] ss:$16 sps:$4 sm:$0xff]  }
  0x5b   :  { %2116 = vmatpush1.bf16.msra.mxu0 %v5253_v49  ;;  %2681 = vmatpush1.bf16.msra.mxu1 %v5256_v53  ;;  %v171_v49 = vpack.c.bf16 %v36_v45, %v27_v44  ;;  %v5315_v53 = vld [vmem:[%s7565_s1 + $0x404] ss:$16 sps:$4 sm:$0xff]   ;;  %v107_v44 = vld [vmem:[%s7566_s0 + $0x298] sm:$0xff] }
  0x5c   :  { %2117 = vmatprep.subr.bf16.mxu0 %v5261_v54  ;;  %2682 = vmatprep.subr.bf16.mxu1 %v5264_v55  ;;  %v5318_v54 = vld [vmem:[%s7565_s1 + $0x40c] ss:$16 sps:$4 sm:$0xff]   ;;  %v5313_v55 = vld [vmem:[%s7565_s1 + $0x400] ss:$16 sps:$4 sm:$0xff]   ;;  %v5363_v45 = vld [vmem:[%s7565_s1 + $0x504] ss:$16 sps:$4 sm:$0xff]  }
  0x5d   :  { %2062 = vmatprep.mubr.bf16.mxu0 %v205_v58  ;;  %2627 = vmatprep.mubr.bf16.mxu1 %v205_v58  ;;  %v54_v58 = vld [vmem:[%s7566_s0 + $0xf0] sm:$0xff] }
  0x5f   :  { %2118 = vmatpush1.bf16.msra.mxu0 %v5259_v56  ;;  %2683 = vmatpush1.bf16.msra.mxu1 %v5262_v57  ;;  %v170_v56 = vpack.c.bf16 %v35_v52, %v26_v51  ;;  %v45_v57 = vld [vmem:[%s7566_s0 + $0xa8] sm:$0xff]  ;;  %v126_v51 = vld [vmem:[%s7566_s0 + $0x330] sm:$0xff] }
  0x60   :  { %2119 = vmatprep.subr.bf16.mxu0 %v5267_v61  ;;  %2684 = vmatprep.subr.bf16.mxu1 %v5270_v62  ;;  %v5324_v61 = vld [vmem:[%s7565_s1 + $0x42c] ss:$16 sps:$4 sm:$0xff]   ;;  %v5319_v62 = vld [vmem:[%s7565_s1 + $0x420] ss:$16 sps:$4 sm:$0xff]   ;;  %v180_v0 = vpack.c.bf16 %v54_v58, %v45_v57  ;;  %v5369_v52 = vld [vmem:[%s7565_s1 + $0x524] ss:$16 sps:$4 sm:$0xff]  }
  0x61   :  { %v116_v57 = vld [vmem:[%s7566_s0 + $0x2e0] sm:$0xff]  ;;  %v125_v58 = vld [vmem:[%s7566_s0 + $0x328] sm:$0xff] }
  0x62   :  { %2063 = vmatmul.mubr.bf16.gmra.mrb[16].mxu0 %v204_v63  ;;  %2628 = vmatmul.mubr.bf16.gmra.mrb[16].mxu1 %v204_v63  ;;  %v5322_v63 = vld [vmem:[%s7565_s1 + $0x428] ss:$16 sps:$4 sm:$0xff]  }
  0x63   :  { %2120 = vmatpush1.bf16.msra.mxu0 %v5265_v2  ;;  %2685 = vmatpush1.bf16.msra.mxu1 %v5268_v3  ;;  %v53_v2 = vld [vmem:[%s7566_s0 + $0xe8] sm:$0xff]  ;;  %v5327_v3 = vld [vmem:[%s7565_s1 + $0x444] ss:$16 sps:$4 sm:$0xff]  }
  0x64   :  { %2121 = vmatprep.subr.bf16.mxu0 %v5273_v4  ;;  %2686 = vmatprep.subr.bf16.mxu1 %v5276_v5  ;;  %v5330_v4 = vld [vmem:[%s7565_s1 + $0x44c] ss:$16 sps:$4 sm:$0xff]   ;;  %v179_v5 = vpack.c.bf16 %v53_v2, %v44_v1  ;;  %v5376_v1 = vld [vmem:[%s7565_s1 + $0x548] ss:$16 sps:$4 sm:$0xff]   ;;  %v5381_v2 = vld [vmem:[%s7565_s1 + $0x564] ss:$16 sps:$4 sm:$0xff]  }
  0x65   :  { %2072 = vmatprep.mubr.bf16.mxu0 %v214_v8  ;;  %2637 = vmatprep.mubr.bf16.mxu1 %v214_v8  ;;  %v5325_v8 = vld [vmem:[%s7565_s1 + $0x440] ss:$16 sps:$4 sm:$0xff]  }
  0x67   :  { %2122 = vmatpush1.bf16.msra.mxu0 %v5271_v6  ;;  %2687 = vmatpush1.bf16.msra.mxu1 %v5274_v7  ;;  %v63_v6 = vld [vmem:[%s7566_s0 + $0x138] sm:$0xff]  ;;  %v72_v7 = vld [vmem:[%s7566_s0 + $0x180] sm:$0xff] }
  0x68   :  { %2123 = vmatprep.subr.bf16.mxu0 %v5279_v11  ;;  %2688 = vmatprep.subr.bf16.mxu1 %v5282_v12  ;;  %v5336_v11 = vld [vmem:[%s7565_s1 + $0x46c] ss:$16 sps:$4 sm:$0xff]   ;;  %v5331_v12 = vld [vmem:[%s7565_s1 + $0x460] ss:$16 sps:$4 sm:$0xff]  }
  0x6a   :  { %2073 = vmatmul.mubr.bf16.gmra.mrb[20].mxu0 %v213_v14  ;;  %2638 = vmatmul.mubr.bf16.gmra.mrb[20].mxu1 %v213_v14  ;;  %v189_v14 = vpack.c.bf16 %v72_v7, %v63_v6  ;;  %v134_v7 = vld [vmem:[%s7566_s0 + $0x370] sm:$0xff] }
  0x6b   :  { %2124 = vmatpush1.bf16.msra.mxu0 %v5277_v13  ;;  %2689 = vmatpush1.bf16.msra.mxu1 %v5280_v15  ;;  %v5334_v13 = vld [vmem:[%s7565_s1 + $0x468] ss:$16 sps:$4 sm:$0xff]   ;;  %v62_v15 = vld [vmem:[%s7566_s0 + $0x130] sm:$0xff] }
  0x6c   :  { %2125 = vmatprep.subr.bf16.mxu0 %v5285_v18  ;;  %2690 = vmatprep.subr.bf16.mxu1 %v5288_v19  ;;  %v5342_v18 = vld [vmem:[%s7565_s1 + $0x48c] ss:$16 sps:$4 sm:$0xff]   ;;  %v5337_v19 = vld [vmem:[%s7565_s1 + $0x480] ss:$16 sps:$4 sm:$0xff]  }
  0x6d   :  { %2082 = vmatprep.mubr.bf16.mxu0 %v223_v21  ;;  %2647 = vmatprep.mubr.bf16.mxu1 %v223_v21  ;;  %v5340_v21 = vld [vmem:[%s7565_s1 + $0x488] ss:$16 sps:$4 sm:$0xff]  }
  0x6f   :  { %2126 = vmatpush1.bf16.msra.mxu0 %v5283_v20  ;;  %2691 = vmatpush1.bf16.msra.mxu1 %v5286_v22  ;;  %v188_v20 = vpack.c.bf16 %v71_v16, %v62_v15  ;;  %v81_v22 = vld [vmem:[%s7566_s0 + $0x1c8] sm:$0xff]  ;;  %v5393_v16 = vld [vmem:[%s7565_s1 + $0x5a4] ss:$16 sps:$4 sm:$0xff]  }
  0x70   :  { %2127 = vmatprep.subr.bf16.mxu0 %v5291_v25  ;;  %2692 = vmatprep.subr.bf16.mxu1 %v5294_v26  ;;  %v5348_v25 = vld [vmem:[%s7565_s1 + $0x4ac] ss:$16 sps:$4 sm:$0xff]   ;;  %v5343_v26 = vld [vmem:[%s7565_s1 + $0x4a0] ss:$16 sps:$4 sm:$0xff]   ;;  %v5388_v15 = vld [vmem:[%s7565_s1 + $0x588] ss:$16 sps:$4 sm:$0xff]  }
  0x72   :  { %2083 = vmatmul.mubr.bf16.gmra.mrb[24].mxu0 %v222_v29  ;;  %2648 = vmatmul.mubr.bf16.gmra.mrb[24].mxu1 %v222_v29  ;;  %v80_v29 = vld [vmem:[%s7566_s0 + $0x1c0] sm:$0xff] }
  0x73   :  { %2128 = vmatpush1.bf16.msra.mxu0 %v5289_v27  ;;  %2693 = vmatpush1.bf16.msra.mxu1 %v5292_v28  ;;  %v198_v27 = vpack.c.bf16 %v90_v23, %v81_v22  ;;  %v5346_v28 = vld [vmem:[%s7565_s1 + $0x4a8] ss:$16 sps:$4 sm:$0xff]   ;;  %v5399_v23 = vld [vmem:[%s7565_s1 + $0x5c4] ss:$16 sps:$4 sm:$0xff]  }
  0x74   :  { %2129 = vmatprep.subr.bf16.mxu0 %v5297_v32  ;;  %2694 = vmatprep.subr.bf16.mxu1 %v5300_v33  ;;  %v5354_v32 = vld [vmem:[%s7565_s1 + $0x4cc] ss:$16 sps:$4 sm:$0xff]   ;;  %v5349_v33 = vld [vmem:[%s7565_s1 + $0x4c0] ss:$16 sps:$4 sm:$0xff]  }
  0x75   :  { %2092 = vmatprep.mubr.bf16.mxu0 %v232_v34  ;;  %2657 = vmatprep.mubr.bf16.mxu1 %v232_v34  ;;  %v5352_v34 = vld [vmem:[%s7565_s1 + $0x4c8] ss:$16 sps:$4 sm:$0xff]  }
  0x76   :  { %v161_v22 = vld [vmem:[%s7566_s0 + $0x448] sm:$0xff] }
  0x77   :  { %2130 = vmatpush1.bf16.msra.mxu0 %v5295_v35  ;;  %2695 = vmatpush1.bf16.msra.mxu1 %v5298_v36  ;;  %v197_v35 = vpack.c.bf16 %v89_v30, %v80_v29  ;;  %v99_v36 = vld [vmem:[%s7566_s0 + $0x258] sm:$0xff]  ;;  %v38_v29 = vld [vmem:[%s7566_s0 + $0x70] sm:$0xff] }
  0x78   :  { %2131 = vmatprep.subr.bf16.mxu0 %v5303_v39  ;;  %2696 = vmatprep.subr.bf16.mxu1 %v5306_v40  ;;  %v5360_v39 = vld [vmem:[%s7565_s1 + $0x4ec] ss:$16 sps:$4 sm:$0xff]   ;;  %v207_v40 = vpack.c.bf16 %v108_v37, %v99_v36  ;;  %v5405_v30 = vld [vmem:[%s7565_s1 + $0x5e4] ss:$16 sps:$4 sm:$0xff]  }
  0x79   :  { %v37_v36 = vld [vmem:[%s7566_s0 + $0x68] sm:$0xff]  ;;  %v5411_v37 = vld [vmem:[%s7565_s1 + $0x604] ss:$16 sps:$4 sm:$0xff]  }
  0x7a   :  { %2093 = vmatmul.mubr.bf16.gmra.mrb[28].mxu0 %v231_v43  ;;  %2658 = vmatmul.mubr.bf16.gmra.mrb[28].mxu1 %v231_v43  ;;  %v98_v43 = vld [vmem:[%s7566_s0 + $0x250] sm:$0xff] }
  0x7b   :  { %2132 = vmatpush1.bf16.msra.mxu0 %v5301_v41  ;;  %2697 = vmatpush1.bf16.msra.mxu1 %v5304_v42  ;;  %v5355_v41 = vld [vmem:[%s7565_s1 + $0x4e0] ss:$16 sps:$4 sm:$0xff]   ;;  %v5358_v42 = vld [vmem:[%s7565_s1 + $0x4e8] ss:$16 sps:$4 sm:$0xff]  }
  0x7c   :  { %2133 = vmatprep.subr.bf16.mxu0 %v5309_v46  ;;  %2698 = vmatprep.subr.bf16.mxu1 %v5312_v47  ;;  %v5366_v46 = vld [vmem:[%s7565_s1 + $0x50c] ss:$16 sps:$4 sm:$0xff]   ;;  %v5361_v47 = vld [vmem:[%s7565_s1 + $0x500] ss:$16 sps:$4 sm:$0xff]  }
  0x7d   :  { %2135 = vmatprep.mubr.bf16.mxu0 %v171_v49  ;;  %2700 = vmatprep.mubr.bf16.mxu1 %v171_v49  ;;  %v206_v49 = vpack.c.bf16 %v107_v44, %v98_v43  ;;  %v56_v43 = vld [vmem:[%s7566_s0 + $0x100] sm:$0xff] }
  0x7e   :  { %v5417_v44 = vld [vmem:[%s7565_s1 + $0x624] ss:$16 sps:$4 sm:$0xff]  }
  0x7f   :  { %2134 = vmatpush1.bf16.msra.mxu0 %v5307_v48  ;;  %2699 = vmatpush1.bf16.msra.mxu1 %v5310_v50  ;;  %v5364_v48 = vld [vmem:[%s7565_s1 + $0x508] ss:$16 sps:$4 sm:$0xff]  }
  0x80   :  { %2216 = vmatprep.subr.bf16.mxu0 %v5315_v53  ;;  %2781 = vmatprep.subr.bf16.mxu1 %v5318_v54  ;;  %v117_v50 = vld [vmem:[%s7566_s0 + $0x2e8] sm:$0xff]  ;;  %v5367_v54 = vld [vmem:[%s7565_s1 + $0x520] ss:$16 sps:$4 sm:$0xff]  }
  0x81   :  { %v5372_v53 = vld [vmem:[%s7565_s1 + $0x52c] ss:$16 sps:$4 sm:$0xff]  }
  0x82   :  { %2136 = vmatmul.mubr.bf16.vlgmr.msra.gmra.mrb[0].mxu0 %v170_v56  ;;  %2701 = vmatmul.mubr.bf16.vlgmr.msra.gmra.mrb[0].mxu1 %v170_v56  ;;  %v5370_v56 = vld [vmem:[%s7565_s1 + $0x528] ss:$16 sps:$4 sm:$0xff]  }
  0x83   :  { %2217 = vmatpush1.bf16.msra.mxu0 %v5313_v55  ;;  %2782 = vmatpush1.bf16.msra.mxu1 %v5316_v59  ;;  %v216_v55 = vpack.c.bf16 %v126_v51, %v117_v50  ;;  %v5375_v59 = vld [vmem:[%s7565_s1 + $0x544] ss:$16 sps:$4 sm:$0xff]   ;;  %v55_v50 = vld [vmem:[%s7566_s0 + $0xf8] sm:$0xff] }
  0x84   :  { %2218 = vmatprep.subr.bf16.mxu0 %v5321_v60  ;;  %2783 = vmatprep.subr.bf16.mxu1 %v5324_v61  ;;  %v5378_v60 = vld [vmem:[%s7565_s1 + $0x54c] ss:$16 sps:$4 sm:$0xff]   ;;  %v5373_v61 = vld [vmem:[%s7565_s1 + $0x540] ss:$16 sps:$4 sm:$0xff]   ;;  %v5423_v51 = vld [vmem:[%s7565_s1 + $0x644] ss:$16 sps:$4 sm:$0xff]  }
  0x85   :  { %2145 = vmatprep.mubr.bf16.mxu0 %v180_v0  ;;  %2710 = vmatprep.mubr.bf16.mxu1 %v180_v0  ;;  %v144_v0 = vld [vmem:[%s7566_s0 + $0x3c0] sm:$0xff] }
  0x87   :  { %2219 = vmatpush1.bf16.msra.mxu0 %v5319_v62  ;;  %2784 = vmatpush1.bf16.msra.mxu1 %v5322_v63  ;;  %v215_v62 = vpack.c.bf16 %v125_v58, %v116_v57  ;;  %v135_v63 = vld [vmem:[%s7566_s0 + $0x378] sm:$0xff]  ;;  %v74_v57 = vld [vmem:[%s7566_s0 + $0x190] sm:$0xff] }
  0x88   :  { %2220 = vmatprep.subr.bf16.mxu0 %v5327_v3  ;;  %2785 = vmatprep.subr.bf16.mxu1 %v5330_v4  ;;  %v5384_v3 = vld [vmem:[%s7565_s1 + $0x56c] ss:$16 sps:$4 sm:$0xff]   ;;  %v5379_v4 = vld [vmem:[%s7565_s1 + $0x560] ss:$16 sps:$4 sm:$0xff]   ;;  %v225_v6 = vpack.c.bf16 %v144_v0, %v135_v63  ;;  %v5429_v58 = vld [vmem:[%s7565_s1 + $0x664] ss:$16 sps:$4 sm:$0xff]  }
  0x89   :  { %v64_v63 = vld [vmem:[%s7566_s0 + $0x140] sm:$0xff]  ;;  %v73_v0 = vld [vmem:[%s7566_s0 + $0x188] sm:$0xff] }
  0x8a   :  { %2146 = vmatmul.mubr.bf16.gmra.mrb[4].mxu0 %v179_v5  ;;  %2711 = vmatmul.mubr.bf16.gmra.mrb[4].mxu1 %v179_v5  ;;  %v5382_v5 = vld [vmem:[%s7565_s1 + $0x568] ss:$16 sps:$4 sm:$0xff]  }
  0x8b   :  { %2221 = vmatpush1.bf16.msra.mxu0 %v5325_v8  ;;  %2786 = vmatpush1.bf16.msra.mxu1 %v5328_v9  ;;  %v143_v8 = vld [vmem:[%s7566_s0 + $0x3b8] sm:$0xff]  ;;  %v5387_v9 = vld [vmem:[%s7565_s1 + $0x584] ss:$16 sps:$4 sm:$0xff]  }
  0x8c   :  { %2222 = vmatprep.subr.bf16.mxu0 %v5333_v10  ;;  %2787 = vmatprep.subr.bf16.mxu1 %v5336_v11  ;;  %v5390_v10 = vld [vmem:[%s7565_s1 + $0x58c] ss:$16 sps:$4 sm:$0xff]   ;;  %v224_v11 = vpack.c.bf16 %v143_v8, %v134_v7  ;;  %v92_v7 = vld [vmem:[%s7566_s0 + $0x220] sm:$0xff] }
  0x8d   :  { %2155 = vmatprep.mubr.bf16.mxu0 %v189_v14  ;;  %2720 = vmatprep.mubr.bf16.mxu1 %v189_v14  ;;  %v5385_v14 = vld [vmem:[%s7565_s1 + $0x580] ss:$16 sps:$4 sm:$0xff]   ;;  %v5441_v8 = vld [vmem:[%s7565_s1 + $0x6a4] ss:$16 sps:$4 sm:$0xff]  }
  0x8f   :  { %2223 = vmatpush1.bf16.msra.mxu0 %v5331_v12  ;;  %2788 = vmatpush1.bf16.msra.mxu1 %v5334_v13  ;;  %v153_v12 = vld [vmem:[%s7566_s0 + $0x408] sm:$0xff]  ;;  %v162_v13 = vld [vmem:[%s7566_s0 + $0x450] sm:$0xff] }
  0x90   :  { %2224 = vmatprep.subr.bf16.mxu0 %v5339_v17  ;;  %2789 = vmatprep.subr.bf16.mxu1 %v5342_v18  ;;  %v5396_v17 = vld [vmem:[%s7565_s1 + $0x5ac] ss:$16 sps:$4 sm:$0xff]   ;;  %v5391_v18 = vld [vmem:[%s7565_s1 + $0x5a0] ss:$16 sps:$4 sm:$0xff]  }
  0x92   :  { %2156 = vmatmul.mubr.bf16.gmra.mrb[8].mxu0 %v188_v20  ;;  %2721 = vmatmul.mubr.bf16.gmra.mrb[8].mxu1 %v188_v20  ;;  %v234_v20 = vpack.c.bf16 %v162_v13, %v153_v12  ;;  %v5442_v12 = vld [vmem:[%s7565_s1 + $0x6a8] ss:$16 sps:$4 sm:$0xff]   ;;  %v82_v13 = vld [vmem:[%s7566_s0 + $0x1d0] sm:$0xff] }
  0x93   :  { %2225 = vmatpush1.bf16.msra.mxu0 %v5337_v19  ;;  %2790 = vmatpush1.bf16.msra.mxu1 %v5340_v21  ;;  %v5394_v19 = vld [vmem:[%s7565_s1 + $0x5a8] ss:$16 sps:$4 sm:$0xff]   ;;  %v152_v21 = vld [vmem:[%s7566_s0 + $0x400] sm:$0xff] }
  0x94   :  { %2226 = vmatprep.subr.bf16.mxu0 %v5345_v24  ;;  %2791 = vmatprep.subr.bf16.mxu1 %v5348_v25  ;;  %v5402_v24 = vld [vmem:[%s7565_s1 + $0x5cc] ss:$16 sps:$4 sm:$0xff]   ;;  %v5397_v25 = vld [vmem:[%s7565_s1 + $0x5c0] ss:$16 sps:$4 sm:$0xff]  }
  0x95   :  { %2165 = vmatprep.mubr.bf16.mxu0 %v198_v27  ;;  %2730 = vmatprep.mubr.bf16.mxu1 %v198_v27  ;;  %v5400_v27 = vld [vmem:[%s7565_s1 + $0x5c8] ss:$16 sps:$4 sm:$0xff]  }
  0x97   :  { %2227 = vmatpush1.bf16.msra.mxu0 %v5343_v26  ;;  %2792 = vmatpush1.bf16.msra.mxu1 %v5346_v28  ;;  %v233_v26 = vpack.c.bf16 %v161_v22, %v152_v21  ;;  %v29_v28 = vld [vmem:[%s7566_s0 + $0x28] sm:$0xff]  ;;  %v110_v21 = vld [vmem:[%s7566_s0 + $0x2b0] sm:$0xff] }
  0x98   :  { %2228 = vmatprep.subr.bf16.mxu0 %v5351_v31  ;;  %2793 = vmatprep.subr.bf16.mxu1 %v5354_v32  ;;  %v5408_v31 = vld [vmem:[%s7565_s1 + $0x5ec] ss:$16 sps:$4 sm:$0xff]   ;;  %v5403_v32 = vld [vmem:[%s7565_s1 + $0x5e0] ss:$16 sps:$4 sm:$0xff]   ;;  %v5453_v22 = vld [vmem:[%s7565_s1 + $0x6e4] ss:$16 sps:$4 sm:$0xff]  }
  0x9a   :  { %2166 = vmatmul.mubr.bf16.gmra.mrb[12].mxu0 %v197_v35  ;;  %2731 = vmatmul.mubr.bf16.gmra.mrb[12].mxu1 %v197_v35  ;;  %v28_v35 = vld [vmem:[%s7566_s0 + $0x20] sm:$0xff] }
  0x9b   :  { %2229 = vmatpush1.bf16.msra.mxu0 %v5349_v33  ;;  %2794 = vmatpush1.bf16.msra.mxu1 %v5352_v34  ;;  %v173_v33 = vpack.c.bf16 %v38_v29, %v29_v28  ;;  %v5406_v34 = vld [vmem:[%s7565_s1 + $0x5e8] ss:$16 sps:$4 sm:$0xff]   ;;  %v5459_v29 = vld [vmem:[%s7565_s1 + $0x704] ss:$16 sps:$4 sm:$0xff]  }
  0x9c   :  { %2230 = vmatprep.subr.bf16.mxu0 %v5357_v38  ;;  %2795 = vmatprep.subr.bf16.mxu1 %v5360_v39  ;;  %v5414_v38 = vld [vmem:[%s7565_s1 + $0x60c] ss:$16 sps:$4 sm:$0xff]   ;;  %v5409_v39 = vld [vmem:[%s7565_s1 + $0x600] ss:$16 sps:$4 sm:$0xff]  }
  0x9d   :  { %2175 = vmatprep.mubr.bf16.mxu0 %v207_v40  ;;  %2740 = vmatprep.mubr.bf16.mxu1 %v207_v40  ;;  %v5412_v40 = vld [vmem:[%s7565_s1 + $0x608] ss:$16 sps:$4 sm:$0xff]  }
  0x9e   :  { %v109_v28 = vld [vmem:[%s7566_s0 + $0x2a8] sm:$0xff] }
  0x9f   :  { %2231 = vmatpush1.bf16.msra.mxu0 %v5355_v41  ;;  %2796 = vmatpush1.bf16.msra.mxu1 %v5358_v42  ;;  %v172_v41 = vpack.c.bf16 %v37_v36, %v28_v35  ;;  %v47_v42 = vld [vmem:[%s7566_s0 + $0xb8] sm:$0xff]  ;;  %v128_v35 = vld [vmem:[%s7566_s0 + $0x340] sm:$0xff] }
  0xa0   :  { %2232 = vmatprep.subr.bf16.mxu0 %v5363_v45  ;;  %2797 = vmatprep.subr.bf16.mxu1 %v5366_v46  ;;  %v5420_v45 = vld [vmem:[%s7565_s1 + $0x62c] ss:$16 sps:$4 sm:$0xff]   ;;  %v182_v46 = vpack.c.bf16 %v56_v43, %v47_v42  ;;  %v5465_v36 = vld [vmem:[%s7565_s1 + $0x724] ss:$16 sps:$4 sm:$0xff]  }
  0xa1   :  { %v127_v42 = vld [vmem:[%s7566_s0 + $0x338] sm:$0xff]  ;;  %v5471_v43 = vld [vmem:[%s7565_s1 + $0x744] ss:$16 sps:$4 sm:$0xff]  }
  0xa2   :  { %2176 = vmatmul.mubr.bf16.gmra.mrb[16].mxu0 %v206_v49  ;;  %2741 = vmatmul.mubr.bf16.gmra.mrb[16].mxu1 %v206_v49  ;;  %v46_v49 = vld [vmem:[%s7566_s0 + $0xb0] sm:$0xff] }
  0xa3   :  { %2233 = vmatpush1.bf16.msra.mxu0 %v5361_v47  ;;  %2798 = vmatpush1.bf16.msra.mxu1 %v5364_v48  ;;  %v5415_v47 = vld [vmem:[%s7565_s1 + $0x620] ss:$16 sps:$4 sm:$0xff]   ;;  %v5418_v48 = vld [vmem:[%s7565_s1 + $0x628] ss:$16 sps:$4 sm:$0xff]  }
  0xa4   :  { %2234 = vmatprep.subr.bf16.mxu0 %v5369_v52  ;;  %2799 = vmatprep.subr.bf16.mxu1 %v5372_v53  ;;  %v5426_v52 = vld [vmem:[%s7565_s1 + $0x64c] ss:$16 sps:$4 sm:$0xff]   ;;  %v5421_v53 = vld [vmem:[%s7565_s1 + $0x640] ss:$16 sps:$4 sm:$0xff]  }
  0xa5   :  { %2185 = vmatprep.mubr.bf16.mxu0 %v216_v55  ;;  %2750 = vmatprep.mubr.bf16.mxu1 %v216_v55  ;;  %v181_v55 = vpack.c.bf16 %v55_v50, %v46_v49  ;;  %v146_v49 = vld [vmem:[%s7566_s0 + $0x3d0] sm:$0xff] }
  0xa6   :  { %v5477_v50 = vld [vmem:[%s7565_s1 + $0x764] ss:$16 sps:$4 sm:$0xff]  }
  0xa7   :  { %2235 = vmatpush1.bf16.msra.mxu0 %v5367_v54  ;;  %2800 = vmatpush1.bf16.msra.mxu1 %v5370_v56  ;;  %v5424_v54 = vld [vmem:[%s7565_s1 + $0x648] ss:$16 sps:$4 sm:$0xff]  }
  0xa8   :  { %2236 = vmatprep.subr.bf16.mxu0 %v5375_v59  ;;  %2801 = vmatprep.subr.bf16.mxu1 %v5378_v60  ;;  %v65_v56 = vld [vmem:[%s7566_s0 + $0x148] sm:$0xff]  ;;  %v5427_v60 = vld [vmem:[%s7565_s1 + $0x660] ss:$16 sps:$4 sm:$0xff]  }
  0xa9   :  { %v5432_v59 = vld [vmem:[%s7565_s1 + $0x66c] ss:$16 sps:$4 sm:$0xff]  }
  0xaa   :  { %2186 = vmatmul.mubr.bf16.gmra.mrb[20].mxu0 %v215_v62  ;;  %2751 = vmatmul.mubr.bf16.gmra.mrb[20].mxu1 %v215_v62  ;;  %v5430_v62 = vld [vmem:[%s7565_s1 + $0x668] ss:$16 sps:$4 sm:$0xff]  }
  0xab   :  { %2237 = vmatpush1.bf16.msra.mxu0 %v5373_v61  ;;  %2802 = vmatpush1.bf16.msra.mxu1 %v5376_v1  ;;  %v191_v61 = vpack.c.bf16 %v74_v57, %v65_v56  ;;  %v5435_v1 = vld [vmem:[%s7565_s1 + $0x684] ss:$16 sps:$4 sm:$0xff]   ;;  %v145_v56 = vld [vmem:[%s7566_s0 + $0x3c8] sm:$0xff] }
  0xac   :  { %2238 = vmatprep.subr.bf16.mxu0 %v5381_v2  ;;  %2803 = vmatprep.subr.bf16.mxu1 %v5384_v3  ;;  %v5438_v2 = vld [vmem:[%s7565_s1 + $0x68c] ss:$16 sps:$4 sm:$0xff]   ;;  %v5433_v3 = vld [vmem:[%s7565_s1 + $0x680] ss:$16 sps:$4 sm:$0xff]   ;;  %v5483_v57 = vld [vmem:[%s7565_s1 + $0x784] ss:$16 sps:$4 sm:$0xff]  }
  0xad   :  { %2195 = vmatprep.mubr.bf16.mxu0 %v225_v6  ;;  %2760 = vmatprep.mubr.bf16.mxu1 %v225_v6  ;;  %v83_v6 = vld [vmem:[%s7566_s0 + $0x1d8] sm:$0xff] }
  0xaf   :  { %2239 = vmatpush1.bf16.msra.mxu0 %v5379_v4  ;;  %2804 = vmatpush1.bf16.msra.mxu1 %v5382_v5  ;;  %v190_v4 = vpack.c.bf16 %v73_v0, %v64_v63  ;;  %v5436_v5 = vld [vmem:[%s7565_s1 + $0x688] ss:$16 sps:$4 sm:$0xff]   ;;  %v5489_v0 = vld [vmem:[%s7565_s1 + $0x7a4] ss:$16 sps:$4 sm:$0xff]  }
  0xb0   :  { %2240 = vmatprep.subr.bf16.mxu0 %v5387_v9  ;;  %2805 = vmatprep.subr.bf16.mxu1 %v5390_v10  ;;  %v5444_v9 = vld [vmem:[%s7565_s1 + $0x6ac] ss:$16 sps:$4 sm:$0xff]   ;;  %v5439_v10 = vld [vmem:[%s7565_s1 + $0x6a0] ss:$16 sps:$4 sm:$0xff]   ;;  %v5484_v63 = vld [vmem:[%s7565_s1 + $0x788] ss:$16 sps:$4 sm:$0xff]  }
  0xb2   :  { %2196 = vmatmul.mubr.bf16.gmra.mrb[24].mxu0 %v224_v11  ;;  %2761 = vmatmul.mubr.bf16.gmra.mrb[24].mxu1 %v224_v11  ;;  %v200_v11 = vpack.c.bf16 %v92_v7, %v83_v6  ;;  %v163_v6 = vld [vmem:[%s7566_s0 + $0x458] sm:$0xff]  ;;  %v5495_v7 = vld [vmem:[%s7565_s1 + $0x7c4] ss:$16 sps:$4 sm:$0xff]  }
  0xb3   :  { %2241 = vmatpush1.bf16.msra.mxu0 %v5385_v14  ;;  %2806 = vmatpush1.bf16.msra.mxu1 %v5388_v15  ;;  %v91_v14 = vld [vmem:[%s7566_s0 + $0x218] sm:$0xff]  ;;  %v5447_v15 = vld [vmem:[%s7565_s1 + $0x6c4] ss:$16 sps:$4 sm:$0xff]  }
  0xb4   :  { %2242 = vmatprep.subr.bf16.mxu0 %v5393_v16  ;;  %2807 = vmatprep.subr.bf16.mxu1 %v5396_v17  ;;  %v5450_v16 = vld [vmem:[%s7565_s1 + $0x6cc] ss:$16 sps:$4 sm:$0xff]   ;;  %v5445_v17 = vld [vmem:[%s7565_s1 + $0x6c0] ss:$16 sps:$4 sm:$0xff]  }
  0xb5   :  { %2205 = vmatprep.mubr.bf16.mxu0 %v234_v20  ;;  %2770 = vmatprep.mubr.bf16.mxu1 %v234_v20  ;;  %v101_v20 = vld [vmem:[%s7566_s0 + $0x268] sm:$0xff] }
  0xb7   :  { %2243 = vmatpush1.bf16.msra.mxu0 %v5391_v18  ;;  %2808 = vmatpush1.bf16.msra.mxu1 %v5394_v19  ;;  %v199_v18 = vpack.c.bf16 %v91_v14, %v82_v13  ;;  %v5448_v19 = vld [vmem:[%s7565_s1 + $0x6c8] ss:$16 sps:$4 sm:$0xff]   ;;  %v5501_v14 = vld [vmem:[%s7565_s1 + $0x7e4] ss:$16 sps:$4 sm:$0xff]  }
  0xb8   :  { %2244 = vmatprep.subr.bf16.mxu0 %v5399_v23  ;;  %2809 = vmatprep.subr.bf16.mxu1 %v5402_v24  ;;  %v5456_v23 = vld [vmem:[%s7565_s1 + $0x6ec] ss:$16 sps:$4 sm:$0xff]   ;;  %v5451_v24 = vld [vmem:[%s7565_s1 + $0x6e0] ss:$16 sps:$4 sm:$0xff]   ;;  %v5496_v13 = vld [vmem:[%s7565_s1 + $0x7c8] ss:$16 sps:$4 sm:$0xff]  }
  0xba   :  { %2206 = vmatmul.mubr.bf16.gmra.mrb[28].mxu0 %v233_v26  ;;  %2771 = vmatmul.mubr.bf16.gmra.mrb[28].mxu1 %v233_v26  ;;  %v5454_v26 = vld [vmem:[%s7565_s1 + $0x6e8] ss:$16 sps:$4 sm:$0xff]  }
  0xbb   :  { %2245 = vmatpush1.bf16.msra.mxu0 %v5397_v25  ;;  %2810 = vmatpush1.bf16.msra.mxu1 %v5400_v27  ;;  %v209_v25 = vpack.c.bf16 %v110_v21, %v101_v20  ;;  %v100_v27 = vld [vmem:[%s7566_s0 + $0x260] sm:$0xff]  ;;  %v39_v20 = vld [vmem:[%s7566_s0 + $0x78] sm:$0xff] }
  0xbc   :  { %2246 = vmatprep.subr.bf16.mxu0 %v5405_v30  ;;  %2811 = vmatprep.subr.bf16.mxu1 %v5408_v31  ;;  %v5462_v30 = vld [vmem:[%s7565_s1 + $0x70c] ss:$16 sps:$4 sm:$0xff]   ;;  %v5457_v31 = vld [vmem:[%s7565_s1 + $0x700] ss:$16 sps:$4 sm:$0xff]   ;;  %v5507_v21 = vld [vmem:[%s7565_s1 + $0x804] ss:$16 sps:$4 sm:$0xff]  }
  0xbd   :  { %2248 = vmatprep.mubr.bf16.mxu0 %v173_v33  ;;  %2813 = vmatprep.mubr.bf16.mxu1 %v173_v33  ;;  %v5460_v33 = vld [vmem:[%s7565_s1 + $0x708] ss:$16 sps:$4 sm:$0xff]  }
  0xbf   :  { %2247 = vmatpush1.bf16.msra.mxu0 %v5403_v32  ;;  %2812 = vmatpush1.bf16.msra.mxu1 %v5406_v34  ;;  %v208_v32 = vpack.c.bf16 %v109_v28, %v100_v27  ;;  %v119_v34 = vld [vmem:[%s7566_s0 + $0x2f8] sm:$0xff] }
  0xc0   :  { %2329 = vmatprep.subr.bf16.mxu0 %v5411_v37  ;;  %2894 = vmatprep.subr.bf16.mxu1 %v5414_v38  ;;  %v5468_v37 = vld [vmem:[%s7565_s1 + $0x72c] ss:$16 sps:$4 sm:$0xff]   ;;  %v5463_v38 = vld [vmem:[%s7565_s1 + $0x720] ss:$16 sps:$4 sm:$0xff]   ;;  %v5508_v27 = vld [vmem:[%s7565_s1 + $0x808] ss:$16 sps:$4 sm:$0xff]  }
  0xc2   :  { %2249 = vmatmul.mubr.bf16.vlgmr.msra.gmra.mrb[0].mxu0 %v172_v41  ;;  %2814 = vmatmul.mubr.bf16.vlgmr.msra.gmra.mrb[0].mxu1 %v172_v41  ;;  %v118_v41 = vld [vmem:[%s7566_s0 + $0x2f0] sm:$0xff] }
  0xc3   :  { %2330 = vmatpush1.bf16.msra.mxu0 %v5409_v39  ;;  %2895 = vmatpush1.bf16.msra.mxu1 %v5412_v40  ;;  %v218_v39 = vpack.c.bf16 %v128_v35, %v119_v34  ;;  %v5466_v40 = vld [vmem:[%s7565_s1 + $0x728] ss:$16 sps:$4 sm:$0xff]   ;;  %v5516_v34 = vld [vmem:[%s7565_s1 + $0x82c] ss:$16 sps:$4 sm:$0xff]  }
  0xc4   :  { %2331 = vmatprep.subr.bf16.mxu0 %v5417_v44  ;;  %2896 = vmatprep.subr.bf16.mxu1 %v5420_v45  ;;  %v5474_v44 = vld [vmem:[%s7565_s1 + $0x74c] ss:$16 sps:$4 sm:$0xff]   ;;  %v5469_v45 = vld [vmem:[%s7565_s1 + $0x740] ss:$16 sps:$4 sm:$0xff]  }
  0xc5   :  { %2258 = vmatprep.mubr.bf16.mxu0 %v182_v46  ;;  %2823 = vmatprep.mubr.bf16.mxu1 %v182_v46  ;;  %v217_v46 = vpack.c.bf16 %v127_v42, %v118_v41  ;;  %v67_v35 = vld [vmem:[%s7566_s0 + $0x158] sm:$0xff] }
  0xc6   :  { %v5520_v42 = vld [vmem:[%s7565_s1 + $0x848] ss:$16 sps:$4 sm:$0xff]  }
  0xc7   :  { %2332 = vmatpush1.bf16.msra.mxu0 %v5415_v47  ;;  %2897 = vmatpush1.bf16.msra.mxu1 %v5418_v48  ;;  %v5472_v47 = vld [vmem:[%s7565_s1 + $0x748] ss:$16 sps:$4 sm:$0xff]  }
  0xc8   :  { %2333 = vmatprep.subr.bf16.mxu0 %v5423_v51  ;;  %2898 = vmatprep.subr.bf16.mxu1 %v5426_v52  ;;  %v137_v48 = vld [vmem:[%s7566_s0 + $0x388] sm:$0xff] }
  0xc9   :  { %v5480_v51 = vld [vmem:[%s7565_s1 + $0x76c] ss:$16 sps:$4 sm:$0xff]   ;;  %v227_v52 = vpack.c.bf16 %v146_v49, %v137_v48  ;;  %v94_v48 = vld [vmem:[%s7566_s0 + $0x230] sm:$0xff] }
  0xca   :  { %2259 = vmatmul.mubr.bf16.gmra.mrb[4].mxu0 %v181_v55  ;;  %2824 = vmatmul.mubr.bf16.gmra.mrb[4].mxu1 %v181_v55  ;;  %v136_v55 = vld [vmem:[%s7566_s0 + $0x380] sm:$0xff] }
  0xcb   :  { %2334 = vmatpush1.bf16.msra.mxu0 %v5421_v53  ;;  %2899 = vmatpush1.bf16.msra.mxu1 %v5424_v54  ;;  %v5475_v53 = vld [vmem:[%s7565_s1 + $0x760] ss:$16 sps:$4 sm:$0xff]   ;;  %v5478_v54 = vld [vmem:[%s7565_s1 + $0x768] ss:$16 sps:$4 sm:$0xff]  }
  0xcc   :  { %2335 = vmatprep.subr.bf16.mxu0 %v5429_v58  ;;  %2900 = vmatprep.subr.bf16.mxu1 %v5432_v59  ;;  %v5486_v58 = vld [vmem:[%s7565_s1 + $0x78c] ss:$16 sps:$4 sm:$0xff]   ;;  %v226_v59 = vpack.c.bf16 %v145_v56, %v136_v55  ;;  %v5523_v49 = vld [vmem:[%s7565_s1 + $0x860] ss:$16 sps:$4 sm:$0xff]   ;;  %v5532_v56 = vld [vmem:[%s7565_s1 + $0x888] ss:$16 sps:$4 sm:$0xff]  }
  0xcd   :  { %2268 = vmatprep.mubr.bf16.mxu0 %v191_v61  ;;  %2833 = vmatprep.mubr.bf16.mxu1 %v191_v61  ;;  %v164_v61 = vld [vmem:[%s7566_s0 + $0x460] sm:$0xff] }
  0xcf   :  { %2336 = vmatpush1.bf16.msra.mxu0 %v5427_v60  ;;  %2901 = vmatpush1.bf16.msra.mxu1 %v5430_v62  ;;  %v155_v60 = vld [vmem:[%s7566_s0 + $0x418] sm:$0xff]  ;;  %v5481_v62 = vld [vmem:[%s7565_s1 + $0x780] ss:$16 sps:$4 sm:$0xff]  }
  0xd0   :  { %2337 = vmatprep.subr.bf16.mxu0 %v5435_v1  ;;  %2902 = vmatprep.subr.bf16.mxu1 %v5438_v2  ;;  %v5492_v1 = vld [vmem:[%s7565_s1 + $0x7ac] ss:$16 sps:$4 sm:$0xff]   ;;  %v236_v2 = vpack.c.bf16 %v164_v61, %v155_v60 }
  0xd1   :  { %v5540_v60 = vld [vmem:[%s7565_s1 + $0x8ac] ss:$16 sps:$4 sm:$0xff]  }
  0xd2   :  { %2269 = vmatmul.mubr.bf16.gmra.mrb[8].mxu0 %v190_v4  ;;  %2834 = vmatmul.mubr.bf16.gmra.mrb[8].mxu1 %v190_v4  ;;  %v5490_v4 = vld [vmem:[%s7565_s1 + $0x7a8] ss:$16 sps:$4 sm:$0xff]  }
  0xd3   :  { %2338 = vmatpush1.bf16.msra.mxu0 %v5433_v3  ;;  %2903 = vmatpush1.bf16.msra.mxu1 %v5436_v5  ;;  %v5487_v3 = vld [vmem:[%s7565_s1 + $0x7a0] ss:$16 sps:$4 sm:$0xff]   ;;  %v103_v61 = vld [vmem:[%s7566_s0 + $0x278] sm:$0xff] }
  0xd4   :  { %2339 = vmatprep.subr.bf16.mxu0 %v5441_v8  ;;  %2904 = vmatprep.subr.bf16.mxu1 %v5444_v9  ;;  %v154_v5 = vld [vmem:[%s7566_s0 + $0x410] sm:$0xff]  ;;  %v5498_v8 = vld [vmem:[%s7565_s1 + $0x7cc] ss:$16 sps:$4 sm:$0xff]  }
  0xd5   :  { %2278 = vmatprep.mubr.bf16.mxu0 %v200_v11  ;;  %2843 = vmatprep.mubr.bf16.mxu1 %v200_v11  ;;  %v235_v9 = vpack.c.bf16 %v163_v6, %v154_v5  ;;  %v40_v11 = vld [vmem:[%s7566_s0 + $0x80] sm:$0xff]  ;;  %v5544_v5 = vld [vmem:[%s7565_s1 + $0x8c8] ss:$16 sps:$4 sm:$0xff]  }
  0xd7   :  { %2340 = vmatpush1.bf16.msra.mxu0 %v5439_v10  ;;  %2905 = vmatpush1.bf16.msra.mxu1 %v5442_v12  ;;  %v31_v10 = vld [vmem:[%s7566_s0 + $0x38] sm:$0xff]  ;;  %v5493_v12 = vld [vmem:[%s7565_s1 + $0x7c0] ss:$16 sps:$4 sm:$0xff]  }
  0xd8   :  { %2341 = vmatprep.subr.bf16.mxu0 %v5447_v15  ;;  %2906 = vmatprep.subr.bf16.mxu1 %v5450_v16  ;;  %v5504_v15 = vld [vmem:[%s7565_s1 + $0x7ec] ss:$16 sps:$4 sm:$0xff]   ;;  %v5499_v16 = vld [vmem:[%s7565_s1 + $0x7e0] ss:$16 sps:$4 sm:$0xff]  }
  0xda   :  { %2279 = vmatmul.mubr.bf16.gmra.mrb[12].mxu0 %v199_v18  ;;  %2844 = vmatmul.mubr.bf16.gmra.mrb[12].mxu1 %v199_v18  ;;  %v175_v18 = vpack.c.bf16 %v40_v11, %v31_v10  ;;  %v111_v10 = vld [vmem:[%s7566_s0 + $0x2b8] sm:$0xff]  ;;  %v121_v11 = vld [vmem:[%s7566_s0 + $0x308] sm:$0xff] }
  0xdb   :  { %2342 = vmatpush1.bf16.msra.mxu0 %v5445_v17  ;;  %2907 = vmatpush1.bf16.msra.mxu1 %v5448_v19  ;;  %v5502_v17 = vld [vmem:[%s7565_s1 + $0x7e8] ss:$16 sps:$4 sm:$0xff]   ;;  %v30_v19 = vld [vmem:[%s7566_s0 + $0x30] sm:$0xff] }
  0xdc   :  { %2343 = vmatprep.subr.bf16.mxu0 %v5453_v22  ;;  %2908 = vmatprep.subr.bf16.mxu1 %v5456_v23  ;;  %v5510_v22 = vld [vmem:[%s7565_s1 + $0x80c] ss:$16 sps:$4 sm:$0xff]  }
  0xdd   :  { %2288 = vmatprep.mubr.bf16.mxu0 %v209_v25  ;;  %2853 = vmatprep.mubr.bf16.mxu1 %v209_v25  ;;  %v49_v23 = vld [vmem:[%s7566_s0 + $0xc8] sm:$0xff]  ;;  %v174_v25 = vpack.c.bf16 %v39_v20, %v30_v19  ;;  %v120_v19 = vld [vmem:[%s7566_s0 + $0x300] sm:$0xff] }
  0xde   :  { %v129_v20 = vld [vmem:[%s7566_s0 + $0x348] sm:$0xff] }
  0xdf   :  { %2344 = vmatpush1.bf16.msra.mxu0 %v5451_v24  ;;  %2909 = vmatpush1.bf16.msra.mxu1 %v5454_v26  ;;  %v58_v24 = vld [vmem:[%s7566_s0 + $0x110] sm:$0xff] }
  0xe0   :  { %2345 = vmatprep.subr.bf16.mxu0 %v5459_v29  ;;  %2910 = vmatprep.subr.bf16.mxu1 %v5462_v30  ;;  %v5505_v26 = vld [vmem:[%s7565_s1 + $0x800] ss:$16 sps:$4 sm:$0xff]   ;;  %v184_v28 = vpack.c.bf16 %v58_v24, %v49_v23  ;;  %v5513_v29 = vld [vmem:[%s7565_s1 + $0x824] ss:$16 sps:$4 sm:$0xff]   ;;  %v219_v23 = vpack.c.bf16 %v129_v20, %v120_v19  ;;  %v167_v19 = vld [vmem:[%s7566_s0 + $0x478] sm:$0xff] }
  0xe1   :  { %v48_v30 = vld [vmem:[%s7566_s0 + $0xc0] sm:$0xff] }
  0xe2   :  { %2289 = vmatmul.mubr.bf16.gmra.mrb[16].mxu0 %v208_v32  ;;  %2854 = vmatmul.mubr.bf16.gmra.mrb[16].mxu1 %v208_v32  ;;  %v5511_v32 = vld [vmem:[%s7565_s1 + $0x820] ss:$16 sps:$4 sm:$0xff]  }
  0xe3   :  { %2346 = vmatpush1.bf16.msra.mxu0 %v5457_v31  ;;  %2911 = vmatpush1.bf16.msra.mxu1 %v5460_v33  ;;  %v57_v31 = vld [vmem:[%s7566_s0 + $0x108] sm:$0xff] }
  0xe4   :  { %2347 = vmatprep.subr.bf16.mxu0 %v5465_v36  ;;  %2912 = vmatprep.subr.bf16.mxu1 %v5468_v37  ;;  %v5514_v33 = vld [vmem:[%s7565_s1 + $0x828] ss:$16 sps:$4 sm:$0xff]   ;;  %v76_v36 = vld [vmem:[%s7566_s0 + $0x1a0] sm:$0xff] }
  0xe5   :  { %2298 = vmatprep.mubr.bf16.mxu0 %v218_v39  ;;  %2863 = vmatprep.mubr.bf16.mxu1 %v218_v39  ;;  %v5519_v37 = vld [vmem:[%s7565_s1 + $0x844] ss:$16 sps:$4 sm:$0xff]   ;;  %v183_v39 = vpack.c.bf16 %v57_v31, %v48_v30  ;;  %v193_v41 = vpack.c.bf16 %v76_v36, %v67_v35  ;;  %v41_v36 = vld [vmem:[%s7566_s0 + $0x88] sm:$0xff] }
  0xe6   :  { %v156_v31 = vld [vmem:[%s7566_s0 + $0x420] sm:$0xff] }
  0xe7   :  { %2348 = vmatpush1.bf16.msra.mxu0 %v5463_v38  ;;  %2913 = vmatpush1.bf16.msra.mxu1 %v5466_v40  ;;  %v5522_v38 = vld [vmem:[%s7565_s1 + $0x84c] ss:$16 sps:$4 sm:$0xff]   ;;  %v5517_v40 = vld [vmem:[%s7565_s1 + $0x840] ss:$16 sps:$4 sm:$0xff]  }
  0xe8   :  { %2349 = vmatprep.subr.bf16.mxu0 %v5471_v43  ;;  %2914 = vmatprep.subr.bf16.mxu1 %v5474_v44  ;;  %v5525_v43 = vld [vmem:[%s7565_s1 + $0x864] ss:$16 sps:$4 sm:$0xff]  }
  0xe9   :  { %v66_v44 = vld [vmem:[%s7566_s0 + $0x150] sm:$0xff]  ;;  %v32_v35 = vld [vmem:[%s7566_s0 + $0x40] sm:$0xff] }
  0xea   :  { %2299 = vmatmul.mubr.bf16.gmra.mrb[20].mxu0 %v217_v46  ;;  %2864 = vmatmul.mubr.bf16.gmra.mrb[20].mxu1 %v217_v46  ;;  %v5528_v46 = vld [vmem:[%s7565_s1 + $0x86c] ss:$16 sps:$4 sm:$0xff]  }
  0xeb   :  { %2350 = vmatpush1.bf16.msra.mxu0 %v5469_v45  ;;  %2915 = vmatpush1.bf16.msra.mxu1 %v5472_v47  ;;  %v75_v45 = vld [vmem:[%s7566_s0 + $0x198] sm:$0xff]  ;;  %v85_v47 = vld [vmem:[%s7566_s0 + $0x1e8] sm:$0xff] }
  0xec   :  { %2351 = vmatprep.subr.bf16.mxu0 %v5477_v50  ;;  %2916 = vmatprep.subr.bf16.mxu1 %v5480_v51  ;;  %v5526_v50 = vld [vmem:[%s7565_s1 + $0x868] ss:$16 sps:$4 sm:$0xff]   ;;  %v5531_v51 = vld [vmem:[%s7565_s1 + $0x884] ss:$16 sps:$4 sm:$0xff]   ;;  %v202_v55 = vpack.c.bf16 %v94_v48, %v85_v47 }
  0xed   :  { %2308 = vmatprep.mubr.bf16.mxu0 %v227_v52  ;;  %2873 = vmatprep.mubr.bf16.mxu1 %v227_v52  ;;  %v5534_v52 = vld [vmem:[%s7565_s1 + $0x88c] ss:$16 sps:$4 sm:$0xff]   ;;  %v5563_v47 = vld [vmem:[%s7567_s3 + $0xd0] sm:$0xff]  }
  0xef   :  { %2352 = vmatpush1.bf16.msra.mxu0 %v5475_v53  ;;  %2917 = vmatpush1.bf16.msra.mxu1 %v5478_v54  ;;  %v192_v53 = vpack.c.bf16 %v75_v45, %v66_v44  ;;  %v5529_v54 = vld [vmem:[%s7565_s1 + $0x880] ss:$16 sps:$4 sm:$0xff]   ;;  %v5558_v44 = vld [vmem:[%s7567_s3 + $0x8] sm:$0xff]  }
  0xf0   :  { %2353 = vmatprep.subr.bf16.mxu0 %v5483_v57  ;;  %2918 = vmatprep.subr.bf16.mxu1 %v5486_v58  ;;  %v5537_v57 = vld [vmem:[%s7565_s1 + $0x8a4] ss:$16 sps:$4 sm:$0xff]   ;;  %v5560_v45 = vld [vmem:[%s7567_s3 + $0x88] sm:$0xff]  }
  0xf1   :  { %v84_v58 = vld [vmem:[%s7566_s0 + $0x1e0] sm:$0xff] }
  0xf2   :  { %2309 = vmatmul.mubr.bf16.gmra.mrb[24].mxu0 %v226_v59  ;;  %2874 = vmatmul.mubr.bf16.gmra.mrb[24].mxu1 %v226_v59  ;;  %v93_v59 = vld [vmem:[%s7566_s0 + $0x228] sm:$0xff] }
  0xf3   :  { %2354 = vmatpush1.bf16.msra.mxu0 %v5481_v62  ;;  %2919 = vmatpush1.bf16.msra.mxu1 %v5484_v63  ;;  %v112_v62 = vld [vmem:[%s7566_s0 + $0x2c0] sm:$0xff] }
  0xf4   :  { %2355 = vmatprep.subr.bf16.mxu0 %v5489_v0  ;;  %2920 = vmatprep.subr.bf16.mxu1 %v5492_v1  ;;  %v5535_v63 = vld [vmem:[%s7565_s1 + $0x8a0] ss:$16 sps:$4 sm:$0xff]   ;;  %v5538_v0 = vld [vmem:[%s7565_s1 + $0x8a8] ss:$16 sps:$4 sm:$0xff]   ;;  %v5543_v1 = vld [vmem:[%s7565_s1 + $0x8c4] ss:$16 sps:$4 sm:$0xff]   ;;  %v211_v6 = vpack.c.bf16 %v112_v62, %v103_v61 }
  0xf5   :  { %2318 = vmatprep.mubr.bf16.mxu0 %v236_v2  ;;  %2883 = vmatprep.mubr.bf16.mxu1 %v236_v2  ;;  %v5546_v2 = vld [vmem:[%s7565_s1 + $0x8cc] ss:$16 sps:$4 sm:$0xff]   ;;  %v5572_v61 = vld [vmem:[%s7567_s3 + $0xa0] sm:$0xff]  }
  0xf6   :  { %v5573_v62 = vld [vmem:[%s7567_s3 + $0x68] sm:$0xff]  }
  0xf7   :  { %2356 = vmatpush1.bf16.msra.mxu0 %v5487_v3  ;;  %2921 = vmatpush1.bf16.msra.mxu1 %v5490_v4  ;;  %v201_v3 = vpack.c.bf16 %v93_v59, %v84_v58  ;;  %v5541_v4 = vld [vmem:[%s7565_s1 + $0x8c0] ss:$16 sps:$4 sm:$0xff]  }
  0xf8   :  { %2357 = vmatprep.subr.bf16.mxu0 %v5495_v7  ;;  %2922 = vmatprep.subr.bf16.mxu1 %v5498_v8  ;;  %v5549_v7 = vld [vmem:[%s7565_s1 + $0x8e4] ss:$16 sps:$4 sm:$0xff]   ;;  %v5552_v8 = vld [vmem:[%s7565_s1 + $0x8ec] ss:$16 sps:$4 sm:$0xff]  }
  0xf9   :  { %v5571_v58 = vld [vmem:[%s7567_s3 + $0xe0] sm:$0xff]  }
  0xfa   :  { %2319 = vmatmul.mubr.bf16.gmra.mrb[28].mxu0 %v235_v9  ;;  %2884 = vmatmul.mubr.bf16.gmra.mrb[28].mxu1 %v235_v9  ;;  %v102_v9 = vld [vmem:[%s7566_s0 + $0x270] sm:$0xff] }
  0xfb   :  { %2358 = vmatpush1.bf16.msra.mxu0 %v5493_v12  ;;  %2923 = vmatpush1.bf16.msra.mxu1 %v5496_v13  ;;  %v130_v12 = vld [vmem:[%s7566_s0 + $0x350] sm:$0xff] }
  0xfc   :  { %2359 = vmatprep.subr.bf16.mxu0 %v5501_v14  ;;  %2924 = vmatprep.subr.bf16.mxu1 %v5504_v15  ;;  %v5547_v13 = vld [vmem:[%s7565_s1 + $0x8e0] ss:$16 sps:$4 sm:$0xff]   ;;  %v5550_v14 = vld [vmem:[%s7565_s1 + $0x8e8] ss:$16 sps:$4 sm:$0xff]  }
  0xfd   :  { %2361 = vmatprep.mubr.bf16.mxu0 %v175_v18  ;;  %2926 = vmatprep.mubr.bf16.mxu1 %v175_v18  ;;  %v5553_v15 = vld [vmem:[%s7567_s3 + $0x40] sm:$0xff]   ;;  %v220_v18 = vpack.c.bf16 %v130_v12, %v121_v11  ;;  %v122_v12 = vld [vmem:[%s7566_s0 + $0x310] sm:$0xff] }
  0xff   :  { %2360 = vmatpush1.bf16.msra.mxu0 %v5499_v16  ;;  %2925 = vmatpush1.bf16.msra.mxu1 %v5502_v17  ;;  %v5555_v16 = vld [vmem:[%s7567_s3 + $0xc0] sm:$0xff]   ;;  %v210_v17 = vpack.c.bf16 %v111_v10, %v102_v9  ;;  %v113_v10 = vld [vmem:[%s7566_s0 + $0x2c8] sm:$0xff] }
 0x100   :  { %2442 = vmatprep.subr.bf16.mxu0 %v5507_v21  ;;  %3007 = vmatprep.subr.bf16.mxu1 %v5510_v22  ;;  %v139_v21 = vld [vmem:[%s7566_s0 + $0x398] sm:$0xff]  ;;  %v148_v22 = vld [vmem:[%s7566_s0 + $0x3e0] sm:$0xff] }
 0x101   :  { %v229_v24 = vpack.c.bf16 %v148_v22, %v139_v21  ;;  %v104_v9 = vld [vmem:[%s7566_s0 + $0x280] sm:$0xff]  ;;  %v5581_v21 = vld [vmem:[%s7567_s3 + $0x78] sm:$0xff]  }
 0x102   :  { %2362 = vmatmul.mubr.bf16.vlgmr.msra.gmra.mrb[0].mxu0 %v174_v25  ;;  %2927 = vmatmul.mubr.bf16.vlgmr.msra.gmra.mrb[0].mxu1 %v174_v25  ;;  %v138_v25 = vld [vmem:[%s7566_s0 + $0x390] sm:$0xff]  ;;  %v212_v11 = vpack.c.bf16 %v113_v10, %v104_v9  ;;  %v5583_v22 = vld [vmem:[%s7567_s3 + $0xf8] sm:$0xff]  }
 0x103   :  { %2443 = vmatpush1.bf16.msra.mxu0 %v5505_v26  ;;  %3008 = vmatpush1.bf16.msra.mxu1 %v5508_v27  ;;  %v147_v26 = vld [vmem:[%s7566_s0 + $0x3d8] sm:$0xff]  ;;  %v157_v27 = vld [vmem:[%s7566_s0 + $0x428] sm:$0xff] }
 0x104   :  { %2371 = vmatprep.mubr.bf16.mxu0 %v184_v28  ;;  %2936 = vmatprep.mubr.bf16.mxu1 %v184_v28  ;;  %v166_v28 = vld [vmem:[%s7566_s0 + $0x470] sm:$0xff] }
 0x105   :  { %2444 = vmatprep.subr.bf16.mxu0 %v5513_v29  ;;  %3009 = vmatprep.subr.bf16.mxu1 %v5516_v34  ;;  %v228_v29 = vpack.c.bf16 %v147_v26, %v138_v25  ;;  %v238_v30 = vpack.c.bf16 %v166_v28, %v157_v27  ;;  %v5665_v34 = vmov 0   ;;  %v7112_v25 = vld [vmem:[%s7568_s4] sm:$0xff]   ;;  %v530_v26 = vlaneseq }
 0x107   :  { %2445 = vmatpush1.bf16.msra.mxu0 %v5511_v32  ;;  %3010 = vmatpush1.bf16.msra.mxu1 %v5514_v33  ;;  %v165_v32 = vld [vmem:[%s7566_s0 + $0x468] sm:$0xff]  ;;  %v531_v27 = vshrl.u32 %v530_v26, 7 }
 0x108   :  { %2446 = vmatprep.subr.bf16.mxu0 %v5519_v37  ;;  %3011 = vmatprep.subr.bf16.mxu1 %v5522_v38  ;;  %v237_v33 = vpack.c.bf16 %v165_v32, %v156_v31  ;;  %v176_v37 = vpack.c.bf16 %v41_v36, %v32_v35  ;;  %v5554_v38 = vld [vmem:[%s7567_s3] sm:$0xff]  }
 0x109   :  { %v532_v28 = vsub.s32 0, %v531_v27  ;;  %v536_v31 = vsub.s32 1, %v531_v27  ;;  %v544_v32 = vsub.s32 3, %v531_v27 }
 0x10a   :  { %2372 = vmatmul.mubr.bf16.gmra.mrb[4].mxu0 %v183_v39  ;;  %2937 = vmatmul.mubr.bf16.gmra.mrb[4].mxu1 %v183_v39  ;;  %v5556_v39 = vld [vmem:[%s7567_s3 + $0x80] sm:$0xff]  }
 0x10b   :  { %2381 = vmatprep.mubr.bf16.mxu0 %v193_v41  ;;  %2946 = vmatprep.mubr.bf16.mxu1 %v193_v41  ;;  %v5559_v41 = vld [vmem:[%s7567_s3 + $0xc8] sm:$0xff]  }
 0x10c   :  { %2447 = vmatpush1.bf16.msra.mxu0 %v5517_v40  ;;  %3012 = vmatpush1.bf16.msra.mxu1 %v5520_v42  ;;  %v5557_v40 = vld [vmem:[%s7567_s3 + $0x48] sm:$0xff]   ;;  %v50_v42 = vld [vmem:[%s7566_s0 + $0xd0] sm:$0xff] }
 0x10d   :  { %2448 = vmatprep.subr.bf16.mxu0 %v5525_v43  ;;  %3013 = vmatprep.subr.bf16.mxu1 %v5528_v46  ;;  %v59_v43 = vld [vmem:[%s7566_s0 + $0x118] sm:$0xff]  ;;  %v5561_v46 = vld [vmem:[%s7567_s3 + $0x50] sm:$0xff]  }
 0x10e   :  { %v185_v48 = vpack.c.bf16 %v59_v43, %v50_v42 }
 0x110   :  { %2449 = vmatpush1.bf16.msra.mxu0 %v5523_v49  ;;  %3014 = vmatpush1.bf16.msra.mxu1 %v5526_v50  ;;  %v5562_v49 = vld [vmem:[%s7567_s3 + $0x10] sm:$0xff]  }
 0x111   :  { %2450 = vmatprep.subr.bf16.mxu0 %v5531_v51  ;;  %3015 = vmatprep.subr.bf16.mxu1 %v5534_v52  ;;  %v5564_v50 = vld [vmem:[%s7567_s3 + $0x90] sm:$0xff]   ;;  %v5565_v51 = vld [vmem:[%s7567_s3 + $0x58] sm:$0xff]  }
 0x112   :  { %2382 = vmatmul.mubr.bf16.gmra.mrb[8].mxu0 %v192_v53  ;;  %2947 = vmatmul.mubr.bf16.gmra.mrb[8].mxu1 %v192_v53  ;;  %v5567_v52 = vld [vmem:[%s7567_s3 + $0xd8] sm:$0xff]   ;;  %v68_v53 = vld [vmem:[%s7566_s0 + $0x160] sm:$0xff] }
 0x113   :  { %2391 = vmatprep.mubr.bf16.mxu0 %v202_v55  ;;  %2956 = vmatprep.mubr.bf16.mxu1 %v202_v55  ;;  %v5566_v55 = vld [vmem:[%s7567_s3 + $0x18] sm:$0xff]  }
 0x114   :  { %2451 = vmatpush1.bf16.msra.mxu0 %v5529_v54  ;;  %3016 = vmatpush1.bf16.msra.mxu1 %v5532_v56  ;;  %v77_v54 = vld [vmem:[%s7566_s0 + $0x1a8] sm:$0xff]  ;;  %v5568_v56 = vld [vmem:[%s7567_s3 + $0x98] sm:$0xff]  }
 0x115   :  { %2452 = vmatprep.subr.bf16.mxu0 %v5537_v57  ;;  %3017 = vmatprep.subr.bf16.mxu1 %v5540_v60  ;;  %v5569_v57 = vld [vmem:[%s7567_s3 + $0x60] sm:$0xff]   ;;  %v194_v59 = vpack.c.bf16 %v77_v54, %v68_v53 }
 0x116   :  { %v5570_v60 = vld [vmem:[%s7567_s3 + $0x20] sm:$0xff]  }
 0x118   :  { %2453 = vmatpush1.bf16.msra.mxu0 %v5535_v63  ;;  %3018 = vmatpush1.bf16.msra.mxu1 %v5538_v0  ;;  %v5575_v63 = vld [vmem:[%s7567_s3 + $0xe8] sm:$0xff]   ;;  %v86_v0 = vld [vmem:[%s7566_s0 + $0x1f0] sm:$0xff] }
 0x119   :  { %2454 = vmatprep.subr.bf16.mxu0 %v5543_v1  ;;  %3019 = vmatprep.subr.bf16.mxu1 %v5546_v2  ;;  %v95_v1 = vld [vmem:[%s7566_s0 + $0x238] sm:$0xff]  ;;  %v5574_v2 = vld [vmem:[%s7567_s3 + $0x28] sm:$0xff]  }
 0x11a   :  { %2392 = vmatmul.mubr.bf16.gmra.mrb[12].mxu0 %v201_v3  ;;  %2957 = vmatmul.mubr.bf16.gmra.mrb[12].mxu1 %v201_v3  ;;  %v5576_v3 = vld [vmem:[%s7567_s3 + $0xa8] sm:$0xff]  }
 0x11b   :  { %2401 = vmatprep.mubr.bf16.mxu0 %v211_v6  ;;  %2966 = vmatprep.mubr.bf16.mxu1 %v211_v6  ;;  %v203_v6 = vpack.c.bf16 %v95_v1, %v86_v0 }
 0x11c   :  { %2455 = vmatpush1.bf16.msra.mxu0 %v5541_v4  ;;  %3020 = vmatpush1.bf16.msra.mxu1 %v5544_v5  ;;  %v5577_v4 = vld [vmem:[%s7567_s3 + $0x70] sm:$0xff]  }
 0x11d   :  { %2456 = vmatprep.subr.bf16.mxu0 %v5549_v7  ;;  %3021 = vmatprep.subr.bf16.mxu1 %v5552_v8  ;;  %v5579_v5 = vld [vmem:[%s7567_s3 + $0xf0] sm:$0xff]  }
 0x11e   :  { %v5578_v7 = vld [vmem:[%s7567_s3 + $0x30] sm:$0xff]  }
 0x11f   :  { %v5580_v8 = vld [vmem:[%s7567_s3 + $0xb0] sm:$0xff]  }
 0x120   :  { %2457 = vmatpush1.bf16.msra.mxu0 %v5547_v13  ;;  %3022 = vmatpush1.bf16.msra.mxu1 %v5550_v14  ;;  %v131_v13 = vld [vmem:[%s7566_s0 + $0x358] sm:$0xff] }
 0x121   :  { %4576 = vmatprep.subr.bf16.mxu0 %v5553_v15  ;;  %4640 = vmatprep.subr.bf16.mxu1 %v5555_v16  ;;  %v221_v14 = vpack.c.bf16 %v131_v13, %v122_v12  ;;  %v140_v15 = vld [vmem:[%s7566_s0 + $0x3a0] sm:$0xff]  ;;  %v149_v16 = vld [vmem:[%s7566_s0 + $0x3e8] sm:$0xff] }
 0x122   :  { %2402 = vmatmul.mubr.bf16.gmra.mrb[16].mxu0 %v210_v17  ;;  %2967 = vmatmul.mubr.bf16.gmra.mrb[16].mxu1 %v210_v17  ;;  %v230_v17 = vpack.c.bf16 %v149_v16, %v140_v15 }
 0x123   :  { %2411 = vmatprep.mubr.bf16.mxu0 %v220_v18  ;;  %2976 = vmatprep.mubr.bf16.mxu1 %v220_v18  ;;  %v158_v18 = vld [vmem:[%s7566_s0 + $0x430] sm:$0xff] }
 0x124   :  { %v239_v20 = vpack.c.bf16 %v167_v19, %v158_v18 }
 0x12a   :  { %2412 = vmatmul.mubr.bf16.gmra.mrb[20].mxu0 %v219_v23  ;;  %2977 = vmatmul.mubr.bf16.gmra.mrb[20].mxu1 %v219_v23  ;;  %v5582_v23 = vld [vmem:[%s7567_s3 + $0x38] sm:$0xff]  }
 0x12b   :  { %2421 = vmatprep.mubr.bf16.mxu0 %v229_v24  ;;  %2986 = vmatprep.mubr.bf16.mxu1 %v229_v24  ;;  %v5584_v24 = vld [vmem:[%s7567_s3 + $0xb8] sm:$0xff]  }
 0x132   :  { %2422 = vmatmul.mubr.bf16.gmra.mrb[24].mxu0 %v228_v29  ;;  %2987 = vmatmul.mubr.bf16.gmra.mrb[24].mxu1 %v228_v29  ;;  %v540_v29 = vsub.s32 2, %v531_v27 }
 0x133   :  { %2431 = vmatprep.mubr.bf16.mxu0 %v238_v30  ;;  %2996 = vmatprep.mubr.bf16.mxu1 %v238_v30  ;;  %v528_v30 = vld [vmem:[%s7569_s2] ss:$8 sm:$0xf] }
 0x134   :  { %v7123_v35 = vrot.slane %v528_v30, %v536_v31  ;;  %v7125_v36 = vrot.slane %v528_v30, %v544_v32 }
 0x13a   :  { %2432 = vmatmul.mubr.bf16.gmra.mrb[28].mxu0 %v237_v33  ;;  %2997 = vmatmul.mubr.bf16.gmra.mrb[28].mxu1 %v237_v33  ;;  %v7119_v33 = vrot.slane %v528_v30, %v532_v28 }
 0x13b   :  { %2474 = vmatprep.mubr.bf16.mxu0 %v5665_v34  ;;  %3039 = vmatprep.mubr.bf16.mxu1 %v5665_v34 }
 0x142   :  { %2475 = vmatmul.mubr.bf16.vlgmr.msra.gmra.mrb[0].mxu0 %v176_v37  ;;  %3040 = vmatmul.mubr.bf16.vlgmr.msra.gmra.mrb[0].mxu1 %v176_v37 }
 0x143   :  { %2484 = vmatprep.mubr.bf16.mxu0 %v5665_v34  ;;  %3049 = vmatprep.mubr.bf16.mxu1 %v5665_v34 }
 0x144   :  { %4577 = vmatpush3.bf16.msra.mxu0 %v5554_v38  ;;  %4641 = vmatpush3.bf16.msra.mxu1 %v5556_v39 }
 0x145   :  { %4578 = vmatprep.subr.bf16.mxu0 %v5557_v40  ;;  %4642 = vmatprep.subr.bf16.mxu1 %v5559_v41 }
 0x148   :  { %4579 = vmatpush3.bf16.msra.mxu0 %v5558_v44  ;;  %4643 = vmatpush3.bf16.msra.mxu1 %v5560_v45 }
 0x149   :  { %4580 = vmatprep.subr.bf16.mxu0 %v5561_v46  ;;  %4644 = vmatprep.subr.bf16.mxu1 %v5563_v47 }
 0x14a   :  { %2485 = vmatmul.mubr.bf16.gmra.mrb[4].mxu0 %v185_v48  ;;  %3050 = vmatmul.mubr.bf16.gmra.mrb[4].mxu1 %v185_v48 }
 0x14b   :  { %2494 = vmatprep.mubr.bf16.mxu0 %v5665_v34  ;;  %3059 = vmatprep.mubr.bf16.mxu1 %v5665_v34 }
 0x14c   :  { %4581 = vmatpush3.bf16.msra.mxu0 %v5562_v49  ;;  %4645 = vmatpush3.bf16.msra.mxu1 %v5564_v50 }
 0x14d   :  { %4582 = vmatprep.subr.bf16.mxu0 %v5565_v51  ;;  %4646 = vmatprep.subr.bf16.mxu1 %v5567_v52 }
 0x150   :  { %4583 = vmatpush3.bf16.msra.mxu0 %v5566_v55  ;;  %4647 = vmatpush3.bf16.msra.mxu1 %v5568_v56 }
 0x151   :  { %4584 = vmatprep.subr.bf16.mxu0 %v5569_v57  ;;  %4648 = vmatprep.subr.bf16.mxu1 %v5571_v58 }
 0x152   :  { %2495 = vmatmul.mubr.bf16.gmra.mrb[8].mxu0 %v194_v59  ;;  %3060 = vmatmul.mubr.bf16.gmra.mrb[8].mxu1 %v194_v59 }
 0x153   :  { %2504 = vmatprep.mubr.bf16.mxu0 %v5665_v34  ;;  %3069 = vmatprep.mubr.bf16.mxu1 %v5665_v34 }
 0x154   :  { %4585 = vmatpush3.bf16.msra.mxu0 %v5570_v60  ;;  %4649 = vmatpush3.bf16.msra.mxu1 %v5572_v61 }
 0x155   :  { %4586 = vmatprep.subr.bf16.mxu0 %v5573_v62  ;;  %4650 = vmatprep.subr.bf16.mxu1 %v5575_v63 }
 0x158   :  { %4587 = vmatpush3.bf16.msra.mxu0 %v5574_v2  ;;  %4651 = vmatpush3.bf16.msra.mxu1 %v5576_v3 }
 0x159   :  { %4588 = vmatprep.subr.bf16.mxu0 %v5577_v4  ;;  %4652 = vmatprep.subr.bf16.mxu1 %v5579_v5 }
 0x15a   :  { %2505 = vmatmul.mubr.bf16.gmra.mrb[12].mxu0 %v203_v6  ;;  %3070 = vmatmul.mubr.bf16.gmra.mrb[12].mxu1 %v203_v6 }
 0x15b   :  { %2514 = vmatprep.mubr.bf16.mxu0 %v5665_v34  ;;  %3079 = vmatprep.mubr.bf16.mxu1 %v5665_v34 }
 0x15c   :  { %4589 = vmatpush3.bf16.msra.mxu0 %v5578_v7  ;;  %4653 = vmatpush3.bf16.msra.mxu1 %v5580_v8  ;;  %v5586_v7 = vld [vmem:[%s7568_s4 + $0x8] sm:$0xff]  }
 0x15d   :  { %4590 = vmatprep.subr.bf16.mxu0 %v5581_v21  ;;  %4654 = vmatprep.subr.bf16.mxu1 %v5583_v22  ;;  %v5587_v22 = vld [vmem:[%s7568_s4 + $0x10] sm:$0xff]  }
 0x160   :  { %4591 = vmatpush3.bf16.msra.mxu0 %v5582_v23  ;;  %4655 = vmatpush3.bf16.msra.mxu1 %v5584_v24 }
 0x161   :  { %4736 = vmatprep.subr.bf16.mxu0 %v7112_v25 }
 0x162   :  { %2515 = vmatmul.mubr.bf16.gmra.mrb[16].mxu0 %v212_v11  ;;  %3080 = vmatmul.mubr.bf16.gmra.mrb[16].mxu1 %v212_v11 }
 0x163   :  { %2524 = vmatprep.mubr.bf16.mxu0 %v5665_v34  ;;  %3089 = vmatprep.mubr.bf16.mxu1 %v5665_v34 }
 0x16a   :  { %2525 = vmatmul.mubr.bf16.gmra.mrb[20].mxu0 %v221_v14  ;;  %3090 = vmatmul.mubr.bf16.gmra.mrb[20].mxu1 %v221_v14 }
 0x16b   :  { %2534 = vmatprep.mubr.bf16.mxu0 %v5665_v34  ;;  %3099 = vmatprep.mubr.bf16.mxu1 %v5665_v34 }
 0x172   :  { %2535 = vmatmul.mubr.bf16.gmra.mrb[24].mxu0 %v230_v17  ;;  %3100 = vmatmul.mubr.bf16.gmra.mrb[24].mxu1 %v230_v17 }
 0x173   :  { %2544 = vmatprep.mubr.bf16.mxu0 %v5665_v34  ;;  %3109 = vmatprep.mubr.bf16.mxu1 %v5665_v34  ;;  %v7121_v34 = vrot.slane %v528_v30, %v540_v29 }
 0x17a   :  { %2545 = vmatmul.mubr.bf16.gmra.mrb[28].mxu0 %v239_v20  ;;  %3110 = vmatmul.mubr.bf16.gmra.mrb[28].mxu1 %v239_v20 }
 0x215   :  { %v2476_v37 = vpop.f32.mrb[0].mxu0  ;;  %v3041_v38 = vpop.f32.mrb[0].mxu1 }
 0x216   :  { %v4800_v39 = vadd.f32 %v2476_v37, %v7119_v33  ;;  %v4832_v40 = vadd.f32 %v3041_v38, %v7121_v34  ;;  %v2478_v41 = vpop.f32.mrb[1].mxu0  ;;  %v3043_v42 = vpop.f32.mrb[1].mxu1 }
 0x217   :  { %v4801_v43 = vadd.f32 %v2478_v41, %v7123_v35  ;;  %v4833_v44 = vadd.f32 %v3043_v42, %v7125_v36  ;;  %v2480_v45 = vpop.f32.mrb[2].mxu0  ;;  %v3045_v46 = vpop.f32.mrb[2].mxu1 }
 0x218   :  { %v4802_v47 = vadd.f32 %v2480_v45, %v7119_v33  ;;  %v4834_v48 = vadd.f32 %v3045_v46, %v7121_v34  ;;  %v2482_v49 = vpop.f32.mrb[3].mxu0  ;;  %v3047_v50 = vpop.f32.mrb[3].mxu1  ;;  %v3120_v53 = vmax.f32 %v4800_v39, 0.0  ;;  %v3122_v54 = vmax.f32 %v4832_v40, 0.0 }
 0x219   :  { %v4803_v51 = vadd.f32 %v2482_v49, %v7123_v35  ;;  %v4835_v52 = vadd.f32 %v3047_v50, %v7125_v36  ;;  %v3121_v57 = vmax.f32 %v4801_v43, 0.0  ;;  %v3123_v58 = vmax.f32 %v4833_v44, 0.0 }
 0x21a   :  { %v3124_v55 = vmax.f32 %v4802_v47, 0.0  ;;  %v3126_v56 = vmax.f32 %v4834_v48, 0.0 }
 0x21b   :  { %v3125_v59 = vmax.f32 %v4803_v51, 0.0  ;;  %v3127_v60 = vmax.f32 %v4835_v52, 0.0 }
 0x21c   :  { %v3184_v61 = vpack.c.bf16 %v3124_v55, %v3120_v53  ;;  %v3186_v62 = vpack.c.bf16 %v3126_v56, %v3122_v54 }
 0x21d   :  { %v3185_v63 = vpack.c.bf16 %v3125_v59, %v3121_v57  ;;  %v3187_v0 = vpack.c.bf16 %v3127_v60, %v3123_v58  ;;  %v2486_v1 = vpop.f32.mrb[4].mxu0  ;;  %v3051_v2 = vpop.f32.mrb[4].mxu1 }
 0x21e   :  { %v4804_v3 = vadd.f32 %v2486_v1, %v7119_v33  ;;  %v4836_v4 = vadd.f32 %v3051_v2, %v7121_v34  ;;  %v2488_v5 = vpop.f32.mrb[5].mxu0  ;;  %v3053_v6 = vpop.f32.mrb[5].mxu1 }
 0x21f   :  { %v4805_v8 = vadd.f32 %v2488_v5, %v7123_v35  ;;  %v4837_v9 = vadd.f32 %v3053_v6, %v7125_v36  ;;  %v2490_v10 = vpop.f32.mrb[6].mxu0  ;;  %v3055_v11 = vpop.f32.mrb[6].mxu1  ;;  %3505 = vmatprep.mubr.bf16.mxu0 %v3185_v63  ;;  %3602 = vmatprep.mubr.bf16.mxu1 %v3187_v0 }
 0x220   :  { %v4806_v12 = vadd.f32 %v2490_v10, %v7119_v33  ;;  %v4838_v13 = vadd.f32 %v3055_v11, %v7121_v34  ;;  %v2492_v14 = vpop.f32.mrb[7].mxu0  ;;  %v3057_v15 = vpop.f32.mrb[7].mxu1  ;;  %3506 = vmatmul.mubr.bf16.vlgmr.msra.gmra.mrb[32].mxu0 %v3184_v61  ;;  %3603 = vmatmul.mubr.bf16.vlgmr.msra.gmra.mrb[32].mxu1 %v3186_v62  ;;  %v3128_v18 = vmax.f32 %v4804_v3, 0.0  ;;  %v3130_v19 = vmax.f32 %v4836_v4, 0.0 }
 0x221   :  { %v4807_v16 = vadd.f32 %v2492_v14, %v7123_v35  ;;  %v4839_v17 = vadd.f32 %v3057_v15, %v7125_v36  ;;  %4737 = vmatpush3.bf16.msra.mxu0 %v7112_v25  ;;  %v3129_v23 = vmax.f32 %v4805_v8, 0.0  ;;  %v3131_v24 = vmax.f32 %v4837_v9, 0.0 }
 0x222   :  { %v3132_v20 = vmax.f32 %v4806_v12, 0.0  ;;  %v3134_v21 = vmax.f32 %v4838_v13, 0.0  ;;  %4738 = vmatprep.subr.bf16.mxu0 %v5586_v7 }
 0x223   :  { %v3133_v27 = vmax.f32 %v4807_v16, 0.0  ;;  %v3135_v28 = vmax.f32 %v4839_v17, 0.0 }
 0x224   :  { %v3188_v29 = vpack.c.bf16 %v3132_v20, %v3128_v18  ;;  %v3190_v30 = vpack.c.bf16 %v3134_v21, %v3130_v19 }
 0x225   :  { %v3189_v31 = vpack.c.bf16 %v3133_v27, %v3129_v23  ;;  %v3191_v32 = vpack.c.bf16 %v3135_v28, %v3131_v24  ;;  %v2496_v37 = vpop.f32.mrb[8].mxu0  ;;  %v3061_v38 = vpop.f32.mrb[8].mxu1  ;;  %4739 = vmatpush3.bf16.msra.mxu0 %v5586_v7 }
 0x226   :  { %v4808_v25 = vadd.f32 %v2496_v37, %v7119_v33  ;;  %v4840_v39 = vadd.f32 %v3061_v38, %v7121_v34  ;;  %v2498_v40 = vpop.f32.mrb[9].mxu0  ;;  %v3063_v41 = vpop.f32.mrb[9].mxu1  ;;  %4740 = vmatprep.subr.bf16.mxu0 %v5587_v22 }
 0x227   :  { %v4809_v42 = vadd.f32 %v2498_v40, %v7123_v35  ;;  %v4841_v43 = vadd.f32 %v3063_v41, %v7125_v36  ;;  %v2500_v44 = vpop.f32.mrb[10].mxu0  ;;  %v3065_v45 = vpop.f32.mrb[10].mxu1  ;;  %3513 = vmatprep.mubr.bf16.mxu0 %v3189_v31  ;;  %3610 = vmatprep.mubr.bf16.mxu1 %v3191_v32 }
 0x228   :  { %v4810_v46 = vadd.f32 %v2500_v44, %v7119_v33  ;;  %v4842_v47 = vadd.f32 %v3065_v45, %v7121_v34  ;;  %v2502_v48 = vpop.f32.mrb[11].mxu0  ;;  %v3067_v49 = vpop.f32.mrb[11].mxu1  ;;  %3514 = vmatmul.mubr.bf16.gmra.mrb[36].mxu0 %v3188_v29  ;;  %3611 = vmatmul.mubr.bf16.gmra.mrb[36].mxu1 %v3190_v30  ;;  %v3136_v52 = vmax.f32 %v4808_v25, 0.0  ;;  %v3138_v53 = vmax.f32 %v4840_v39, 0.0 }
 0x229   :  { %v4811_v50 = vadd.f32 %v2502_v48, %v7123_v35  ;;  %v4843_v51 = vadd.f32 %v3067_v49, %v7125_v36  ;;  %4741 = vmatpush3.bf16.msra.mxu0 %v5587_v22  ;;  %v3137_v56 = vmax.f32 %v4809_v42, 0.0  ;;  %v3139_v57 = vmax.f32 %v4841_v43, 0.0 }
 0x22a   :  { %v3140_v54 = vmax.f32 %v4810_v46, 0.0  ;;  %v3142_v55 = vmax.f32 %v4842_v47, 0.0 }
 0x22b   :  { %v3141_v58 = vmax.f32 %v4811_v50, 0.0  ;;  %v3143_v59 = vmax.f32 %v4843_v51, 0.0 }
 0x22c   :  { %v3192_v60 = vpack.c.bf16 %v3140_v54, %v3136_v52  ;;  %v3194_v61 = vpack.c.bf16 %v3142_v55, %v3138_v53 }
 0x22d   :  { %v3193_v62 = vpack.c.bf16 %v3141_v58, %v3137_v56  ;;  %v3195_v63 = vpack.c.bf16 %v3143_v59, %v3139_v57  ;;  %v2506_v0 = vpop.f32.mrb[12].mxu0  ;;  %v3071_v1 = vpop.f32.mrb[12].mxu1 }
 0x22e   :  { %v4812_v2 = vadd.f32 %v2506_v0, %v7119_v33  ;;  %v4844_v3 = vadd.f32 %v3071_v1, %v7121_v34  ;;  %v2508_v4 = vpop.f32.mrb[13].mxu0  ;;  %v3073_v5 = vpop.f32.mrb[13].mxu1 }
 0x22f   :  { %v4813_v6 = vadd.f32 %v2508_v4, %v7123_v35  ;;  %v4845_v7 = vadd.f32 %v3073_v5, %v7125_v36  ;;  %v2510_v8 = vpop.f32.mrb[14].mxu0  ;;  %v3075_v9 = vpop.f32.mrb[14].mxu1  ;;  %3521 = vmatprep.mubr.bf16.mxu0 %v3193_v62  ;;  %3618 = vmatprep.mubr.bf16.mxu1 %v3195_v63 }
 0x230   :  { %v4814_v10 = vadd.f32 %v2510_v8, %v7119_v33  ;;  %v4846_v11 = vadd.f32 %v3075_v9, %v7121_v34  ;;  %v2512_v12 = vpop.f32.mrb[15].mxu0  ;;  %v3077_v13 = vpop.f32.mrb[15].mxu1  ;;  %3522 = vmatmul.mubr.bf16.gmra.mrb[40].mxu0 %v3192_v60  ;;  %3619 = vmatmul.mubr.bf16.gmra.mrb[40].mxu1 %v3194_v61  ;;  %v3144_v16 = vmax.f32 %v4812_v2, 0.0  ;;  %v3146_v17 = vmax.f32 %v4844_v3, 0.0 }
 0x231   :  { %v4815_v14 = vadd.f32 %v2512_v12, %v7123_v35  ;;  %v4847_v15 = vadd.f32 %v3077_v13, %v7125_v36  ;;  %v3145_v20 = vmax.f32 %v4813_v6, 0.0  ;;  %v3147_v21 = vmax.f32 %v4845_v7, 0.0 }
 0x232   :  { %v3148_v18 = vmax.f32 %v4814_v10, 0.0  ;;  %v3150_v19 = vmax.f32 %v4846_v11, 0.0 }
 0x233   :  { %v3149_v22 = vmax.f32 %v4815_v14, 0.0  ;;  %v3151_v23 = vmax.f32 %v4847_v15, 0.0 }
 0x234   :  { %v3196_v24 = vpack.c.bf16 %v3148_v18, %v3144_v16  ;;  %v3198_v27 = vpack.c.bf16 %v3150_v19, %v3146_v17 }
 0x235   :  { %v3197_v28 = vpack.c.bf16 %v3149_v22, %v3145_v20  ;;  %v3199_v29 = vpack.c.bf16 %v3151_v23, %v3147_v21  ;;  %v2516_v30 = vpop.f32.mrb[16].mxu0  ;;  %v3081_v31 = vpop.f32.mrb[16].mxu1 }
 0x236   :  { %v4816_v32 = vadd.f32 %v2516_v30, %v7119_v33  ;;  %v4848_v37 = vadd.f32 %v3081_v31, %v7121_v34  ;;  %v2518_v38 = vpop.f32.mrb[17].mxu0  ;;  %v3083_v25 = vpop.f32.mrb[17].mxu1 }
 0x237   :  { %v4817_v39 = vadd.f32 %v2518_v38, %v7123_v35  ;;  %v4849_v40 = vadd.f32 %v3083_v25, %v7125_v36  ;;  %v2520_v41 = vpop.f32.mrb[18].mxu0  ;;  %v3085_v42 = vpop.f32.mrb[18].mxu1  ;;  %3529 = vmatprep.mubr.bf16.mxu0 %v3197_v28  ;;  %3626 = vmatprep.mubr.bf16.mxu1 %v3199_v29 }
 0x238   :  { %v4818_v43 = vadd.f32 %v2520_v41, %v7119_v33  ;;  %v4850_v44 = vadd.f32 %v3085_v42, %v7121_v34  ;;  %v2522_v45 = vpop.f32.mrb[19].mxu0  ;;  %v3087_v46 = vpop.f32.mrb[19].mxu1  ;;  %3530 = vmatmul.mubr.bf16.gmra.mrb[44].mxu0 %v3196_v24  ;;  %3627 = vmatmul.mubr.bf16.gmra.mrb[44].mxu1 %v3198_v27  ;;  %v3152_v49 = vmax.f32 %v4816_v32, 0.0  ;;  %v3154_v50 = vmax.f32 %v4848_v37, 0.0 }
 0x239   :  { %v4819_v47 = vadd.f32 %v2522_v45, %v7123_v35  ;;  %v4851_v48 = vadd.f32 %v3087_v46, %v7125_v36  ;;  %v3153_v53 = vmax.f32 %v4817_v39, 0.0  ;;  %v3155_v54 = vmax.f32 %v4849_v40, 0.0 }
 0x23a   :  { %v3156_v51 = vmax.f32 %v4818_v43, 0.0  ;;  %v3158_v52 = vmax.f32 %v4850_v44, 0.0 }
 0x23b   :  { %v3157_v55 = vmax.f32 %v4819_v47, 0.0  ;;  %v3159_v56 = vmax.f32 %v4851_v48, 0.0 }
 0x23c   :  { %v3200_v57 = vpack.c.bf16 %v3156_v51, %v3152_v49  ;;  %v3202_v58 = vpack.c.bf16 %v3158_v52, %v3154_v50 }
 0x23d   :  { %v3201_v59 = vpack.c.bf16 %v3157_v55, %v3153_v53  ;;  %v3203_v60 = vpack.c.bf16 %v3159_v56, %v3155_v54  ;;  %v2526_v61 = vpop.f32.mrb[20].mxu0  ;;  %v3091_v62 = vpop.f32.mrb[20].mxu1 }
 0x23e   :  { %v4820_v63 = vadd.f32 %v2526_v61, %v7119_v33  ;;  %v4852_v0 = vadd.f32 %v3091_v62, %v7121_v34  ;;  %v2528_v1 = vpop.f32.mrb[21].mxu0  ;;  %v3093_v2 = vpop.f32.mrb[21].mxu1 }
 0x23f   :  { %v4821_v3 = vadd.f32 %v2528_v1, %v7123_v35  ;;  %v4853_v4 = vadd.f32 %v3093_v2, %v7125_v36  ;;  %v2530_v5 = vpop.f32.mrb[22].mxu0  ;;  %v3095_v6 = vpop.f32.mrb[22].mxu1  ;;  %3537 = vmatprep.mubr.bf16.mxu0 %v3201_v59  ;;  %3634 = vmatprep.mubr.bf16.mxu1 %v3203_v60 }
 0x240   :  { %v4822_v7 = vadd.f32 %v2530_v5, %v7119_v33  ;;  %v4854_v8 = vadd.f32 %v3095_v6, %v7121_v34  ;;  %v2532_v9 = vpop.f32.mrb[23].mxu0  ;;  %v3097_v10 = vpop.f32.mrb[23].mxu1  ;;  %3538 = vmatmul.mubr.bf16.gmra.mrb[48].mxu0 %v3200_v57  ;;  %3635 = vmatmul.mubr.bf16.gmra.mrb[48].mxu1 %v3202_v58  ;;  %v3160_v13 = vmax.f32 %v4820_v63, 0.0  ;;  %v3162_v14 = vmax.f32 %v4852_v0, 0.0 }
 0x241   :  { %v4823_v11 = vadd.f32 %v2532_v9, %v7123_v35  ;;  %v4855_v12 = vadd.f32 %v3097_v10, %v7125_v36  ;;  %v3161_v17 = vmax.f32 %v4821_v3, 0.0  ;;  %v3163_v18 = vmax.f32 %v4853_v4, 0.0 }
 0x242   :  { %v3164_v15 = vmax.f32 %v4822_v7, 0.0  ;;  %v3166_v16 = vmax.f32 %v4854_v8, 0.0 }
 0x243   :  { %v3165_v19 = vmax.f32 %v4823_v11, 0.0  ;;  %v3167_v20 = vmax.f32 %v4855_v12, 0.0 }
 0x244   :  { %v3204_v21 = vpack.c.bf16 %v3164_v15, %v3160_v13  ;;  %v3206_v22 = vpack.c.bf16 %v3166_v16, %v3162_v14 }
 0x245   :  { %v3205_v23 = vpack.c.bf16 %v3165_v19, %v3161_v17  ;;  %v3207_v24 = vpack.c.bf16 %v3167_v20, %v3163_v18  ;;  %v2536_v27 = vpop.f32.mrb[24].mxu0  ;;  %v3101_v28 = vpop.f32.mrb[24].mxu1  ;;  %v5590_v20 = vld [vmem:[%s7568_s4 + $0x28] sm:$0xff]  }
 0x246   :  { %v4824_v29 = vadd.f32 %v2536_v27, %v7119_v33  ;;  %v4856_v30 = vadd.f32 %v3101_v28, %v7121_v34  ;;  %v2538_v31 = vpop.f32.mrb[25].mxu0  ;;  %v3103_v32 = vpop.f32.mrb[25].mxu1  ;;  %v5595_v27 = vld [vmem:[%s7570_s5 + $0x10] sm:$0xff]   ;;  %v5596_v28 = vld [vmem:[%s7570_s5 + $0x18] sm:$0xff]  }
 0x247   :  { %v4825_v37 = vadd.f32 %v2538_v31, %v7123_v35  ;;  %v4857_v38 = vadd.f32 %v3103_v32, %v7125_v36  ;;  %v2540_v25 = vpop.f32.mrb[26].mxu0  ;;  %v3105_v39 = vpop.f32.mrb[26].mxu1  ;;  %3545 = vmatprep.mubr.bf16.mxu0 %v3205_v23  ;;  %3642 = vmatprep.mubr.bf16.mxu1 %v3207_v24  ;;  %v5593_v23 = vld [vmem:[%s7570_s5] sm:$0xff]   ;;  %v5594_v24 = vld [vmem:[%s7570_s5 + $0x8] sm:$0xff]  }
 0x248   :  { %v4826_v40 = vadd.f32 %v2540_v25, %v7119_v33  ;;  %v4858_v41 = vadd.f32 %v3105_v39, %v7121_v34  ;;  %v2542_v42 = vpop.f32.mrb[27].mxu0  ;;  %v3107_v43 = vpop.f32.mrb[27].mxu1  ;;  %3546 = vmatmul.mubr.bf16.gmra.mrb[52].mxu0 %v3204_v21  ;;  %3643 = vmatmul.mubr.bf16.gmra.mrb[52].mxu1 %v3206_v22  ;;  %v3168_v46 = vmax.f32 %v4824_v29, 0.0  ;;  %v3170_v47 = vmax.f32 %v4856_v30, 0.0  ;;  %v5591_v21 = vld [vmem:[%s7568_s4 + $0x30] sm:$0xff]   ;;  %v5592_v22 = vld [vmem:[%s7568_s4 + $0x38] sm:$0xff]  }
 0x249   :  { %v4827_v44 = vadd.f32 %v2542_v42, %v7123_v35  ;;  %v4859_v45 = vadd.f32 %v3107_v43, %v7125_v36  ;;  %v3169_v50 = vmax.f32 %v4825_v37, 0.0  ;;  %v3171_v51 = vmax.f32 %v4857_v38, 0.0  ;;  %4768 = vmatprep.subr.bf16.mxu1 %v5593_v23  ;;  %v5597_v29 = vld [vmem:[%s7570_s5 + $0x20] sm:$0xff]   ;;  %v5598_v30 = vld [vmem:[%s7570_s5 + $0x28] sm:$0xff]  }
 0x24a   :  { %v3172_v48 = vmax.f32 %v4826_v40, 0.0  ;;  %v3174_v49 = vmax.f32 %v4858_v41, 0.0  ;;  %4769 = vmatpush3.bf16.msra.mxu1 %v5593_v23  ;;  %v7234_v37 = vld [vmem:[%s7569_s2 + $0x1] ss:$0 sm:$0xff] }
 0x24b   :  { %v3173_v52 = vmax.f32 %v4827_v44, 0.0  ;;  %v3175_v53 = vmax.f32 %v4859_v45, 0.0  ;;  %4770 = vmatprep.subr.bf16.mxu1 %v5594_v24 }
 0x24c   :  { %v3208_v54 = vpack.c.bf16 %v3172_v48, %v3168_v46  ;;  %v3210_v55 = vpack.c.bf16 %v3174_v49, %v3170_v47 }
 0x24d   :  { %v3209_v56 = vpack.c.bf16 %v3173_v52, %v3169_v50  ;;  %v3211_v57 = vpack.c.bf16 %v3175_v53, %v3171_v51  ;;  %v2546_v58 = vpop.f32.mrb[28].mxu0  ;;  %v3111_v59 = vpop.f32.mrb[28].mxu1 }
 0x24e   :  { %v4828_v60 = vadd.f32 %v2546_v58, %v7119_v33  ;;  %v4860_v61 = vadd.f32 %v3111_v59, %v7121_v34  ;;  %v2548_v62 = vpop.f32.mrb[29].mxu0  ;;  %v3113_v63 = vpop.f32.mrb[29].mxu1  ;;  %4771 = vmatpush3.bf16.msra.mxu1 %v5594_v24 }
 0x24f   :  { %v4829_v0 = vadd.f32 %v2548_v62, %v7123_v35  ;;  %v4861_v1 = vadd.f32 %v3113_v63, %v7125_v36  ;;  %v2550_v2 = vpop.f32.mrb[30].mxu0  ;;  %v3115_v3 = vpop.f32.mrb[30].mxu1  ;;  %3553 = vmatprep.mubr.bf16.mxu0 %v3209_v56  ;;  %3650 = vmatprep.mubr.bf16.mxu1 %v3211_v57 }
 0x250   :  { %v4830_v4 = vadd.f32 %v2550_v2, %v7119_v33  ;;  %v4862_v5 = vadd.f32 %v3115_v3, %v7121_v34  ;;  %v2552_v6 = vpop.f32.mrb[31].mxu0  ;;  %v3117_v7 = vpop.f32.mrb[31].mxu1  ;;  %3554 = vmatmul.mubr.bf16.gmra.mrb[56].mxu0 %v3208_v54  ;;  %3651 = vmatmul.mubr.bf16.gmra.mrb[56].mxu1 %v3210_v55  ;;  %v3176_v10 = vmax.f32 %v4828_v60, 0.0  ;;  %v3178_v11 = vmax.f32 %v4860_v61, 0.0 }
 0x251   :  { %v4831_v8 = vadd.f32 %v2552_v6, %v7123_v35  ;;  %v4863_v9 = vadd.f32 %v3117_v7, %v7125_v36  ;;  %v3177_v14 = vmax.f32 %v4829_v0, 0.0  ;;  %v3179_v15 = vmax.f32 %v4861_v1, 0.0  ;;  %v5588_v35 = vld [vmem:[%s7568_s4 + $0x18] sm:$0xff]   ;;  %v5589_v36 = vld [vmem:[%s7568_s4 + $0x20] sm:$0xff]   ;;  %4772 = vmatprep.subr.bf16.mxu1 %v5595_v27 }
 0x252   :  { %v3180_v12 = vmax.f32 %v4830_v4, 0.0  ;;  %v3182_v13 = vmax.f32 %v4862_v5, 0.0  ;;  %4742 = vmatprep.subr.bf16.mxu0 %v5588_v35  ;;  %4773 = vmatpush3.bf16.msra.mxu1 %v5595_v27 }
 0x253   :  { %v3181_v16 = vmax.f32 %v4831_v8, 0.0  ;;  %v3183_v17 = vmax.f32 %v4863_v9, 0.0  ;;  %4743 = vmatpush3.bf16.msra.mxu0 %v5588_v35  ;;  %4774 = vmatprep.subr.bf16.mxu1 %v5596_v28 }
 0x254   :  { %v3212_v18 = vpack.c.bf16 %v3180_v12, %v3176_v10  ;;  %v3214_v33 = vpack.c.bf16 %v3182_v13, %v3178_v11  ;;  %4744 = vmatprep.subr.bf16.mxu0 %v5589_v36 }
 0x255   :  { %v3213_v19 = vpack.c.bf16 %v3181_v16, %v3177_v14  ;;  %v3215_v34 = vpack.c.bf16 %v3183_v17, %v3179_v15 }
 0x256   :  { %4775 = vmatpush3.bf16.msra.mxu1 %v5596_v28 }
 0x257   :  { %3561 = vmatprep.mubr.bf16.mxu0 %v3213_v19  ;;  %3658 = vmatprep.mubr.bf16.mxu1 %v3215_v34 }
 0x258   :  { %3562 = vmatmul.mubr.bf16.gmra.mrb[60].mxu0 %v3212_v18  ;;  %3659 = vmatmul.mubr.bf16.gmra.mrb[60].mxu1 %v3214_v33 }
 0x259   :  { %4745 = vmatpush3.bf16.msra.mxu0 %v5589_v36  ;;  %4776 = vmatprep.subr.bf16.mxu1 %v5597_v29 }
 0x25a   :  { %4746 = vmatprep.subr.bf16.mxu0 %v5590_v20  ;;  %4777 = vmatpush3.bf16.msra.mxu1 %v5597_v29 }
 0x25b   :  { %4778 = vmatprep.subr.bf16.mxu1 %v5598_v30 }
 0x25d   :  { %4747 = vmatpush3.bf16.msra.mxu0 %v5590_v20 }
 0x25e   :  { %4748 = vmatprep.subr.bf16.mxu0 %v5591_v21  ;;  %4779 = vmatpush3.bf16.msra.mxu1 %v5598_v30 }
 0x261   :  { %4749 = vmatpush3.bf16.msra.mxu0 %v5591_v21 }
 0x262   :  { %4750 = vmatprep.subr.bf16.mxu0 %v5592_v22 }
 0x265   :  { %4751 = vmatpush3.bf16.msra.mxu0 %v5592_v22 }
 0x2f3   :  { %v4592_v31 = vpop.f32.mrb[32].mxu0  ;;  %v4656_v32 = vpop.f32.mrb[32].mxu1 }
 0x2f4   :  { %v4593_v38 = vpop.f32.mrb[33].mxu0  ;;  %v4657_v25 = vpop.f32.mrb[33].mxu1 }
 0x2f5   :  { %v4594_v39 = vadd.f32 %v4593_v38, %v4592_v31  ;;  %v4658_v40 = vadd.f32 %v4657_v25, %v4656_v32  ;;  %v4595_v41 = vpop.f32.mrb[34].mxu0  ;;  %v4659_v42 = vpop.f32.mrb[34].mxu1 }
 0x2f6   :  { %v4596_v43 = vpop.f32.mrb[35].mxu0  ;;  %v4660_v44 = vpop.f32.mrb[35].mxu1 }
 0x2f7   :  { %v3508_v45 = vadd.f32 %v4594_v39, %v7234_v37  ;;  %v4597_v46 = vadd.f32 %v4596_v43, %v4595_v41  ;;  %v4661_v47 = vadd.f32 %v4660_v44, %v4659_v42 }
 0x2f9   :  { %v3605_v48 = vadd.f32 %v4658_v40, %v3508_v45  ;;  %v3511_v49 = vadd.f32 %v4597_v46, %v7234_v37 }
 0x2fb   :  { %v3608_v50 = vadd.f32 %v4661_v47, %v3511_v49  ;;  %v4598_v51 = vpop.f32.mrb[36].mxu0  ;;  %v4662_v52 = vpop.f32.mrb[36].mxu1  ;;  %v3667_v55 = vmax.f32 %v3605_v48, 0.0 }
 0x2fc   :  { %v4599_v53 = vpop.f32.mrb[37].mxu0  ;;  %v4663_v54 = vpop.f32.mrb[37].mxu1 }
 0x2fd   :  { %v3668_v56 = vmax.f32 %v3608_v50, 0.0  ;;  %v4600_v57 = vadd.f32 %v4599_v53, %v4598_v51  ;;  %v4664_v58 = vadd.f32 %v4663_v54, %v4662_v52  ;;  %v4601_v59 = vpop.f32.mrb[38].mxu0  ;;  %v4665_v60 = vpop.f32.mrb[38].mxu1 }
 0x2fe   :  { %v4602_v61 = vpop.f32.mrb[39].mxu0  ;;  %v4666_v62 = vpop.f32.mrb[39].mxu1 }
 0x2ff   :  { %v3516_v63 = vadd.f32 %v4600_v57, %v7234_v37  ;;  %v4603_v0 = vadd.f32 %v4602_v61, %v4601_v59  ;;  %v4667_v1 = vadd.f32 %v4666_v62, %v4665_v60  ;;  %v3683_v2 = vpack.c.bf16 %v3668_v56, %v3667_v55 }
 0x301   :  { %v3613_v3 = vadd.f32 %v4664_v58, %v3516_v63  ;;  %v3519_v4 = vadd.f32 %v4603_v0, %v7234_v37  ;;  %4752 = vmatprep.mubr.bf16.mxu0 %v3683_v2 }
 0x303   :  { %v3616_v5 = vadd.f32 %v4667_v1, %v3519_v4  ;;  %v4604_v6 = vpop.f32.mrb[40].mxu0  ;;  %v4668_v7 = vpop.f32.mrb[40].mxu1  ;;  %v3669_v10 = vmax.f32 %v3613_v3, 0.0 }
 0x304   :  { %v4605_v8 = vpop.f32.mrb[41].mxu0  ;;  %v4669_v9 = vpop.f32.mrb[41].mxu1 }
 0x305   :  { %v3670_v11 = vmax.f32 %v3616_v5, 0.0  ;;  %v4606_v12 = vadd.f32 %v4605_v8, %v4604_v6  ;;  %v4670_v13 = vadd.f32 %v4669_v9, %v4668_v7  ;;  %v4607_v14 = vpop.f32.mrb[42].mxu0  ;;  %v4671_v15 = vpop.f32.mrb[42].mxu1 }
 0x306   :  { %v4608_v16 = vpop.f32.mrb[43].mxu0  ;;  %v4672_v17 = vpop.f32.mrb[43].mxu1 }
 0x307   :  { %v3684_v18 = vpack.c.bf16 %v3670_v11, %v3669_v10  ;;  %v3524_v33 = vadd.f32 %v4606_v12, %v7234_v37  ;;  %v4609_v19 = vadd.f32 %v4608_v16, %v4607_v14  ;;  %v4673_v34 = vadd.f32 %v4672_v17, %v4671_v15 }
 0x309   :  { %v3621_v35 = vadd.f32 %v4670_v13, %v3524_v33  ;;  %v3527_v36 = vadd.f32 %v4609_v19, %v7234_v37  ;;  %4753 = vmatmul.mubr.bf16.vlgmr.msra.gmra.mrb[64].mxu0 %v3684_v18 }
 0x30b   :  { %v3624_v20 = vadd.f32 %v4673_v34, %v3527_v36  ;;  %v4610_v21 = vpop.f32.mrb[44].mxu0  ;;  %v4674_v22 = vpop.f32.mrb[44].mxu1  ;;  %v3671_v27 = vmax.f32 %v3621_v35, 0.0 }
 0x30c   :  { %v4611_v23 = vpop.f32.mrb[45].mxu0  ;;  %v4675_v24 = vpop.f32.mrb[45].mxu1 }
 0x30d   :  { %v3672_v28 = vmax.f32 %v3624_v20, 0.0  ;;  %v4612_v29 = vadd.f32 %v4611_v23, %v4610_v21  ;;  %v4676_v30 = vadd.f32 %v4675_v24, %v4674_v22  ;;  %v4613_v31 = vpop.f32.mrb[46].mxu0  ;;  %v4677_v32 = vpop.f32.mrb[46].mxu1 }
 0x30e   :  { %v4614_v38 = vpop.f32.mrb[47].mxu0  ;;  %v4678_v25 = vpop.f32.mrb[47].mxu1 }
 0x30f   :  { %v3532_v39 = vadd.f32 %v4612_v29, %v7234_v37  ;;  %v4615_v40 = vadd.f32 %v4614_v38, %v4613_v31  ;;  %v4679_v41 = vadd.f32 %v4678_v25, %v4677_v32  ;;  %v3685_v42 = vpack.c.bf16 %v3672_v28, %v3671_v27 }
 0x311   :  { %v3629_v43 = vadd.f32 %v4676_v30, %v3532_v39  ;;  %v3535_v44 = vadd.f32 %v4615_v40, %v7234_v37  ;;  %4756 = vmatprep.mubr.bf16.mxu0 %v3685_v42 }
 0x313   :  { %v3632_v45 = vadd.f32 %v4679_v41, %v3535_v44  ;;  %v4616_v46 = vpop.f32.mrb[48].mxu0  ;;  %v4680_v47 = vpop.f32.mrb[48].mxu1  ;;  %v3673_v50 = vmax.f32 %v3629_v43, 0.0 }
 0x314   :  { %v4617_v48 = vpop.f32.mrb[49].mxu0  ;;  %v4681_v49 = vpop.f32.mrb[49].mxu1 }
 0x315   :  { %v3674_v51 = vmax.f32 %v3632_v45, 0.0  ;;  %v4618_v52 = vadd.f32 %v4617_v48, %v4616_v46  ;;  %v4682_v53 = vadd.f32 %v4681_v49, %v4680_v47  ;;  %v4619_v54 = vpop.f32.mrb[50].mxu0  ;;  %v4683_v55 = vpop.f32.mrb[50].mxu1 }
 0x316   :  { %v4620_v56 = vpop.f32.mrb[51].mxu0  ;;  %v4684_v57 = vpop.f32.mrb[51].mxu1 }
 0x317   :  { %v3540_v58 = vadd.f32 %v4618_v52, %v7234_v37  ;;  %v4621_v59 = vadd.f32 %v4620_v56, %v4619_v54  ;;  %v4685_v60 = vadd.f32 %v4684_v57, %v4683_v55  ;;  %v3686_v61 = vpack.c.bf16 %v3674_v51, %v3673_v50 }
 0x319   :  { %v3637_v62 = vadd.f32 %v4682_v53, %v3540_v58  ;;  %v3543_v63 = vadd.f32 %v4621_v59, %v7234_v37  ;;  %4757 = vmatmul.mubr.bf16.gmra.mrb[68].mxu0 %v3686_v61 }
 0x31b   :  { %v3640_v0 = vadd.f32 %v4685_v60, %v3543_v63  ;;  %v4622_v1 = vpop.f32.mrb[52].mxu0  ;;  %v4686_v2 = vpop.f32.mrb[52].mxu1  ;;  %v3675_v5 = vmax.f32 %v3637_v62, 0.0  ;;  %v5599_v63 = vld [vmem:[%s7570_s5 + $0x30] sm:$0xff]  }
 0x31c   :  { %v4623_v3 = vpop.f32.mrb[53].mxu0  ;;  %v4687_v4 = vpop.f32.mrb[53].mxu1  ;;  %4780 = vmatprep.subr.bf16.mxu1 %v5599_v63 }
 0x31d   :  { %v3676_v6 = vmax.f32 %v3640_v0, 0.0  ;;  %v4624_v7 = vadd.f32 %v4623_v3, %v4622_v1  ;;  %v4688_v8 = vadd.f32 %v4687_v4, %v4686_v2  ;;  %v4625_v9 = vpop.f32.mrb[54].mxu0  ;;  %v4689_v10 = vpop.f32.mrb[54].mxu1  ;;  %4781 = vmatpush3.bf16.msra.mxu1 %v5599_v63  ;;  %v5600_v0 = vld [vmem:[%s7570_s5 + $0x38] sm:$0xff]  }
 0x31e   :  { %v4626_v11 = vpop.f32.mrb[55].mxu0  ;;  %v4690_v12 = vpop.f32.mrb[55].mxu1  ;;  %4782 = vmatprep.subr.bf16.mxu1 %v5600_v0 }
 0x31f   :  { %v3548_v13 = vadd.f32 %v4624_v7, %v7234_v37  ;;  %v4627_v14 = vadd.f32 %v4626_v11, %v4625_v9  ;;  %v4691_v15 = vadd.f32 %v4690_v12, %v4689_v10  ;;  %v3687_v16 = vpack.c.bf16 %v3676_v6, %v3675_v5 }
 0x321   :  { %v3645_v17 = vadd.f32 %v4688_v8, %v3548_v13  ;;  %v3551_v18 = vadd.f32 %v4627_v14, %v7234_v37  ;;  %4760 = vmatprep.mubr.bf16.mxu0 %v3687_v16  ;;  %4783 = vmatpush3.bf16.msra.mxu1 %v5600_v0 }
 0x323   :  { %v3648_v33 = vadd.f32 %v4691_v15, %v3551_v18  ;;  %v4628_v19 = vpop.f32.mrb[56].mxu0  ;;  %v4692_v34 = vpop.f32.mrb[56].mxu1  ;;  %v3677_v20 = vmax.f32 %v3645_v17, 0.0 }
 0x324   :  { %v4629_v35 = vpop.f32.mrb[57].mxu0  ;;  %v4693_v36 = vpop.f32.mrb[57].mxu1 }
 0x325   :  { %v3678_v21 = vmax.f32 %v3648_v33, 0.0  ;;  %v4630_v22 = vadd.f32 %v4629_v35, %v4628_v19  ;;  %v4694_v23 = vadd.f32 %v4693_v36, %v4692_v34  ;;  %v4631_v24 = vpop.f32.mrb[58].mxu0  ;;  %v4695_v27 = vpop.f32.mrb[58].mxu1 }
 0x326   :  { %v4632_v28 = vpop.f32.mrb[59].mxu0  ;;  %v4696_v29 = vpop.f32.mrb[59].mxu1 }
 0x327   :  { %v3556_v30 = vadd.f32 %v4630_v22, %v7234_v37  ;;  %v4633_v31 = vadd.f32 %v4632_v28, %v4631_v24  ;;  %v4697_v32 = vadd.f32 %v4696_v29, %v4695_v27  ;;  %v3688_v38 = vpack.c.bf16 %v3678_v21, %v3677_v20 }
 0x329   :  { %v3653_v25 = vadd.f32 %v4694_v23, %v3556_v30  ;;  %v3559_v39 = vadd.f32 %v4633_v31, %v7234_v37  ;;  %4761 = vmatmul.mubr.bf16.gmra.mrb[72].mxu0 %v3688_v38 }
 0x32b   :  { %v3656_v40 = vadd.f32 %v4697_v32, %v3559_v39  ;;  %v4634_v41 = vpop.f32.mrb[60].mxu0  ;;  %v4698_v42 = vpop.f32.mrb[60].mxu1  ;;  %v3679_v45 = vmax.f32 %v3653_v25, 0.0 }
 0x32c   :  { %v4635_v43 = vpop.f32.mrb[61].mxu0  ;;  %v4699_v44 = vpop.f32.mrb[61].mxu1 }
 0x32d   :  { %v3680_v46 = vmax.f32 %v3656_v40, 0.0  ;;  %v4636_v47 = vadd.f32 %v4635_v43, %v4634_v41  ;;  %v4700_v48 = vadd.f32 %v4699_v44, %v4698_v42  ;;  %v4637_v49 = vpop.f32.mrb[62].mxu0  ;;  %v4701_v50 = vpop.f32.mrb[62].mxu1 }
 0x32e   :  { %v4638_v51 = vpop.f32.mrb[63].mxu0  ;;  %v4702_v52 = vpop.f32.mrb[63].mxu1 }
 0x32f   :  { %v3564_v53 = vadd.f32 %v4636_v47, %v7234_v37  ;;  %v4639_v54 = vadd.f32 %v4638_v51, %v4637_v49  ;;  %v4703_v55 = vadd.f32 %v4702_v52, %v4701_v50  ;;  %v3689_v56 = vpack.c.bf16 %v3680_v46, %v3679_v45 }
 0x331   :  { %v3661_v57 = vadd.f32 %v4700_v48, %v3564_v53  ;;  %v3567_v58 = vadd.f32 %v4639_v54, %v7234_v37  ;;  %4764 = vmatprep.mubr.bf16.mxu0 %v3689_v56  ;;  %v3707_v37 = vld [vmem:[%s7569_s2 + $0x2] ss:$0 sm:$0xff] }
 0x333   :  { %v3664_v59 = vadd.f32 %v4703_v55, %v3567_v58  ;;  %v3681_v60 = vmax.f32 %v3661_v57, 0.0 }
 0x335   :  { %v3682_v61 = vmax.f32 %v3664_v59, 0.0  ;;  %v4040_v59 = vand.u32 127, %v530_v26 }
 0x337   :  { %v3690_v62 = vpack.c.bf16 %v3682_v61, %v3681_v60  ;;  %vm4041_vm0 = vcmp.ge.s32.totalorder %v4040_v59, 5  ;;  %vm4042_vm1 = vcmp.lt.s32.totalorder %v4040_v59, 10  ;;  %v3893_v60 = vld [vmem:[%s7569_s2 + $0x3] ss:$0 sm:$0xff] }
 0x338   :  { %vm7265_vm2 = vmand %vm4041_vm0, %vm4042_vm1 }
 0x339   :  { %4765 = vmatmul.mubr.bf16.gmra.mrb[76].mxu0 %v3690_v62 }
 0x3dc   :  { %v4754_v1 = vpop.f32.mrb[64].mxu0 }
 0x3dd   :  { %v3799_v2 = vadd.f32 %v4754_v1, %v3707_v37  ;;  %v3790_v3 = vpop.f32.mrb[65].mxu0 }
 0x3de   :  { %v3791_v4 = vadd.f32 %v3790_v3, %v3707_v37  ;;  %v4755_v5 = vpop.f32.mrb[66].mxu0 }
 0x3df   :  { %v3802_v6 = vadd.f32 %v4755_v5, %v3707_v37  ;;  %v3793_v7 = vpop.f32.mrb[67].mxu0  ;;  %v3855_v9 = vmax.f32 %v3799_v2, 0.0 }
 0x3e0   :  { %v3794_v8 = vadd.f32 %v3793_v7, %v3707_v37  ;;  %v3853_v11 = vmax.f32 %v3791_v4, 0.0 }
 0x3e1   :  { %v3856_v10 = vmax.f32 %v3802_v6, 0.0 }
 0x3e2   :  { %v3854_v12 = vmax.f32 %v3794_v8, 0.0 }
 0x3e3   :  { %v3870_v13 = vpack.c.bf16 %v3856_v10, %v3855_v9 }
 0x3e4   :  { %v3869_v14 = vpack.c.bf16 %v3854_v12, %v3853_v11 }
 0x3e6   :  { %4784 = vmatprep.mubr.bf16.mxu1 %v3869_v14 }
 0x3e7   :  { %4785 = vmatmul.mubr.bf16.vlgmr.msra.gmra.mrb[64].mxu1 %v3870_v13 }
 0x3ec   :  { %v4758_v15 = vpop.f32.mrb[68].mxu0 }
 0x3ed   :  { %v3815_v16 = vadd.f32 %v4758_v15, %v3707_v37  ;;  %v3806_v17 = vpop.f32.mrb[69].mxu0 }
 0x3ee   :  { %v3807_v18 = vadd.f32 %v3806_v17, %v3707_v37  ;;  %v4759_v33 = vpop.f32.mrb[70].mxu0 }
 0x3ef   :  { %v3818_v19 = vadd.f32 %v4759_v33, %v3707_v37  ;;  %v3809_v34 = vpop.f32.mrb[71].mxu0  ;;  %v3859_v36 = vmax.f32 %v3815_v16, 0.0 }
 0x3f0   :  { %v3810_v35 = vadd.f32 %v3809_v34, %v3707_v37  ;;  %v3857_v21 = vmax.f32 %v3807_v18, 0.0 }
 0x3f1   :  { %v3860_v20 = vmax.f32 %v3818_v19, 0.0 }
 0x3f2   :  { %v3858_v22 = vmax.f32 %v3810_v35, 0.0 }
 0x3f3   :  { %v3872_v23 = vpack.c.bf16 %v3860_v20, %v3859_v36 }
 0x3f4   :  { %v3871_v24 = vpack.c.bf16 %v3858_v22, %v3857_v21 }
 0x3f6   :  { %4788 = vmatprep.mubr.bf16.mxu1 %v3871_v24 }
 0x3f7   :  { %4789 = vmatmul.mubr.bf16.gmra.mrb[68].mxu1 %v3872_v23 }
 0x3fc   :  { %v4762_v27 = vpop.f32.mrb[72].mxu0 }
 0x3fd   :  { %v3831_v28 = vadd.f32 %v4762_v27, %v3707_v37  ;;  %v3822_v29 = vpop.f32.mrb[73].mxu0 }
 0x3fe   :  { %v3823_v30 = vadd.f32 %v3822_v29, %v3707_v37  ;;  %v4763_v31 = vpop.f32.mrb[74].mxu0 }
 0x3ff   :  { %v3834_v32 = vadd.f32 %v4763_v31, %v3707_v37  ;;  %v3825_v38 = vpop.f32.mrb[75].mxu0  ;;  %v3863_v39 = vmax.f32 %v3831_v28, 0.0 }
 0x400   :  { %v3826_v25 = vadd.f32 %v3825_v38, %v3707_v37  ;;  %v3861_v41 = vmax.f32 %v3823_v30, 0.0 }
 0x401   :  { %v3864_v40 = vmax.f32 %v3834_v32, 0.0 }
 0x402   :  { %v3862_v42 = vmax.f32 %v3826_v25, 0.0 }
 0x403   :  { %v3874_v43 = vpack.c.bf16 %v3864_v40, %v3863_v39 }
 0x404   :  { %v3873_v44 = vpack.c.bf16 %v3862_v42, %v3861_v41 }
 0x406   :  { %4792 = vmatprep.mubr.bf16.mxu1 %v3873_v44 }
 0x407   :  { %4793 = vmatmul.mubr.bf16.gmra.mrb[72].mxu1 %v3874_v43 }
 0x40c   :  { %v4766_v45 = vpop.f32.mrb[76].mxu0 }
 0x40d   :  { %v3847_v46 = vadd.f32 %v4766_v45, %v3707_v37  ;;  %v3838_v47 = vpop.f32.mrb[77].mxu0 }
 0x40e   :  { %v3839_v48 = vadd.f32 %v3838_v47, %v3707_v37  ;;  %v4767_v49 = vpop.f32.mrb[78].mxu0 }
 0x40f   :  { %v3850_v50 = vadd.f32 %v4767_v49, %v3707_v37  ;;  %v3841_v51 = vpop.f32.mrb[79].mxu0  ;;  %v3867_v53 = vmax.f32 %v3847_v46, 0.0 }
 0x410   :  { %v3842_v52 = vadd.f32 %v3841_v51, %v3707_v37  ;;  %v3865_v55 = vmax.f32 %v3839_v48, 0.0 }
 0x411   :  { %v3868_v54 = vmax.f32 %v3850_v50, 0.0 }
 0x412   :  { %v3866_v56 = vmax.f32 %v3842_v52, 0.0 }
 0x413   :  { %v3876_v57 = vpack.c.bf16 %v3868_v54, %v3867_v53 }
 0x414   :  { %v3875_v58 = vpack.c.bf16 %v3866_v56, %v3865_v55 }
 0x416   :  { %4796 = vmatprep.mubr.bf16.mxu1 %v3875_v58 }
 0x417   :  { %4797 = vmatmul.mubr.bf16.gmra.mrb[76].mxu1 %v3876_v57 }
 0x4ba   :  { %v4786_v62 = vpop.f32.mrb[64].mxu1 }
 0x4bb   :  { %v7269_v63 = vadd.f32 %v4786_v62, %v3893_v60  ;;  %v3976_v0 = vpop.f32.mrb[65].mxu1 }
 0x4bc   :  { %v7271_v37 = vadd.f32 %v3976_v0, %v3893_v60  ;;  %v4787_v1 = vpop.f32.mrb[66].mxu1 }
 0x4bd   :  { %v7273_v2 = vadd.f32 %v4787_v1, %v3893_v60  ;;  %v3979_v26 = vpop.f32.mrb[67].mxu1  ;;  %v4046_v3 = vsel %vm7265_vm2, %v7269_v63, -inf }
 0x4be   :  { %v7278_v4 = vadd.f32 %v3979_v26, %v3893_v60  ;;  %4064 = vmax.xlane.f32.xlu1 %v4046_v3  ;;  %v4044_v5 = vsel %vm7265_vm2, %v7271_v37, -inf }
 0x4bf   :  { %4060 = vmax.xlane.f32.xlu0 %v4044_v5  ;;  %v7286_v6 = vsel %vm7265_vm2, %v7273_v2, -inf }
 0x4c0   :  { %v7292_v7 = vsel %vm7265_vm2, %v7278_v4, -inf }
 0x4c2   :  { %4066 = vmax.xlane.f32.xlu1 %v7286_v6 }
 0x4c3   :  { %4062 = vmax.xlane.f32.xlu0 %v7292_v7 }
 0x4ca   :  { %v4790_v8 = vpop.f32.mrb[68].mxu1 }
 0x4cb   :  { %v7295_v9 = vadd.f32 %v4790_v8, %v3893_v60  ;;  %v3992_v10 = vpop.f32.mrb[69].mxu1 }
 0x4cc   :  { %v4791_v11 = vpop.f32.mrb[70].mxu1  ;;  %v7297_v12 = vadd.f32 %v3992_v10, %v3893_v60 }
 0x4cd   :  { %v7299_v13 = vadd.f32 %v4791_v11, %v3893_v60  ;;  %v3995_v14 = vpop.f32.mrb[71].mxu1  ;;  %v7304_v15 = vsel %vm7265_vm2, %v7295_v9, -inf }
 0x4ce   :  { %4072 = vmax.xlane.f32.xlu0 %v7304_v15  ;;  %v7307_v16 = vadd.f32 %v3995_v14, %v3893_v60  ;;  %v7318_v18 = vsel %vm7265_vm2, %v7297_v12, -inf }
 0x4cf   :  { %v7312_v17 = vsel %vm7265_vm2, %v7299_v13, -inf }
 0x4d0   :  { %4074 = vmax.xlane.f32.xlu1 %v7312_v17  ;;  %v7324_v33 = vsel %vm7265_vm2, %v7307_v16, -inf }
 0x4d2   :  { %4068 = vmax.xlane.f32.xlu0 %v7318_v18 }
 0x4d4   :  { %4070 = vmax.xlane.f32.xlu1 %v7324_v33 }
 0x4da   :  { %v4794_v19 = vpop.f32.mrb[72].mxu1 }
 0x4db   :  { %v7327_v34 = vadd.f32 %v4794_v19, %v3893_v60  ;;  %v4008_v35 = vpop.f32.mrb[73].mxu1 }
 0x4dc   :  { %v4795_v36 = vpop.f32.mrb[74].mxu1  ;;  %v7329_v20 = vadd.f32 %v4008_v35, %v3893_v60 }
 0x4dd   :  { %v7331_v21 = vadd.f32 %v4795_v36, %v3893_v60  ;;  %v4011_v22 = vpop.f32.mrb[75].mxu1  ;;  %v7336_v23 = vsel %vm7265_vm2, %v7327_v34, -inf }
 0x4de   :  { %4080 = vmax.xlane.f32.xlu0 %v7336_v23  ;;  %v7339_v24 = vadd.f32 %v4011_v22, %v3893_v60  ;;  %v7350_v28 = vsel %vm7265_vm2, %v7329_v20, -inf }
 0x4df   :  { %v7344_v27 = vsel %vm7265_vm2, %v7331_v21, -inf }
 0x4e0   :  { %4082 = vmax.xlane.f32.xlu1 %v7344_v27  ;;  %v7356_v29 = vsel %vm7265_vm2, %v7339_v24, -inf }
 0x4e2   :  { %4076 = vmax.xlane.f32.xlu0 %v7350_v28 }
 0x4e4   :  { %4078 = vmax.xlane.f32.xlu1 %v7356_v29 }
 0x4ea   :  { %v4798_v30 = vpop.f32.mrb[76].mxu1 }
 0x4eb   :  { %v4024_v31 = vpop.f32.mrb[77].mxu1  ;;  %v7361_v39 = vadd.f32 %v4798_v30, %v3893_v60 }
 0x4ec   :  { %v7359_v32 = vadd.f32 %v4024_v31, %v3893_v60  ;;  %v4799_v38 = vpop.f32.mrb[78].mxu1 }
 0x4ed   :  { %v4027_v25 = vpop.f32.mrb[79].mxu1  ;;  %v7371_v42 = vadd.f32 %v4799_v38, %v3893_v60  ;;  %v7382_v44 = vsel %vm7265_vm2, %v7361_v39, -inf }
 0x4ee   :  { %v7363_v40 = vadd.f32 %v4027_v25, %v3893_v60  ;;  %v7368_v41 = vsel %vm7265_vm2, %v7359_v32, -inf }
 0x4ef   :  { %4084 = vmax.xlane.f32.xlu0 %v7368_v41  ;;  %v7388_v45 = vsel %vm7265_vm2, %v7371_v42, -inf }
 0x4f0   :  { %v7376_v43 = vsel %vm7265_vm2, %v7363_v40, -inf }
 0x4f1   :  { %4086 = vmax.xlane.f32.xlu1 %v7376_v43 }
 0x4f3   :  { %4088 = vmax.xlane.f32.xlu0 %v7382_v44 }
 0x4f5   :  { %4090 = vmax.xlane.f32.xlu1 %v7388_v45 }
 0x54b   :  { %v4065_v46 = vpop.xlane.xlu1 %4064 }
 0x54c   :  { %v4094_v47 = vsub.f32 %v4046_v3, %v4065_v46  ;;  %v4061_v48 = vpop.xlane.xlu0 %4060 }
 0x54d   :  { %v4092_v49 = vsub.f32 %v4044_v5, %v4061_v48 }
 0x54e   :  { %v4112_v50 = vmul.f32 1.442695, %v4094_v47 }
 0x54f   :  { %v4108_v51 = vmul.f32 1.442695, %v4092_v49  ;;  %v4067_v52 = vpop.xlane.xlu1 %4066 }
 0x550   :  { %5601 = vpow2.f32 %v4112_v50  ;;  %v4095_v53 = vsub.f32 %v7286_v6, %v4067_v52  ;;  %v4063_v54 = vpop.xlane.xlu0 %4062 }
 0x551   :  { %v4093_v55 = vsub.f32 %v7292_v7, %v4063_v54  ;;  %5603 = vpow2.f32 %v4108_v51 }
 0x552   :  { %v4114_v56 = vmul.f32 1.442695, %v4095_v53 }
 0x553   :  { %v4110_v57 = vmul.f32 1.442695, %v4093_v55 }
 0x554   :  { %5605 = vpow2.f32 %v4114_v56 }
 0x555   :  { %5607 = vpow2.f32 %v4110_v57 }
 0x55a   :  { %v7393_v58 = vpop.eup %5601 }
 0x55b   :  { %4144 = vadd.xlane.f32.xlu0 %v7393_v58  ;;  %v4073_v59 = vpop.xlane.xlu0 %4072  ;;  %v7397_v62 = vpop.eup %5603 }
 0x55c   :  { %v4098_v60 = vsub.f32 %v7304_v15, %v4073_v59 }
 0x55d   :  { %v4075_v0 = vpop.xlane.xlu1 %4074 }
 0x55e   :  { %v7399_v1 = vpop.eup %5605  ;;  %v4120_v26 = vmul.f32 1.442695, %v4098_v60  ;;  %v4099_v3 = vsub.f32 %v7312_v17, %v4075_v0 }
 0x55f   :  { %4146 = vadd.xlane.f32.xlu1 %v7399_v1  ;;  %4140 = vadd.xlane.f32.xlu0 %v7397_v62  ;;  %v4069_v5 = vpop.xlane.xlu0 %4068  ;;  %v7405_v10 = vpop.eup %5607 }
 0x560   :  { %5609 = vpow2.f32 %v4120_v26  ;;  %v4122_v6 = vmul.f32 1.442695, %v4099_v3  ;;  %v4096_v7 = vsub.f32 %v7318_v18, %v4069_v5 }
 0x561   :  { %v4071_v8 = vpop.xlane.xlu1 %4070 }
 0x562   :  { %5611 = vpow2.f32 %v4122_v6  ;;  %v4116_v11 = vmul.f32 1.442695, %v4096_v7  ;;  %v4097_v14 = vsub.f32 %v7324_v33, %v4071_v8 }
 0x563   :  { %4142 = vadd.xlane.f32.xlu1 %v7405_v10 }
 0x564   :  { %5613 = vpow2.f32 %v4116_v11  ;;  %v4118_v15 = vmul.f32 1.442695, %v4097_v14 }
 0x566   :  { %5615 = vpow2.f32 %v4118_v15 }
 0x56a   :  { %v7409_v17 = vpop.eup %5609 }
 0x56b   :  { %4152 = vadd.xlane.f32.xlu0 %v7409_v17  ;;  %v4081_v19 = vpop.xlane.xlu0 %4080 }
 0x56c   :  { %v7412_v35 = vpop.eup %5611  ;;  %v4102_v18 = vsub.f32 %v7336_v23, %v4081_v19 }
 0x56d   :  { %v4083_v36 = vpop.xlane.xlu1 %4082  ;;  %4154 = vadd.xlane.f32.xlu1 %v7412_v35 }
 0x56e   :  { %v7416_v22 = vpop.eup %5613  ;;  %v4128_v33 = vmul.f32 1.442695, %v4102_v18  ;;  %v4103_v30 = vsub.f32 %v7344_v27, %v4083_v36 }
 0x56f   :  { %4148 = vadd.xlane.f32.xlu0 %v7416_v22  ;;  %v4077_v31 = vpop.xlane.xlu0 %4076 }
 0x570   :  { %v7420_v38 = vpop.eup %5615  ;;  %5617 = vpow2.f32 %v4128_v33  ;;  %v4130_v25 = vmul.f32 1.442695, %v4103_v30  ;;  %v4100_v46 = vsub.f32 %v7350_v28, %v4077_v31 }
 0x571   :  { %v4079_v47 = vpop.xlane.xlu1 %4078  ;;  %4150 = vadd.xlane.f32.xlu1 %v7420_v38 }
 0x572   :  { %5619 = vpow2.f32 %v4130_v25  ;;  %v4124_v23 = vmul.f32 1.442695, %v4100_v46  ;;  %v4101_v48 = vsub.f32 %v7356_v29, %v4079_v47 }
 0x574   :  { %5621 = vpow2.f32 %v4124_v23  ;;  %v4126_v49 = vmul.f32 1.442695, %v4101_v48 }
 0x576   :  { %5623 = vpow2.f32 %v4126_v49 }
 0x57a   :  { %v7425_v27 = vpop.eup %5617 }
 0x57b   :  { %4160 = vadd.xlane.f32.xlu0 %v7425_v27 }
 0x57c   :  { %v7428_v50 = vpop.eup %5619  ;;  %v4085_v51 = vpop.xlane.xlu0 %4084 }
 0x57d   :  { %v4104_v52 = vsub.f32 %v7368_v41, %v4085_v51  ;;  %4162 = vadd.xlane.f32.xlu1 %v7428_v50 }
 0x57e   :  { %v7432_v28 = vpop.eup %5621  ;;  %v4087_v53 = vpop.xlane.xlu1 %4086 }
 0x57f   :  { %v4132_v54 = vmul.f32 1.442695, %v4104_v52  ;;  %v4105_v29 = vsub.f32 %v7376_v43, %v4087_v53  ;;  %4156 = vadd.xlane.f32.xlu0 %v7432_v28 }
 0x580   :  { %v7436_v55 = vpop.eup %5623  ;;  %v4089_v56 = vpop.xlane.xlu0 %4088 }
 0x581   :  { %5625 = vpow2.f32 %v4132_v54  ;;  %v4134_v57 = vmul.f32 1.442695, %v4105_v29  ;;  %v4106_v59 = vsub.f32 %v7382_v44, %v4089_v56  ;;  %4158 = vadd.xlane.f32.xlu1 %v7436_v55 }
 0x582   :  { %v4091_v41 = vpop.xlane.xlu1 %4090 }
 0x583   :  { %5627 = vpow2.f32 %v4134_v57  ;;  %v4136_v60 = vmul.f32 1.442695, %v4106_v59  ;;  %v4107_v0 = vsub.f32 %v7388_v45, %v4091_v41 }
 0x585   :  { %5629 = vpow2.f32 %v4136_v60  ;;  %v4138_v26 = vmul.f32 1.442695, %v4107_v0 }
 0x587   :  { %5631 = vpow2.f32 %v4138_v26 }
 0x58b   :  { %v7441_v43 = vpop.eup %5625 }
 0x58c   :  { %4164 = vadd.xlane.f32.xlu0 %v7441_v43 }
 0x58d   :  { %v7444_v3 = vpop.eup %5627 }
 0x58e   :  { %4166 = vadd.xlane.f32.xlu1 %v7444_v3 }
 0x58f   :  { %v7447_v5 = vpop.eup %5629 }
 0x590   :  { %4168 = vadd.xlane.f32.xlu0 %v7447_v5 }
 0x591   :  { %v7450_v44 = vpop.eup %5631 }
 0x592   :  { %4170 = vadd.xlane.f32.xlu1 %v7450_v44 }
 0x5e8   :  { %v4145_v45 = vpop.xlane.xlu0 %4144 }
 0x5e9   :  { %5633 = vrcp.f32 %v4145_v45 }
 0x5ec   :  { %v4147_v6 = vpop.xlane.xlu1 %4146  ;;  %v4141_v7 = vpop.xlane.xlu0 %4140 }
 0x5ed   :  { %5635 = vrcp.f32 %v4147_v6 }
 0x5ee   :  { %5637 = vrcp.f32 %v4141_v7 }
 0x5f0   :  { %v4143_v8 = vpop.xlane.xlu1 %4142 }
 0x5f1   :  { %5639 = vrcp.f32 %v4143_v8 }
 0x5f3   :  { %v5634_v11 = vpop.eup %5633 }
 0x5f4   :  { %v4190_v14 = vmul.f32 %v5634_v11, %v7393_v58 }
 0x5f6   :  { %v4206_v15 = vsel %vm7265_vm2, %v4190_v14, %v7269_v63 }
 0x5f7   :  { %v5636_v19 = vpop.eup %5635  ;;  %4222 = vst [vmem:[%s7571_s6 + $0x10] sm:$0xff] %v4206_v15 }
 0x5f8   :  { %v5638_v18 = vpop.eup %5637  ;;  %v4191_v36 = vmul.f32 %v5636_v19, %v7399_v1  ;;  %v4153_v33 = vpop.xlane.xlu0 %4152 }
 0x5f9   :  { %v4188_v30 = vmul.f32 %v5638_v18, %v7397_v62  ;;  %5641 = vrcp.f32 %v4153_v33 }
 0x5fa   :  { %v4207_v58 = vsel %vm7265_vm2, %v4191_v36, %v7273_v2  ;;  %v4155_v31 = vpop.xlane.xlu1 %4154 }
 0x5fb   :  { %v5640_v25 = vpop.eup %5639  ;;  %4223 = vst [vmem:[%s7571_s6 + $0x18] sm:$0xff] %v4207_v58  ;;  %v4204_v63 = vsel %vm7265_vm2, %v4188_v30, %v7271_v37  ;;  %5643 = vrcp.f32 %v4155_v31 }
 0x5fc   :  { %4220 = vst [vmem:[%s7571_s6] sm:$0xff] %v4204_v63  ;;  %v4189_v62 = vmul.f32 %v5640_v25, %v7405_v10  ;;  %v4149_v1 = vpop.xlane.xlu0 %4148 }
 0x5fd   :  { %5645 = vrcp.f32 %v4149_v1 }
 0x5fe   :  { %v4205_v2 = vsel %vm7265_vm2, %v4189_v62, %v7278_v4  ;;  %v4151_v46 = vpop.xlane.xlu1 %4150 }
 0x5ff   :  { %4221 = vst [vmem:[%s7571_s6 + $0x8] sm:$0xff] %v4205_v2  ;;  %5647 = vrcp.f32 %v4151_v46 }
 0x603   :  { %v5642_v37 = vpop.eup %5641 }
 0x604   :  { %v4194_v47 = vmul.f32 %v5642_v37, %v7409_v17 }
 0x605   :  { %v5644_v23 = vpop.eup %5643 }
 0x606   :  { %v4210_v10 = vsel %vm7265_vm2, %v4194_v47, %v7295_v9  ;;  %v4195_v48 = vmul.f32 %v5644_v23, %v7412_v35 }
 0x607   :  { %v5646_v49 = vpop.eup %5645  ;;  %4226 = vst [vmem:[%s7571_s6 + $0x30] sm:$0xff] %v4210_v10 }
 0x608   :  { %v4211_v4 = vsel %vm7265_vm2, %v4195_v48, %v7299_v13  ;;  %v4192_v51 = vmul.f32 %v5646_v49, %v7416_v22  ;;  %v4161_v52 = vpop.xlane.xlu0 %4160 }
 0x609   :  { %v5648_v17 = vpop.eup %5647  ;;  %4227 = vst [vmem:[%s7571_s6 + $0x38] sm:$0xff] %v4211_v4  ;;  %5649 = vrcp.f32 %v4161_v52 }
 0x60a   :  { %v4208_v9 = vsel %vm7265_vm2, %v4192_v51, %v7297_v12  ;;  %v4193_v35 = vmul.f32 %v5648_v17, %v7420_v38  ;;  %v4163_v53 = vpop.xlane.xlu1 %4162 }
 0x60b   :  { %4224 = vst [vmem:[%s7571_s6 + $0x20] sm:$0xff] %v4208_v9  ;;  %5651 = vrcp.f32 %v4163_v53 }
 0x60c   :  { %v4209_v13 = vsel %vm7265_vm2, %v4193_v35, %v7307_v16  ;;  %v4157_v22 = vpop.xlane.xlu0 %4156 }
 0x60d   :  { %4225 = vst [vmem:[%s7571_s6 + $0x28] sm:$0xff] %v4209_v13  ;;  %5653 = vrcp.f32 %v4157_v22 }
 0x60e   :  { %v4159_v54 = vpop.xlane.xlu1 %4158 }
 0x60f   :  { %5655 = vrcp.f32 %v4159_v54 }
 0x613   :  { %v5650_v12 = vpop.eup %5649 }
 0x614   :  { %v4198_v38 = vmul.f32 %v5650_v12, %v7425_v27 }
 0x615   :  { %v5652_v29 = vpop.eup %5651 }
 0x616   :  { %v4214_v56 = vsel %vm7265_vm2, %v4198_v38, %v7327_v34  ;;  %v4199_v57 = vmul.f32 %v5652_v29, %v7428_v50 }
 0x617   :  { %v5654_v59 = vpop.eup %5653  ;;  %4230 = vst [vmem:[%s7571_s6 + $0x50] sm:$0xff] %v4214_v56 }
 0x618   :  { %v4215_v16 = vsel %vm7265_vm2, %v4199_v57, %v7331_v21  ;;  %v4196_v41 = vmul.f32 %v5654_v59, %v7432_v28 }
 0x619   :  { %v5656_v60 = vpop.eup %5655  ;;  %4231 = vst [vmem:[%s7571_s6 + $0x58] sm:$0xff] %v4215_v16  ;;  %v4165_v27 = vpop.xlane.xlu0 %4164 }
 0x61a   :  { %v4212_v34 = vsel %vm7265_vm2, %v4196_v41, %v7329_v20  ;;  %v4197_v50 = vmul.f32 %v5656_v60, %v7436_v55  ;;  %5657 = vrcp.f32 %v4165_v27 }
 0x61b   :  { %4228 = vst [vmem:[%s7571_s6 + $0x40] sm:$0xff] %v4212_v34  ;;  %v4167_v21 = vpop.xlane.xlu1 %4166 }
 0x61c   :  { %v4213_v28 = vsel %vm7265_vm2, %v4197_v50, %v7339_v24  ;;  %5659 = vrcp.f32 %v4167_v21 }
 0x61d   :  { %4229 = vst [vmem:[%s7571_s6 + $0x48] sm:$0xff] %v4213_v28  ;;  %v4169_v0 = vpop.xlane.xlu0 %4168 }
 0x61e   :  { %5661 = vrcp.f32 %v4169_v0 }
 0x61f   :  { %v4171_v20 = vpop.xlane.xlu1 %4170 }
 0x620   :  { %5663 = vrcp.f32 %v4171_v20 }
 0x624   :  { %v5658_v55 = vpop.eup %5657 }
 0x625   :  { %v4200_v26 = vmul.f32 %v5658_v55, %v7441_v43 }
 0x626   :  { %v5660_v45 = vpop.eup %5659 }
 0x627   :  { %v4216_v6 = vsel %vm7265_vm2, %v4200_v26, %v7359_v32  ;;  %v4201_v7 = vmul.f32 %v5660_v45, %v7444_v3 }
 0x628   :  { %v5662_v24 = vpop.eup %5661  ;;  %4232 = vst [vmem:[%s7571_s6 + $0x60] sm:$0xff] %v4216_v6 }
 0x629   :  { %v4217_v8 = vsel %vm7265_vm2, %v4201_v7, %v7363_v40  ;;  %v4202_v11 = vmul.f32 %v5662_v24, %v7447_v5 }
 0x62a   :  { %v5664_v14 = vpop.eup %5663  ;;  %4233 = vst [vmem:[%s7571_s6 + $0x68] sm:$0xff] %v4217_v8 }
 0x62b   :  { %v4218_v32 = vsel %vm7265_vm2, %v4202_v11, %v7361_v39  ;;  %v4203_v43 = vmul.f32 %v5664_v14, %v7450_v44 }
 0x62c   :  { %4234 = vst [vmem:[%s7571_s6 + $0x70] sm:$0xff] %v4218_v32 }
 0x62d   :  { %v4219_v40 = vsel %vm7265_vm2, %v4203_v43, %v7371_v42 }
 0x62e   :  { %4235 = vst [vmem:[%s7571_s6 + $0x78] sm:$0xff] %v4219_v40 }

</bundles_post_ra>
